<compile_context>
chip_gen: v5e
topology: v5e:2x2
jax: 0.10.0
libtpu: 0.0.40
codegen_flags: <defaults>
</compile_context>

<pallas_src>
import functools
import math

import numpy as np
import jax
import jax.numpy as jnp
from jax.experimental import pallas as pl
from jax.experimental.pallas import tpu as pltpu

NEG_BIG = -1e30
VMEM_LIMIT = 32 * 1024 * 1024


# ----------------------------------------------------------------------------
# Tile pickers
# ----------------------------------------------------------------------------
def _pick_tile(n):
    """Largest node-row tile (multiple of 16, <=1024) that still leaves >=2
    grid steps when possible (v7x 2-TC friendly)."""
    cands = [t for t in (1024, 512, 256, 128, 64, 32, 16) if n % t == 0]
    if not cands:
        return n
    for t in cands:
        if n // t >= 2:
            return t
    return cands[-1]


def _pick_row_tile(n):
    cands = [t for t in (512, 256, 128, 64, 32, 16, 8) if n % t == 0]
    if not cands:
        return n
    for t in cands:
        if n // t >= 2:
            return t
    return cands[-1]


def _pick_graph_block(bd):
    """Graphs per readout block (multiple of 8)."""
    cands = [g for g in (64, 32, 16, 8) if bd % g == 0]
    if not cands:
        return bd
    for g in cands:
        if bd // g >= 2:
            return g
    return cands[-1]


# ----------------------------------------------------------------------------
# Pallas kernels
# ----------------------------------------------------------------------------
def _conv_score_kernel(x_ref, w_ref, b_ref, wn_ref, h_ref, s_ref, *, nb):
    # x [tm, K] bf16, w [K, OUT] bf16, b [1, OUT] f32, wn [OUT, 128] bf16
    # Emits: h_ref [tm, OUT] bf16 = leaky_relu(x@w+b) * tanh(score) per group,
    #        s_ref [tm, 128]  f32 = raw (normalized) pooling scores, cols 0..nb-1.
    h = jnp.dot(x_ref[...], w_ref[...], preferred_element_type=jnp.float32)
    h = h + b_ref[...]
    h = jnp.where(h > 0, h, 0.01 * h)                       # leaky_relu
    s = jnp.dot(h.astype(jnp.bfloat16), wn_ref[...],
                preferred_element_type=jnp.float32)         # [tm, 128]
    s_ref[...] = s
    th = jnp.tanh(s)
    out = h.shape[-1]
    d = out // nb
    for bi in range(nb):
        h_ref[:, bi * d:(bi + 1) * d] = (
            h[:, bi * d:(bi + 1) * d] * th[:, bi:bi + 1]).astype(jnp.bfloat16)


def conv_score(big_x, w, b, wn, nb):
    """Fused RGCN linear (+bias, leaky_relu) + TopKPooling score + tanh-scale."""
    N, K = big_x.shape
    OUT = w.shape[1]
    tm = _pick_tile(N)
    h, s = pl.pallas_call(
        functools.partial(_conv_score_kernel, nb=nb),
        out_shape=(jax.ShapeDtypeStruct((N, OUT), jnp.bfloat16),
                   jax.ShapeDtypeStruct((N, 128), jnp.float32)),
        grid=(N // tm,),
        in_specs=[pl.BlockSpec((tm, K), lambda i: (i, 0)),
                  pl.BlockSpec((K, OUT), lambda i: (0, 0)),
                  pl.BlockSpec((1, OUT), lambda i: (0, 0)),
                  pl.BlockSpec((OUT, 128), lambda i: (0, 0))],
        out_specs=(pl.BlockSpec((tm, OUT), lambda i: (i, 0)),
                   pl.BlockSpec((tm, 128), lambda i: (i, 0))),
        compiler_params=pltpu.CompilerParams(
            dimension_semantics=("parallel",),
            vmem_limit_bytes=VMEM_LIMIT),
    )(big_x.astype(jnp.bfloat16), w, b, wn)
    return h, s


def _maxmean_kernel(xd_ref, m_ref, o_ref):
    # xd [Gb, Nmax, D] bf16, m [Gb, Nmax, 1] f32 -> o [Gb, 2D] = max || mean
    x = xd_ref[...].astype(jnp.float32)
    m = m_ref[...]
    d = x.shape[-1]
    mx = jnp.max(jnp.where(m > 0, x, NEG_BIG), axis=1)       # [Gb, D]
    cnt = jnp.maximum(jnp.sum(m, axis=1), 1.0)               # [Gb, 1]
    mean = jnp.sum(x * m, axis=1) / cnt                      # [Gb, D]
    o_ref[:, :d] = mx
    o_ref[:, d:] = mean


def maxmean_pallas(xd, md3):
    Bd, Nmax, D = xd.shape
    gb = _pick_graph_block(Bd)
    return pl.pallas_call(
        _maxmean_kernel,
        out_shape=jax.ShapeDtypeStruct((Bd, 2 * D), jnp.float32),
        grid=(Bd // gb,),
        in_specs=[pl.BlockSpec((gb, Nmax, D), lambda g: (g, 0, 0)),
                  pl.BlockSpec((gb, Nmax, 1), lambda g: (g, 0, 0))],
        out_specs=pl.BlockSpec((gb, 2 * D), lambda g: (g, 0)),
        compiler_params=pltpu.CompilerParams(
            dimension_semantics=("parallel",),
            vmem_limit_bytes=VMEM_LIMIT),
    )(xd, md3)


def _set2set_kernel(xd_ref, m_ref, w_ref, b_ref, q_ref, *, steps):
    # Batched over Gb graphs: xd [Gb, Nmax, D] bf16, m [Gb, Nmax, 1] f32,
    # w [3D, 4D] bf16 (W_ih^T || W_hh^T), b [1, 4D] f32.
    xd = xd_ref[...].astype(jnp.float32)
    m = m_ref[...]
    w = w_ref[...]
    b = b_ref[...]
    gb, _, D = xd.shape
    h = jnp.zeros((gb, D), jnp.float32)
    c = jnp.zeros((gb, D), jnp.float32)
    q_star = jnp.zeros((gb, 2 * D), jnp.float32)
    for _ in range(steps):                                   # unrolled (steps=3)
        inp = jnp.concatenate([q_star, h], axis=1)           # [Gb, 3D]
        gates = jnp.dot(inp.astype(jnp.bfloat16), w,
                        preferred_element_type=jnp.float32) + b
        ig = jax.nn.sigmoid(gates[:, 0 * D:1 * D])
        fg = jax.nn.sigmoid(gates[:, 1 * D:2 * D])
        gg = jnp.tanh(gates[:, 2 * D:3 * D])
        og = jax.nn.sigmoid(gates[:, 3 * D:4 * D])
        c = fg * c + ig * gg
        h = og * jnp.tanh(c)
        # masked attention over the nodes of each graph
        e = jnp.sum(xd * h[:, None, :], axis=-1, keepdims=True)   # [Gb,Nmax,1]
        e = jnp.where(m > 0, e, NEG_BIG)
        emax = jnp.max(e, axis=1, keepdims=True)
        p = jnp.exp(e - emax) * m
        denom = jnp.maximum(jnp.sum(p, axis=1, keepdims=True), 1e-30)
        # approx reciprocal: small relative error, fine for inference
        a = p * pl.reciprocal(denom, approx=True)
        r = jnp.sum(a * xd, axis=1)                          # [Gb, D]
        q_star = jnp.concatenate([h, r], axis=1)             # [Gb, 2D]
    q_ref[...] = q_star


def set2set_pallas(xd, md3, w, b, steps=3):
    Bd, Nmax, D = xd.shape
    gb = _pick_graph_block(Bd)
    return pl.pallas_call(
        functools.partial(_set2set_kernel, steps=steps),
        out_shape=jax.ShapeDtypeStruct((Bd, 2 * D), jnp.float32),
        grid=(Bd // gb,),
        in_specs=[pl.BlockSpec((gb, Nmax, D), lambda g: (g, 0, 0)),
                  pl.BlockSpec((gb, Nmax, 1), lambda g: (g, 0, 0)),
                  pl.BlockSpec((3 * D, 4 * D), lambda g: (0, 0)),
                  pl.BlockSpec((1, 4 * D), lambda g: (0, 0))],
        out_specs=pl.BlockSpec((gb, 2 * D), lambda g: (g, 0)),
        compiler_params=pltpu.CompilerParams(
            dimension_semantics=("parallel",),
            vmem_limit_bytes=VMEM_LIMIT),
    )(xd, md3, w, b)


def _head_kernel(z_ref, w1_ref, b1_ref, w2_ref, b2_ref, w3_ref, b3_ref, o_ref):
    # TODO(synk): dropout(p=0.5) is an eval-mode identity (training=False).
    h = jnp.dot(z_ref[...].astype(jnp.bfloat16), w1_ref[...],
                preferred_element_type=jnp.float32) + b1_ref[...]
    h = jnp.where(h > 0, h, 0.01 * h)
    h = jnp.dot(h.astype(jnp.bfloat16), w2_ref[...],
                preferred_element_type=jnp.float32) + b2_ref[...]
    h = jnp.where(h > 0, h, 0.01 * h)
    logit = jnp.dot(h.astype(jnp.bfloat16), w3_ref[...],
                    preferred_element_type=jnp.float32) + b3_ref[...]
    # padded class columns carry a -1e30 bias -> exp() ~ 0 in the softmax sum
    mx = jnp.max(logit, axis=-1, keepdims=True)
    zc = logit - mx
    o_ref[...] = zc - jnp.log(jnp.sum(jnp.exp(zc), axis=-1, keepdims=True))


def head_pallas(z, hp):
    Bz, Kz = z.shape
    tz = _pick_row_tile(Bz)
    return pl.pallas_call(
        _head_kernel,
        out_shape=jax.ShapeDtypeStruct((Bz, 128), jnp.float32),
        grid=(Bz // tz,),
        in_specs=[pl.BlockSpec((tz, Kz), lambda i: (i, 0)),
                  pl.BlockSpec(hp["w1"].shape, lambda i: (0, 0)),
                  pl.BlockSpec(hp["b1"].shape, lambda i: (0, 0)),
                  pl.BlockSpec(hp["w2"].shape, lambda i: (0, 0)),
                  pl.BlockSpec(hp["b2"].shape, lambda i: (0, 0)),
                  pl.BlockSpec(hp["w3"].shape, lambda i: (0, 0)),
                  pl.BlockSpec(hp["b3"].shape, lambda i: (0, 0))],
        out_specs=pl.BlockSpec((tz, 128), lambda i: (i, 0)),
        compiler_params=pltpu.CompilerParams(
            dimension_semantics=("parallel",),
            vmem_limit_bytes=VMEM_LIMIT),
    )(z, hp["w1"], hp["b1"], hp["w2"], hp["b2"], hp["w3"], hp["b3"])


# ----------------------------------------------------------------------------
# Device-side graph bookkeeping (static shapes, jittable)
# ----------------------------------------------------------------------------
def rgcn_aggregate(x, validf, src, dst, etype, R):
    """Per-relation masked mean aggregation (PyG RGCNConv aggr='mean') using
    segment_sum with combined (dst*R + type) ids -> no [E,R,F] intermediate."""
    N, Fdim = x.shape
    ev = validf[src] * validf[dst]                           # [E]
    xs = x[src].astype(jnp.float32) * ev[:, None]            # [E, F]
    seg = dst * R + etype                                    # [E]
    sums = jax.ops.segment_sum(xs, seg, num_segments=N * R)  # [N*R, F]
    cnts = jax.ops.segment_sum(ev, seg, num_segments=N * R)  # [N*R]
    means = (sums / jnp.maximum(cnts, 1.0)[:, None]).reshape(N, R * Fdim)
    has = (cnts.reshape(N, R) > 0).astype(jnp.float32)
    return means, has


def topk_keep(score, valid, batch, pos, B, Nmax, ratio=0.5):
    """Per-graph top-k (ceil(ratio * n_valid)) via stable argsort ranking.
    Ranks the raw (pre-tanh) normalized score; tanh is monotone so ordering
    matches PyG, while avoiding artificial tanh-saturation ties."""
    validf = valid.astype(jnp.float32)
    vd = jnp.zeros((B, Nmax), jnp.float32).at[batch, pos].add(validf)
    sd = jnp.zeros((B, Nmax), jnp.float32).at[batch, pos].add(score * validf)
    sd = jnp.where(vd > 0, sd, -jnp.inf)
    n_valid = jnp.sum(vd, axis=1)
    k = jnp.ceil(ratio * n_valid).astype(jnp.int32)          # [B]
    order = jnp.argsort(-sd, axis=1)                         # descending, stable
    rank = jnp.argsort(order, axis=1)                        # inverse permutation
    keep_d = (vd > 0) & (rank < k[:, None])
    return keep_d[batch, pos] & valid


# ----------------------------------------------------------------------------
# Parameters
# ----------------------------------------------------------------------------
def init_params(key, F, R, NB, C):
    keys = iter(jax.random.split(key, 128))

    def nrm(shape, scale):
        return scale * jax.random.normal(next(keys), shape, dtype=jnp.float32)

    params = {}
    params["bn"] = dict(
        gamma=1.0 + nrm((F,), 0.1),
        beta=nrm((F,), 0.1),
        mean=nrm((F,), 0.1),
        var=1.0 + jnp.abs(nrm((F,), 0.1)),
    )

    def rgcn(in_ch):
        return dict(
            bases=nrm((NB, in_ch, 128), 1.0 / math.sqrt(in_ch)),
            comp=nrm((R, NB), 0.5),
            root=nrm((in_ch, 128), 1.0 / math.sqrt(in_ch)),
            bias=nrm((128,), 0.01),
        )

    for br in ("1", "2", "3"):
        params[f"conv1_{br}"] = rgcn(F)
        params[f"conv2_{br}"] = rgcn(128)
        params[f"conv3_{br}"] = rgcn(128)
        params[f"pool1_{br}"] = dict(weight=nrm((128,), 1.0))
        params[f"pool2_{br}"] = dict(weight=nrm((128,), 1.0))
        params[f"pool3_{br}"] = dict(weight=nrm((128,), 1.0))

    H = 128
    params["set2set"] = dict(
        w_ih=nrm((4 * H, 2 * H), 1.0 / math.sqrt(2 * H)),
        w_hh=nrm((4 * H, H), 1.0 / math.sqrt(H)),
        b_ih=nrm((4 * H,), 0.01),
        b_hh=nrm((4 * H,), 0.01),
    )
    params["lin1"] = dict(w=nrm((128 * 5, 128), 1.0 / math.sqrt(640)),
                          b=nrm((128,), 0.01))
    params["lin2"] = dict(w=nrm((128, 64), 1.0 / math.sqrt(128)),
                          b=nrm((64,), 0.01))
    params["lin3"] = dict(w=nrm((64, C), 1.0 / math.sqrt(64)),
                          b=nrm((C,), 0.01))
    return params


def prepare_params(raw, F, R, C):
    """One-time weight prep: basis einsums, BN folding, lane-dense padding,
    normalized pool vectors, bf16 casts."""
    eps = 1e-5
    scale = raw["bn"]["gamma"] * jax.lax.rsqrt(raw["bn"]["var"] + eps)
    shift = raw["bn"]["beta"] - raw["bn"]["mean"] * scale

    def rel_weights(p):
        W = jnp.einsum("rb,bio->rio", p["comp"], p["bases"])    # [R, in, 128]
        return W, p["root"], p["bias"]

    # conv1 of all three branches stacked, BatchNorm folded in.
    # big_x1 = [mean_r(x_raw)..., x_raw, has_r..., zero pad]  (K padded to 256)
    w_cols, b_cols, wn_cols = [], [], []
    for br in ("1", "2", "3"):
        W, root, bias = rel_weights(raw[f"conv1_{br}"])
        Wf = (W * scale[None, :, None]).reshape(R * F, 128)
        rootf = root * scale[:, None]
        V = jnp.einsum("f,rfo->ro", shift, W)                   # [R, 128]
        w_cols.append(jnp.concatenate([Wf, rootf, V], axis=0))
        b_cols.append(bias + shift @ root)
        wv = raw[f"pool1_{br}"]["weight"]
        wn_cols.append(wv / jnp.linalg.norm(wv))
    K1 = R * F + F + R
    K_pad = ((K1 + 127) // 128) * 128
    conv1_w = jnp.concatenate(w_cols, axis=1)                   # [K1, 384]
    conv1_w = jnp.pad(conv1_w, ((0, K_pad - K1), (0, 0))).astype(jnp.bfloat16)
    conv1_b = jnp.concatenate(b_cols).reshape(1, -1)            # [1, 384]
    Wn1 = jnp.zeros((3 * 128, 128), jnp.float32)
    for i in range(3):
        Wn1 = Wn1.at[i * 128:(i + 1) * 128, i].set(wn_cols[i])
    conv1_wn = Wn1.astype(jnp.bfloat16)                         # [384, 128]

    def layer_params(layer, br):
        W, root, bias = rel_weights(raw[f"conv{layer}_{br}"])
        big_w = jnp.concatenate([W.reshape(R * 128, 128), root],
                                axis=0).astype(jnp.bfloat16)    # [512, 128]
        wv = raw[f"pool{layer}_{br}"]["weight"]
        wn = jnp.zeros((128, 128), jnp.float32).at[:, 0].set(
            wv / jnp.linalg.norm(wv)).astype(jnp.bfloat16)
        return {"w": big_w, "b": bias.reshape(1, 128), "wn": wn}

    s2s = raw["set2set"]
    w3p = jnp.zeros((64, 128), jnp.float32).at[:, :C].set(raw["lin3"]["w"])
    b3p = jnp.full((1, 128), NEG_BIG, jnp.float32).at[0, :C].set(
        raw["lin3"]["b"])
    return {
        "conv1_w": conv1_w, "conv1_b": conv1_b, "conv1_wn": conv1_wn,
        "conv2": [layer_params(2, br) for br in ("1", "2", "3")],
        "conv3": [layer_params(3, br) for br in ("1", "2", "3")],
        "s2s_w": jnp.concatenate([s2s["w_ih"].T, s2s["w_hh"].T],
                                 axis=0).astype(jnp.bfloat16),  # [3H, 4H]
        "s2s_b": (s2s["b_ih"] + s2s["b_hh"]).reshape(1, -1),
        "head": {
            "w1": raw["lin1"]["w"].astype(jnp.bfloat16),
            "b1": raw["lin1"]["b"].reshape(1, -1),
            "w2": raw["lin2"]["w"].astype(jnp.bfloat16),
            "b2": raw["lin2"]["b"].reshape(1, -1),
            "w3": w3p.astype(jnp.bfloat16),
            "b3": b3p,
        },
    }


# ----------------------------------------------------------------------------
# Full forward (jittable, no host syncs)
# ----------------------------------------------------------------------------
def model_forward(params, x, src, dst, etype, batch, pos, valid0, *,
                  B, Bd, Nmax, R, C):
    N = x.shape[0]
    validf0 = valid0.astype(jnp.float32)

    # node-id lookup table for the sort-pool branch (built once)
    nid_masked = jnp.where(valid0, jnp.arange(N, dtype=jnp.int32), 0)
    nid_d = jnp.zeros((B, Nmax), jnp.int32).at[batch, pos].add(nid_masked)

    # shared conv1 (+pool1 scores) for all three branches, BN folded, K padded
    means, has = rgcn_aggregate(x, validf0, src, dst, etype, R)
    big1 = jnp.concatenate([means, x.astype(jnp.float32), has], axis=1)
    big1 = jnp.pad(big1, ((0, 0), (0, params["conv1_w"].shape[0] - big1.shape[1])))
    h_all, s_all = conv_score(big1, params["conv1_w"], params["conv1_b"],
                              params["conv1_wn"], nb=3)     # bf16 [N,384], f32 [N,128]

    def dense_xm(xt, vf):
        D = xt.shape[1]
        xd = jnp.zeros((Bd, Nmax, D), jnp.bfloat16).at[batch, pos].add(xt)
        md = jnp.zeros((Bd, Nmax), jnp.float32).at[batch, pos].add(vf)
        return xd, md[:, :, None]

    def ro_maxmean(xt, vf):
        xd, md3 = dense_xm(xt, vf)
        return maxmean_pallas(xd, md3)[:B]                   # [B, 256]

    def ro_set2set(xt, vf):
        xd, md3 = dense_xm(xt, vf)
        return set2set_pallas(xd, md3, params["s2s_w"], params["s2s_b"])[:B]

    def ro_sort(xt, vf):
        # global_sort_pool with k=1: segment-max over the last channel + gather
        # (no [B,Nmax,128] dense scatter needed).
        last = jnp.where(vf > 0, xt[:, -1].astype(jnp.float32), -jnp.inf)
        last_d = jnp.full((B, Nmax), -jnp.inf, jnp.float32).at[batch, pos].max(last)
        sel = jnp.argmax(last_d, axis=1)                     # [B]
        winner = nid_d[jnp.arange(B), sel]                   # [B]
        return xt[winner].astype(jnp.float32)                # [B, 128]

    readouts = (ro_maxmean, ro_set2set, ro_sort)
    branch_res = []
    for bi in range(3):
        h = h_all[:, bi * 128:(bi + 1) * 128]                # bf16, tanh(score)-scaled
        s = s_all[:, bi]                                     # raw score, f32
        keep = topk_keep(s, valid0, batch, pos, B, Nmax)
        vf = keep.astype(jnp.float32)
        xt = h * keep.astype(jnp.bfloat16)[:, None]
        res = readouts[bi](xt, vf)
        valid = keep
        for lp in (params["conv2"][bi], params["conv3"][bi]):
            means_l, _ = rgcn_aggregate(xt, vf, src, dst, etype, R)
            big_x = jnp.concatenate([means_l.astype(jnp.bfloat16), xt], axis=1)
            h, s_l = conv_score(big_x, lp["w"], lp["b"], lp["wn"], nb=1)
            s = s_l[:, 0]
            keep = topk_keep(s, valid, batch, pos, B, Nmax)
            valid = keep
            vf = keep.astype(jnp.float32)
            xt = h * keep.astype(jnp.bfloat16)[:, None]
            res = res + readouts[bi](xt, vf)
        branch_res.append(res)

    z = jnp.concatenate(branch_res, axis=1)                  # [B, 640] f32
    Bz = ((B + 7) // 8) * 8
    z = jnp.pad(z, ((0, Bz - B), (0, 0)))
    logp = head_pallas(z, params["head"])                    # [Bz, 128]
    return logp[:B, :C]


# ----------------------------------------------------------------------------
# Main
# ----------------------------------------------------------------------------
if __name__ == "__main__":
    F_FEAT, R, NB, C = 32, 3, 2, 2
    key = jax.random.PRNGKey(0)
    kp, kx, ke = jax.random.split(key, 3)
    raw = init_params(kp, F_FEAT, R, NB, C)
    params = prepare_params(raw, F_FEAT, R, C)

    nodes_per_graph, B = 8, 2
    N = nodes_per_graph * B
    x_np = np.asarray(jax.random.normal(kx, (N, F_FEAT), dtype=jnp.float32))
    batch_np = np.repeat(np.arange(B), nodes_per_graph).astype(np.int32)

    srcs, dsts = [], []
    for g in range(B):
        off = g * nodes_per_graph
        for i in range(nodes_per_graph):
            j = (i + 1) % nodes_per_graph
            k2 = (i + 3) % nodes_per_graph
            srcs += [off + i, off + j, off + i]
            dsts += [off + j, off + i, off + k2]
    src_np = np.array(srcs, np.int32)
    dst_np = np.array(dsts, np.int32)
    E = src_np.shape[0]
    etype_np = np.asarray(jax.random.randint(ke, (E,), 0, R), dtype=np.int32)

    # one-time host-side static layout prep (no per-forward host syncs)
    pos_np = np.zeros(N, np.int32)
    cnt = {}
    for i, bb in enumerate(batch_np):
        pos_np[i] = cnt.get(int(bb), 0)
        cnt[int(bb)] = pos_np[i] + 1
    counts = np.bincount(batch_np, minlength=B)
    Nmax = int(((max(int(counts.max()), 1) + 7) // 8) * 8)
    Bd = ((B + 7) // 8) * 8

    # node padding: multiple of 16 (bf16 tiles), >=32 so the conv grid has
    # at least 2 parallel steps (v7x 2-TC sharding)
    N_pad = max(32, ((N + 15) // 16) * 16)
    pad = N_pad - N
    x_pad = np.concatenate([x_np, np.zeros((pad, F_FEAT), np.float32)]) if pad else x_np
    batch_pad = np.concatenate([batch_np, np.zeros(pad, np.int32)]) if pad else batch_np
    pos_pad = np.concatenate([pos_np, np.zeros(pad, np.int32)]) if pad else pos_np
    valid_pad = np.concatenate([np.ones(N, bool), np.zeros(pad, bool)]) if pad \
        else np.ones(N, bool)

    fwd = jax.jit(functools.partial(model_forward, B=B, Bd=Bd, Nmax=Nmax, R=R, C=C))
    out = fwd(params,
              jnp.asarray(x_pad),
              jnp.asarray(src_np),
              jnp.asarray(dst_np),
              jnp.asarray(etype_np),
              jnp.asarray(batch_pad, jnp.int32),
              jnp.asarray(pos_pad, jnp.int32),
              jnp.asarray(valid_pad))
    out = jax.block_until_ready(out)
    assert out.shape == (B, C)
    assert bool(jnp.all(jnp.isfinite(out)))
    print("KERNEL_OK")
</pallas_src>

<mosaic_0001>
module attributes {stable_mosaic.version = 11 : i64} {
  func.func @_conv_score_kernel(%arg0: i32, %arg1: memref<16x256xbf16, #tpu.memory_space<vmem>>, %arg2: memref<256x384xbf16, #tpu.memory_space<vmem>>, %arg3: memref<1x384xf32, #tpu.memory_space<vmem>>, %arg4: memref<384x128xbf16, #tpu.memory_space<vmem>>, %arg5: memref<16x384xbf16, #tpu.memory_space<vmem>>, %arg6: memref<16x128xf32, #tpu.memory_space<vmem>>) attributes {dimension_semantics = [#tpu.dimension_semantics<parallel>], iteration_bounds = array<i64: 2>, scalar_prefetch = 0 : i64, scratch_operands = 0 : i64, tpu.core_type = #tpu.core_type<tc>, window_params = [{transform_indices = @transform_0, window_bounds = array<i64: 16, 256>}, {pipeline_mode = #tpu.pipeline_mode<synchronous>, transform_indices = @transform_1, window_bounds = array<i64: 256, 384>}, {pipeline_mode = #tpu.pipeline_mode<synchronous>, transform_indices = @transform_2, window_bounds = array<i64: 1, 384>}, {pipeline_mode = #tpu.pipeline_mode<synchronous>, transform_indices = @transform_3, window_bounds = array<i64: 384, 128>}, {transform_indices = @transform_4, window_bounds = array<i64: 16, 384>}, {transform_indices = @transform_5, window_bounds = array<i64: 16, 128>}]} {
    %c0 = arith.constant 0 : index
    %c0_0 = arith.constant 0 : index
    %0 = vector.load %arg1[%c0, %c0_0] : memref<16x256xbf16, #tpu.memory_space<vmem>>, vector<16x256xbf16>
    %c0_1 = arith.constant 0 : index
    %c0_2 = arith.constant 0 : index
    %1 = vector.load %arg2[%c0_1, %c0_2] : memref<256x384xbf16, #tpu.memory_space<vmem>>, vector<256x384xbf16>
    %cst = arith.constant dense<0.000000e+00> : vector<16x384xf32>
    %2 = tpu.matmul %0, %1, %cst {dimension_numbers = #tpu.dot_dimension_numbers<[1], [0], [0], [1], [0, 0, 1, 1], [], []>} : vector<16x256xbf16>, vector<256x384xbf16>, vector<16x384xf32> -> vector<16x384xf32>
    %c0_3 = arith.constant 0 : index
    %c0_4 = arith.constant 0 : index
    %3 = vector.load %arg3[%c0_3, %c0_4] : memref<1x384xf32, #tpu.memory_space<vmem>>, vector<1x384xf32>
    %4 = vector.broadcast %3 : vector<1x384xf32> to vector<16x384xf32>
    %5 = arith.addf %2, %4 : vector<16x384xf32>
    %cst_5 = arith.constant 0.000000e+00 : f32
    %6 = vector.broadcast %cst_5 : f32 to vector<16x384xf32>
    %7 = arith.cmpf ogt, %5, %6 : vector<16x384xf32>
    %cst_6 = arith.constant 0.00999999977 : f32
    %8 = vector.broadcast %cst_6 : f32 to vector<16x384xf32>
    %9 = arith.mulf %8, %5 : vector<16x384xf32>
    %10 = arith.select %7, %5, %9 : vector<16x384xi1>, vector<16x384xf32>
    %11 = arith.truncf %10 : vector<16x384xf32> to vector<16x384xbf16>
    %c0_7 = arith.constant 0 : index
    %c0_8 = arith.constant 0 : index
    %12 = vector.load %arg4[%c0_7, %c0_8] : memref<384x128xbf16, #tpu.memory_space<vmem>>, vector<384x128xbf16>
    %cst_9 = arith.constant dense<0.000000e+00> : vector<16x128xf32>
    %13 = tpu.matmul %11, %12, %cst_9 {dimension_numbers = #tpu.dot_dimension_numbers<[1], [0], [0], [1], [0, 0, 1, 1], [], []>} : vector<16x384xbf16>, vector<384x128xbf16>, vector<16x128xf32> -> vector<16x128xf32>
    %c0_10 = arith.constant 0 : index
    %c0_11 = arith.constant 0 : index
    %14 = vector.load %arg6[%c0_10, %c0_11] : memref<16x128xf32, #tpu.memory_space<vmem>>, vector<16x128xf32>
    tpu.vector_store %arg6[%c0_10, %c0_11], %13 {strides = array<i32>} : memref<16x128xf32, #tpu.memory_space<vmem>>, vector<16x128xf32>,
    %15 = math.tanh %13 : vector<16x128xf32>
    %16 = vector.extract_strided_slice %10 {offsets = [0, 0], sizes = [16, 128], strides = [1, 1]} : vector<16x384xf32> to vector<16x128xf32>
    %17 = vector.extract_strided_slice %15 {offsets = [0, 0], sizes = [16, 1], strides = [1, 1]} : vector<16x128xf32> to vector<16x1xf32>
    %18 = vector.broadcast %17 : vector<16x1xf32> to vector<16x128xf32>
    %19 = arith.mulf %16, %18 : vector<16x128xf32>
    %20 = arith.truncf %19 : vector<16x128xf32> to vector<16x128xbf16>
    %c0_12 = arith.constant 0 : index
    %c0_13 = arith.constant 0 : index
    %21 = vector.load %arg5[%c0_12, %c0_13] : memref<16x384xbf16, #tpu.memory_space<vmem>>, vector<16x128xbf16>
    tpu.vector_store %arg5[%c0_12, %c0_13], %20 {strides = array<i32>} : memref<16x384xbf16, #tpu.memory_space<vmem>>, vector<16x128xbf16>,
    %22 = vector.extract_strided_slice %10 {offsets = [0, 128], sizes = [16, 128], strides = [1, 1]} : vector<16x384xf32> to vector<16x128xf32>
    %23 = vector.extract_strided_slice %15 {offsets = [0, 1], sizes = [16, 1], strides = [1, 1]} : vector<16x128xf32> to vector<16x1xf32>
    %24 = vector.broadcast %23 : vector<16x1xf32> to vector<16x128xf32>
    %25 = arith.mulf %22, %24 : vector<16x128xf32>
    %26 = arith.truncf %25 : vector<16x128xf32> to vector<16x128xbf16>
    %c0_14 = arith.constant 0 : index
    %c128 = arith.constant 128 : index
    %27 = vector.load %arg5[%c0_14, %c128] : memref<16x384xbf16, #tpu.memory_space<vmem>>, vector<16x128xbf16>
    tpu.vector_store %arg5[%c0_14, %c128], %26 {strides = array<i32>} : memref<16x384xbf16, #tpu.memory_space<vmem>>, vector<16x128xbf16>,
    %28 = vector.extract_strided_slice %10 {offsets = [0, 256], sizes = [16, 128], strides = [1, 1]} : vector<16x384xf32> to vector<16x128xf32>
    %29 = vector.extract_strided_slice %15 {offsets = [0, 2], sizes = [16, 1], strides = [1, 1]} : vector<16x128xf32> to vector<16x1xf32>
    %30 = vector.broadcast %29 : vector<16x1xf32> to vector<16x128xf32>
    %31 = arith.mulf %28, %30 : vector<16x128xf32>
    %32 = arith.truncf %31 : vector<16x128xf32> to vector<16x128xbf16>
    %c0_15 = arith.constant 0 : index
    %c256 = arith.constant 256 : index
    %33 = vector.load %arg5[%c0_15, %c256] : memref<16x384xbf16, #tpu.memory_space<vmem>>, vector<16x128xbf16>
    tpu.vector_store %arg5[%c0_15, %c256], %32 {strides = array<i32>} : memref<16x384xbf16, #tpu.memory_space<vmem>>, vector<16x128xbf16>,
    return
  }
  func.func @transform_0(%arg0: i32) -> (i32, i32) {
    %c0_i32 = arith.constant 0 : i32
    %c0_i32_0 = arith.constant 0 : i32
    return %arg0, %c0_i32 : i32, i32
  }
  func.func @transform_1(%arg0: i32) -> (i32, i32) {
    %c0_i32 = arith.constant 0 : i32
    %c0_i32_0 = arith.constant 0 : i32
    %c0_i32_1 = arith.constant 0 : i32
    return %c0_i32, %c0_i32_0 : i32, i32
  }
  func.func @transform_2(%arg0: i32) -> (i32, i32) {
    %c0_i32 = arith.constant 0 : i32
    %c0_i32_0 = arith.constant 0 : i32
    %c0_i32_1 = arith.constant 0 : i32
    return %c0_i32, %c0_i32_0 : i32, i32
  }
  func.func @transform_3(%arg0: i32) -> (i32, i32) {
    %c0_i32 = arith.constant 0 : i32
    %c0_i32_0 = arith.constant 0 : i32
    %c0_i32_1 = arith.constant 0 : i32
    return %c0_i32, %c0_i32_0 : i32, i32
  }
  func.func @transform_4(%arg0: i32) -> (i32, i32) {
    %c0_i32 = arith.constant 0 : i32
    %c0_i32_0 = arith.constant 0 : i32
    return %arg0, %c0_i32 : i32, i32
  }
  func.func @transform_5(%arg0: i32) -> (i32, i32) {
    %c0_i32 = arith.constant 0 : i32
    %c0_i32_0 = arith.constant 0 : i32
    return %arg0, %c0_i32 : i32, i32
  }
}

module attributes {stable_mosaic.version = 11 : i64} {
  func.func @_conv_score_kernel(%arg0: i32, %arg1: memref<16x512xbf16, #tpu.memory_space<vmem>>, %arg2: memref<512x128xbf16, #tpu.memory_space<vmem>>, %arg3: memref<1x128xf32, #tpu.memory_space<vmem>>, %arg4: memref<128x128xbf16, #tpu.memory_space<vmem>>, %arg5: memref<16x128xbf16, #tpu.memory_space<vmem>>, %arg6: memref<16x128xf32, #tpu.memory_space<vmem>>) attributes {dimension_semantics = [#tpu.dimension_semantics<parallel>], iteration_bounds = array<i64: 2>, scalar_prefetch = 0 : i64, scratch_operands = 0 : i64, tpu.core_type = #tpu.core_type<tc>, window_params = [{transform_indices = @transform_0, window_bounds = array<i64: 16, 512>}, {pipeline_mode = #tpu.pipeline_mode<synchronous>, transform_indices = @transform_1, window_bounds = array<i64: 512, 128>}, {pipeline_mode = #tpu.pipeline_mode<synchronous>, transform_indices = @transform_2, window_bounds = array<i64: 1, 128>}, {pipeline_mode = #tpu.pipeline_mode<synchronous>, transform_indices = @transform_3, window_bounds = array<i64: 128, 128>}, {transform_indices = @transform_4, window_bounds = array<i64: 16, 128>}, {transform_indices = @transform_5, window_bounds = array<i64: 16, 128>}]} {
    %c0 = arith.constant 0 : index
    %c0_0 = arith.constant 0 : index
    %0 = vector.load %arg1[%c0, %c0_0] : memref<16x512xbf16, #tpu.memory_space<vmem>>, vector<16x512xbf16>
    %c0_1 = arith.constant 0 : index
    %c0_2 = arith.constant 0 : index
    %1 = vector.load %arg2[%c0_1, %c0_2] : memref<512x128xbf16, #tpu.memory_space<vmem>>, vector<512x128xbf16>
    %cst = arith.constant dense<0.000000e+00> : vector<16x128xf32>
    %2 = tpu.matmul %0, %1, %cst {dimension_numbers = #tpu.dot_dimension_numbers<[1], [0], [0], [1], [0, 0, 1, 1], [], []>} : vector<16x512xbf16>, vector<512x128xbf16>, vector<16x128xf32> -> vector<16x128xf32>
    %c0_3 = arith.constant 0 : index
    %c0_4 = arith.constant 0 : index
    %3 = vector.load %arg3[%c0_3, %c0_4] : memref<1x128xf32, #tpu.memory_space<vmem>>, vector<1x128xf32>
    %4 = vector.broadcast %3 : vector<1x128xf32> to vector<16x128xf32>
    %5 = arith.addf %2, %4 : vector<16x128xf32>
    %cst_5 = arith.constant 0.000000e+00 : f32
    %6 = vector.broadcast %cst_5 : f32 to vector<16x128xf32>
    %7 = arith.cmpf ogt, %5, %6 : vector<16x128xf32>
    %cst_6 = arith.constant 0.00999999977 : f32
    %8 = vector.broadcast %cst_6 : f32 to vector<16x128xf32>
    %9 = arith.mulf %8, %5 : vector<16x128xf32>
    %10 = arith.select %7, %5, %9 : vector<16x128xi1>, vector<16x128xf32>
    %11 = arith.truncf %10 : vector<16x128xf32> to vector<16x128xbf16>
    %c0_7 = arith.constant 0 : index
    %c0_8 = arith.constant 0 : index
    %12 = vector.load %arg4[%c0_7, %c0_8] : memref<128x128xbf16, #tpu.memory_space<vmem>>, vector<128x128xbf16>
    %cst_9 = arith.constant dense<0.000000e+00> : vector<16x128xf32>
    %13 = tpu.matmul %11, %12, %cst_9 {dimension_numbers = #tpu.dot_dimension_numbers<[1], [0], [0], [1], [0, 0, 1, 1], [], []>} : vector<16x128xbf16>, vector<128x128xbf16>, vector<16x128xf32> -> vector<16x128xf32>
    %c0_10 = arith.constant 0 : index
    %c0_11 = arith.constant 0 : index
    %14 = vector.load %arg6[%c0_10, %c0_11] : memref<16x128xf32, #tpu.memory_space<vmem>>, vector<16x128xf32>
    tpu.vector_store %arg6[%c0_10, %c0_11], %13 {strides = array<i32>} : memref<16x128xf32, #tpu.memory_space<vmem>>, vector<16x128xf32>,
    %15 = math.tanh %13 : vector<16x128xf32>
    %16 = vector.extract_strided_slice %15 {offsets = [0, 0], sizes = [16, 1], strides = [1, 1]} : vector<16x128xf32> to vector<16x1xf32>
    %17 = vector.broadcast %16 : vector<16x1xf32> to vector<16x128xf32>
    %18 = arith.mulf %10, %17 : vector<16x128xf32>
    %19 = arith.truncf %18 : vector<16x128xf32> to vector<16x128xbf16>
    %c0_12 = arith.constant 0 : index
    %c0_13 = arith.constant 0 : index
    %20 = vector.load %arg5[%c0_12, %c0_13] : memref<16x128xbf16, #tpu.memory_space<vmem>>, vector<16x128xbf16>
    tpu.vector_store %arg5[%c0_12, %c0_13], %19 {strides = array<i32>} : memref<16x128xbf16, #tpu.memory_space<vmem>>, vector<16x128xbf16>,
    return
  }
  func.func @transform_0(%arg0: i32) -> (i32, i32) {
    %c0_i32 = arith.constant 0 : i32
    %c0_i32_0 = arith.constant 0 : i32
    return %arg0, %c0_i32 : i32, i32
  }
  func.func @transform_1(%arg0: i32) -> (i32, i32) {
    %c0_i32 = arith.constant 0 : i32
    %c0_i32_0 = arith.constant 0 : i32
    %c0_i32_1 = arith.constant 0 : i32
    return %c0_i32, %c0_i32_0 : i32, i32
  }
  func.func @transform_2(%arg0: i32) -> (i32, i32) {
    %c0_i32 = arith.constant 0 : i32
    %c0_i32_0 = arith.constant 0 : i32
    %c0_i32_1 = arith.constant 0 : i32
    return %c0_i32, %c0_i32_0 : i32, i32
  }
  func.func @transform_3(%arg0: i32) -> (i32, i32) {
    %c0_i32 = arith.constant 0 : i32
    %c0_i32_0 = arith.constant 0 : i32
    %c0_i32_1 = arith.constant 0 : i32
    return %c0_i32, %c0_i32_0 : i32, i32
  }
  func.func @transform_4(%arg0: i32) -> (i32, i32) {
    %c0_i32 = arith.constant 0 : i32
    %c0_i32_0 = arith.constant 0 : i32
    return %arg0, %c0_i32 : i32, i32
  }
  func.func @transform_5(%arg0: i32) -> (i32, i32) {
    %c0_i32 = arith.constant 0 : i32
    %c0_i32_0 = arith.constant 0 : i32
    return %arg0, %c0_i32 : i32, i32
  }
}

module attributes {stable_mosaic.version = 11 : i64} {
  func.func @_maxmean_kernel(%arg0: i32, %arg1: memref<8x8x128xbf16, #tpu.memory_space<vmem>>, %arg2: memref<8x8x1xf32, #tpu.memory_space<vmem>>, %arg3: memref<8x256xf32, #tpu.memory_space<vmem>>) attributes {dimension_semantics = [#tpu.dimension_semantics<parallel>], iteration_bounds = array<i64: 1>, scalar_prefetch = 0 : i64, scratch_operands = 0 : i64, tpu.core_type = #tpu.core_type<tc>, window_params = [{transform_indices = @transform_0, window_bounds = array<i64: 8, 8, 128>}, {transform_indices = @transform_1, window_bounds = array<i64: 8, 8, 1>}, {transform_indices = @transform_2, window_bounds = array<i64: 8, 256>}]} {
    %c0 = arith.constant 0 : index
    %c0_0 = arith.constant 0 : index
    %c0_1 = arith.constant 0 : index
    %0 = vector.load %arg1[%c0, %c0_0, %c0_1] : memref<8x8x128xbf16, #tpu.memory_space<vmem>>, vector<8x8x128xbf16>
    %1 = arith.extf %0 : vector<8x8x128xbf16> to vector<8x8x128xf32>
    %c0_2 = arith.constant 0 : index
    %c0_3 = arith.constant 0 : index
    %c0_4 = arith.constant 0 : index
    %2 = vector.load %arg2[%c0_2, %c0_3, %c0_4] : memref<8x8x1xf32, #tpu.memory_space<vmem>>, vector<8x8x1xf32>
    %cst = arith.constant 0.000000e+00 : f32
    %3 = vector.broadcast %cst : f32 to vector<8x8x1xf32>
    %4 = arith.cmpf ogt, %2, %3 : vector<8x8x1xf32>
    %cst_5 = arith.constant -1.000000e+30 : f32
    %5 = vector.shape_cast %4 : vector<8x8x1xi1> to vector<8x8x1xi1>
    %6 = vector.broadcast %5 : vector<8x8x1xi1> to vector<8x8x128xi1>
    %7 = vector.broadcast %cst_5 : f32 to vector<8x8x128xf32>
    %8 = arith.select %6, %1, %7 : vector<8x8x128xi1>, vector<8x8x128xf32>
    %cst_6 = arith.constant dense<0xFF800000> : vector<8x128xf32>
    %9 = vector.multi_reduction <maximumf>, %8, %cst_6 [1] : vector<8x8x128xf32> to vector<8x128xf32>
    %cst_7 = arith.constant dense<0.000000e+00> : vector<8x1xf32>
    %10 = vector.multi_reduction <add>, %2, %cst_7 [1] : vector<8x8x1xf32> to vector<8x1xf32>
    %cst_8 = arith.constant 1.000000e+00 : f32
    %11 = vector.broadcast %cst_8 : f32 to vector<8x1xf32>
    %12 = arith.maximumf %10, %11 : vector<8x1xf32>
    %13 = vector.broadcast %2 : vector<8x8x1xf32> to vector<8x8x128xf32>
    %14 = arith.mulf %1, %13 : vector<8x8x128xf32>
    %cst_9 = arith.constant dense<0.000000e+00> : vector<8x128xf32>
    %15 = vector.multi_reduction <add>, %14, %cst_9 [1] : vector<8x8x128xf32> to vector<8x128xf32>
    %16 = vector.broadcast %12 : vector<8x1xf32> to vector<8x128xf32>
    %17 = arith.divf %15, %16 : vector<8x128xf32>
    %c0_10 = arith.constant 0 : index
    %c0_11 = arith.constant 0 : index
    %18 = vector.load %arg3[%c0_10, %c0_11] : memref<8x256xf32, #tpu.memory_space<vmem>>, vector<8x128xf32>
    tpu.vector_store %arg3[%c0_10, %c0_11], %9 {strides = array<i32>} : memref<8x256xf32, #tpu.memory_space<vmem>>, vector<8x128xf32>,
    %c0_12 = arith.constant 0 : index
    %c128 = arith.constant 128 : index
    %19 = vector.load %arg3[%c0_12, %c128] : memref<8x256xf32, #tpu.memory_space<vmem>>, vector<8x128xf32>
    tpu.vector_store %arg3[%c0_12, %c128], %17 {strides = array<i32>} : memref<8x256xf32, #tpu.memory_space<vmem>>, vector<8x128xf32>,
    return
  }
  func.func @transform_0(%arg0: i32) -> (i32, i32, i32) {
    %c0_i32 = arith.constant 0 : i32
    %c0_i32_0 = arith.constant 0 : i32
    %c0_i32_1 = arith.constant 0 : i32
    return %arg0, %c0_i32, %c0_i32_0 : i32, i32, i32
  }
  func.func @transform_1(%arg0: i32) -> (i32, i32, i32) {
    %c0_i32 = arith.constant 0 : i32
    %c0_i32_0 = arith.constant 0 : i32
    %c0_i32_1 = arith.constant 0 : i32
    return %arg0, %c0_i32, %c0_i32_0 : i32, i32, i32
  }
  func.func @transform_2(%arg0: i32) -> (i32, i32) {
    %c0_i32 = arith.constant 0 : i32
    %c0_i32_0 = arith.constant 0 : i32
    return %arg0, %c0_i32 : i32, i32
  }
}

module attributes {stable_mosaic.version = 11 : i64} {
  func.func @_set2set_kernel(%arg0: i32, %arg1: memref<8x8x128xbf16, #tpu.memory_space<vmem>>, %arg2: memref<8x8x1xf32, #tpu.memory_space<vmem>>, %arg3: memref<384x512xbf16, #tpu.memory_space<vmem>>, %arg4: memref<1x512xf32, #tpu.memory_space<vmem>>, %arg5: memref<8x256xf32, #tpu.memory_space<vmem>>) attributes {dimension_semantics = [#tpu.dimension_semantics<parallel>], iteration_bounds = array<i64: 1>, scalar_prefetch = 0 : i64, scratch_operands = 0 : i64, tpu.core_type = #tpu.core_type<tc>, window_params = [{transform_indices = @transform_0, window_bounds = array<i64: 8, 8, 128>}, {transform_indices = @transform_1, window_bounds = array<i64: 8, 8, 1>}, {pipeline_mode = #tpu.pipeline_mode<synchronous>, transform_indices = @transform_2, window_bounds = array<i64: 384, 512>}, {pipeline_mode = #tpu.pipeline_mode<synchronous>, transform_indices = @transform_3, window_bounds = array<i64: 1, 512>}, {transform_indices = @transform_4, window_bounds = array<i64: 8, 256>}]} {
    %c0 = arith.constant 0 : index
    %c0_0 = arith.constant 0 : index
    %c0_1 = arith.constant 0 : index
    %0 = vector.load %arg1[%c0, %c0_0, %c0_1] : memref<8x8x128xbf16, #tpu.memory_space<vmem>>, vector<8x8x128xbf16>
    %1 = arith.extf %0 : vector<8x8x128xbf16> to vector<8x8x128xf32>
    %c0_2 = arith.constant 0 : index
    %c0_3 = arith.constant 0 : index
    %c0_4 = arith.constant 0 : index
    %2 = vector.load %arg2[%c0_2, %c0_3, %c0_4] : memref<8x8x1xf32, #tpu.memory_space<vmem>>, vector<8x8x1xf32>
    %c0_5 = arith.constant 0 : index
    %c0_6 = arith.constant 0 : index
    %3 = vector.load %arg3[%c0_5, %c0_6] : memref<384x512xbf16, #tpu.memory_space<vmem>>, vector<384x512xbf16>
    %c0_7 = arith.constant 0 : index
    %c0_8 = arith.constant 0 : index
    %4 = vector.load %arg4[%c0_7, %c0_8] : memref<1x512xf32, #tpu.memory_space<vmem>>, vector<1x512xf32>
    %cst = arith.constant 0.000000e+00 : f32
    %5 = vector.broadcast %cst : f32 to vector<8x128xf32>
    %cst_9 = arith.constant 0.000000e+00 : f32
    %6 = vector.broadcast %cst_9 : f32 to vector<8x128xf32>
    %cst_10 = arith.constant 0.000000e+00 : f32
    %7 = vector.broadcast %cst_10 : f32 to vector<8x256xf32>
    %8 = tpu.concatenate %7, %5 in 1 : vector<8x256xf32>, vector<8x128xf32> -> vector<8x384xf32>
    %9 = arith.truncf %8 : vector<8x384xf32> to vector<8x384xbf16>
    %cst_11 = arith.constant dense<0.000000e+00> : vector<8x512xf32>
    %10 = tpu.matmul %9, %3, %cst_11 {dimension_numbers = #tpu.dot_dimension_numbers<[1], [0], [0], [1], [0, 0, 1, 1], [], []>} : vector<8x384xbf16>, vector<384x512xbf16>, vector<8x512xf32> -> vector<8x512xf32>
    %11 = vector.broadcast %4 : vector<1x512xf32> to vector<8x512xf32>
    %12 = arith.addf %10, %11 : vector<8x512xf32>
    %13 = vector.extract_strided_slice %12 {offsets = [0, 0], sizes = [8, 128], strides = [1, 1]} : vector<8x512xf32> to vector<8x128xf32>
    %14 = arith.negf %13 : vector<8x128xf32>
    %15 = math.exp %14 : vector<8x128xf32>
    %cst_12 = arith.constant 1.000000e+00 : f32
    %16 = vector.broadcast %cst_12 : f32 to vector<8x128xf32>
    %17 = arith.addf %16, %15 : vector<8x128xf32>
    %18 = arith.divf %16, %17 : vector<8x128xf32>
    %19 = vector.extract_strided_slice %12 {offsets = [0, 128], sizes = [8, 128], strides = [1, 1]} : vector<8x512xf32> to vector<8x128xf32>
    %20 = arith.negf %19 : vector<8x128xf32>
    %21 = math.exp %20 : vector<8x128xf32>
    %cst_13 = arith.constant 1.000000e+00 : f32
    %22 = vector.broadcast %cst_13 : f32 to vector<8x128xf32>
    %23 = arith.addf %22, %21 : vector<8x128xf32>
    %24 = arith.divf %22, %23 : vector<8x128xf32>
    %25 = vector.extract_strided_slice %12 {offsets = [0, 256], sizes = [8, 128], strides = [1, 1]} : vector<8x512xf32> to vector<8x128xf32>
    %26 = math.tanh %25 : vector<8x128xf32>
    %27 = vector.extract_strided_slice %12 {offsets = [0, 384], sizes = [8, 128], strides = [1, 1]} : vector<8x512xf32> to vector<8x128xf32>
    %28 = arith.negf %27 : vector<8x128xf32>
    %29 = math.exp %28 : vector<8x128xf32>
    %cst_14 = arith.constant 1.000000e+00 : f32
    %30 = vector.broadcast %cst_14 : f32 to vector<8x128xf32>
    %31 = arith.addf %30, %29 : vector<8x128xf32>
    %32 = arith.divf %30, %31 : vector<8x128xf32>
    %33 = arith.mulf %24, %6 : vector<8x128xf32>
    %34 = arith.mulf %18, %26 : vector<8x128xf32>
    %35 = arith.addf %33, %34 : vector<8x128xf32>
    %36 = math.tanh %35 : vector<8x128xf32>
    %37 = arith.mulf %32, %36 : vector<8x128xf32>
    %38 = vector.shape_cast %37 : vector<8x128xf32> to vector<8x1x128xf32>
    %39 = vector.broadcast %38 : vector<8x1x128xf32> to vector<8x8x128xf32>
    %40 = arith.mulf %1, %39 : vector<8x8x128xf32>
    %cst_15 = arith.constant dense<0.000000e+00> : vector<8x8xf32>
    %41 = vector.multi_reduction <add>, %40, %cst_15 [2] : vector<8x8x128xf32> to vector<8x8xf32>
    %42 = vector.shape_cast %41 : vector<8x8xf32> to vector<8x8x1xf32>
    %cst_16 = arith.constant 0.000000e+00 : f32
    %43 = vector.broadcast %cst_16 : f32 to vector<8x8x1xf32>
    %44 = arith.cmpf ogt, %2, %43 : vector<8x8x1xf32>
    %cst_17 = arith.constant -1.000000e+30 : f32
    %45 = vector.broadcast %cst_17 : f32 to vector<8x8x1xf32>
    %46 = arith.select %44, %42, %45 : vector<8x8x1xi1>, vector<8x8x1xf32>
    %cst_18 = arith.constant dense<0xFF800000> : vector<8x1xf32>
    %47 = vector.multi_reduction <maximumf>, %46, %cst_18 [1] : vector<8x8x1xf32> to vector<8x1xf32>
    %48 = vector.shape_cast %47 : vector<8x1xf32> to vector<8x1x1xf32>
    %49 = vector.broadcast %48 : vector<8x1x1xf32> to vector<8x8x1xf32>
    %50 = arith.subf %46, %49 : vector<8x8x1xf32>
    %51 = math.exp %50 : vector<8x8x1xf32>
    %52 = arith.mulf %51, %2 : vector<8x8x1xf32>
    %cst_19 = arith.constant dense<0.000000e+00> : vector<8x1xf32>
    %53 = vector.multi_reduction <add>, %52, %cst_19 [1] : vector<8x8x1xf32> to vector<8x1xf32>
    %54 = vector.shape_cast %53 : vector<8x1xf32> to vector<8x1x1xf32>
    %cst_20 = arith.constant 1.000000e-30 : f32
    %55 = vector.broadcast %cst_20 : f32 to vector<8x1x1xf32>
    %56 = arith.maximumf %54, %55 : vector<8x1x1xf32>
    %57 = tpu.reciprocal %56 {approx = true} : vector<8x1x1xf32> -> vector<8x1x1xf32>
    %58 = vector.broadcast %57 : vector<8x1x1xf32> to vector<8x8x1xf32>
    %59 = arith.mulf %52, %58 : vector<8x8x1xf32>
    %60 = vector.broadcast %59 : vector<8x8x1xf32> to vector<8x8x128xf32>
    %61 = arith.mulf %60, %1 : vector<8x8x128xf32>
    %cst_21 = arith.constant dense<0.000000e+00> : vector<8x128xf32>
    %62 = vector.multi_reduction <add>, %61, %cst_21 [1] : vector<8x8x128xf32> to vector<8x128xf32>
    %63 = tpu.concatenate %37, %62 in 1 : vector<8x128xf32>, vector<8x128xf32> -> vector<8x256xf32>
    %64 = tpu.concatenate %63, %37 in 1 : vector<8x256xf32>, vector<8x128xf32> -> vector<8x384xf32>
    %65 = arith.truncf %64 : vector<8x384xf32> to vector<8x384xbf16>
    %cst_22 = arith.constant dense<0.000000e+00> : vector<8x512xf32>
    %66 = tpu.matmul %65, %3, %cst_22 {dimension_numbers = #tpu.dot_dimension_numbers<[1], [0], [0], [1], [0, 0, 1, 1], [], []>} : vector<8x384xbf16>, vector<384x512xbf16>, vector<8x512xf32> -> vector<8x512xf32>
    %67 = vector.broadcast %4 : vector<1x512xf32> to vector<8x512xf32>
    %68 = arith.addf %66, %67 : vector<8x512xf32>
    %69 = vector.extract_strided_slice %68 {offsets = [0, 0], sizes = [8, 128], strides = [1, 1]} : vector<8x512xf32> to vector<8x128xf32>
    %70 = arith.negf %69 : vector<8x128xf32>
    %71 = math.exp %70 : vector<8x128xf32>
    %cst_23 = arith.constant 1.000000e+00 : f32
    %72 = vector.broadcast %cst_23 : f32 to vector<8x128xf32>
    %73 = arith.addf %72, %71 : vector<8x128xf32>
    %74 = arith.divf %72, %73 : vector<8x128xf32>
    %75 = vector.extract_strided_slice %68 {offsets = [0, 128], sizes = [8, 128], strides = [1, 1]} : vector<8x512xf32> to vector<8x128xf32>
    %76 = arith.negf %75 : vector<8x128xf32>
    %77 = math.exp %76 : vector<8x128xf32>
    %cst_24 = arith.constant 1.000000e+00 : f32
    %78 = vector.broadcast %cst_24 : f32 to vector<8x128xf32>
    %79 = arith.addf %78, %77 : vector<8x128xf32>
    %80 = arith.divf %78, %79 : vector<8x128xf32>
    %81 = vector.extract_strided_slice %68 {offsets = [0, 256], sizes = [8, 128], strides = [1, 1]} : vector<8x512xf32> to vector<8x128xf32>
    %82 = math.tanh %81 : vector<8x128xf32>
    %83 = vector.extract_strided_slice %68 {offsets = [0, 384], sizes = [8, 128], strides = [1, 1]} : vector<8x512xf32> to vector<8x128xf32>
    %84 = arith.negf %83 : vector<8x128xf32>
    %85 = math.exp %84 : vector<8x128xf32>
    %cst_25 = arith.constant 1.000000e+00 : f32
    %86 = vector.broadcast %cst_25 : f32 to vector<8x128xf32>
    %87 = arith.addf %86, %85 : vector<8x128xf32>
    %88 = arith.divf %86, %87 : vector<8x128xf32>
    %89 = arith.mulf %80, %35 : vector<8x128xf32>
    %90 = arith.mulf %74, %82 : vector<8x128xf32>
    %91 = arith.addf %89, %90 : vector<8x128xf32>
    %92 = math.tanh %91 : vector<8x128xf32>
    %93 = arith.mulf %88, %92 : vector<8x128xf32>
    %94 = vector.shape_cast %93 : vector<8x128xf32> to vector<8x1x128xf32>
    %95 = vector.broadcast %94 : vector<8x1x128xf32> to vector<8x8x128xf32>
    %96 = arith.mulf %1, %95 : vector<8x8x128xf32>
    %cst_26 = arith.constant dense<0.000000e+00> : vector<8x8xf32>
    %97 = vector.multi_reduction <add>, %96, %cst_26 [2] : vector<8x8x128xf32> to vector<8x8xf32>
    %98 = vector.shape_cast %97 : vector<8x8xf32> to vector<8x8x1xf32>
    %cst_27 = arith.constant 0.000000e+00 : f32
    %99 = vector.broadcast %cst_27 : f32 to vector<8x8x1xf32>
    %100 = arith.cmpf ogt, %2, %99 : vector<8x8x1xf32>
    %cst_28 = arith.constant -1.000000e+30 : f32
    %101 = vector.broadcast %cst_28 : f32 to vector<8x8x1xf32>
    %102 = arith.select %100, %98, %101 : vector<8x8x1xi1>, vector<8x8x1xf32>
    %cst_29 = arith.constant dense<0xFF800000> : vector<8x1xf32>
    %103 = vector.multi_reduction <maximumf>, %102, %cst_29 [1] : vector<8x8x1xf32> to vector<8x1xf32>
    %104 = vector.shape_cast %103 : vector<8x1xf32> to vector<8x1x1xf32>
    %105 = vector.broadcast %104 : vector<8x1x1xf32> to vector<8x8x1xf32>
    %106 = arith.subf %102, %105 : vector<8x8x1xf32>
    %107 = math.exp %106 : vector<8x8x1xf32>
    %108 = arith.mulf %107, %2 : vector<8x8x1xf32>
    %cst_30 = arith.constant dense<0.000000e+00> : vector<8x1xf32>
    %109 = vector.multi_reduction <add>, %108, %cst_30 [1] : vector<8x8x1xf32> to vector<8x1xf32>
    %110 = vector.shape_cast %109 : vector<8x1xf32> to vector<8x1x1xf32>
    %cst_31 = arith.constant 1.000000e-30 : f32
    %111 = vector.broadcast %cst_31 : f32 to vector<8x1x1xf32>
    %112 = arith.maximumf %110, %111 : vector<8x1x1xf32>
    %113 = tpu.reciprocal %112 {approx = true} : vector<8x1x1xf32> -> vector<8x1x1xf32>
    %114 = vector.broadcast %113 : vector<8x1x1xf32> to vector<8x8x1xf32>
    %115 = arith.mulf %108, %114 : vector<8x8x1xf32>
    %116 = vector.broadcast %115 : vector<8x8x1xf32> to vector<8x8x128xf32>
    %117 = arith.mulf %116, %1 : vector<8x8x128xf32>
    %cst_32 = arith.constant dense<0.000000e+00> : vector<8x128xf32>
    %118 = vector.multi_reduction <add>, %117, %cst_32 [1] : vector<8x8x128xf32> to vector<8x128xf32>
    %119 = tpu.concatenate %93, %118 in 1 : vector<8x128xf32>, vector<8x128xf32> -> vector<8x256xf32>
    %120 = tpu.concatenate %119, %93 in 1 : vector<8x256xf32>, vector<8x128xf32> -> vector<8x384xf32>
    %121 = arith.truncf %120 : vector<8x384xf32> to vector<8x384xbf16>
    %cst_33 = arith.constant dense<0.000000e+00> : vector<8x512xf32>
    %122 = tpu.matmul %121, %3, %cst_33 {dimension_numbers = #tpu.dot_dimension_numbers<[1], [0], [0], [1], [0, 0, 1, 1], [], []>} : vector<8x384xbf16>, vector<384x512xbf16>, vector<8x512xf32> -> vector<8x512xf32>
    %123 = vector.broadcast %4 : vector<1x512xf32> to vector<8x512xf32>
    %124 = arith.addf %122, %123 : vector<8x512xf32>
    %125 = vector.extract_strided_slice %124 {offsets = [0, 0], sizes = [8, 128], strides = [1, 1]} : vector<8x512xf32> to vector<8x128xf32>
    %126 = arith.negf %125 : vector<8x128xf32>
    %127 = math.exp %126 : vector<8x128xf32>
    %cst_34 = arith.constant 1.000000e+00 : f32
    %128 = vector.broadcast %cst_34 : f32 to vector<8x128xf32>
    %129 = arith.addf %128, %127 : vector<8x128xf32>
    %130 = arith.divf %128, %129 : vector<8x128xf32>
    %131 = vector.extract_strided_slice %124 {offsets = [0, 128], sizes = [8, 128], strides = [1, 1]} : vector<8x512xf32> to vector<8x128xf32>
    %132 = arith.negf %131 : vector<8x128xf32>
    %133 = math.exp %132 : vector<8x128xf32>
    %cst_35 = arith.constant 1.000000e+00 : f32
    %134 = vector.broadcast %cst_35 : f32 to vector<8x128xf32>
    %135 = arith.addf %134, %133 : vector<8x128xf32>
    %136 = arith.divf %134, %135 : vector<8x128xf32>
    %137 = vector.extract_strided_slice %124 {offsets = [0, 256], sizes = [8, 128], strides = [1, 1]} : vector<8x512xf32> to vector<8x128xf32>
    %138 = math.tanh %137 : vector<8x128xf32>
    %139 = vector.extract_strided_slice %124 {offsets = [0, 384], sizes = [8, 128], strides = [1, 1]} : vector<8x512xf32> to vector<8x128xf32>
    %140 = arith.negf %139 : vector<8x128xf32>
    %141 = math.exp %140 : vector<8x128xf32>
    %cst_36 = arith.constant 1.000000e+00 : f32
    %142 = vector.broadcast %cst_36 : f32 to vector<8x128xf32>
    %143 = arith.addf %142, %141 : vector<8x128xf32>
    %144 = arith.divf %142, %143 : vector<8x128xf32>
    %145 = arith.mulf %136, %91 : vector<8x128xf32>
    %146 = arith.mulf %130, %138 : vector<8x128xf32>
    %147 = arith.addf %145, %146 : vector<8x128xf32>
    %148 = math.tanh %147 : vector<8x128xf32>
    %149 = arith.mulf %144, %148 : vector<8x128xf32>
    %150 = vector.shape_cast %149 : vector<8x128xf32> to vector<8x1x128xf32>
    %151 = vector.broadcast %150 : vector<8x1x128xf32> to vector<8x8x128xf32>
    %152 = arith.mulf %1, %151 : vector<8x8x128xf32>
    %cst_37 = arith.constant dense<0.000000e+00> : vector<8x8xf32>
    %153 = vector.multi_reduction <add>, %152, %cst_37 [2] : vector<8x8x128xf32> to vector<8x8xf32>
    %154 = vector.shape_cast %153 : vector<8x8xf32> to vector<8x8x1xf32>
    %cst_38 = arith.constant 0.000000e+00 : f32
    %155 = vector.broadcast %cst_38 : f32 to vector<8x8x1xf32>
    %156 = arith.cmpf ogt, %2, %155 : vector<8x8x1xf32>
    %cst_39 = arith.constant -1.000000e+30 : f32
    %157 = vector.broadcast %cst_39 : f32 to vector<8x8x1xf32>
    %158 = arith.select %156, %154, %157 : vector<8x8x1xi1>, vector<8x8x1xf32>
    %cst_40 = arith.constant dense<0xFF800000> : vector<8x1xf32>
    %159 = vector.multi_reduction <maximumf>, %158, %cst_40 [1] : vector<8x8x1xf32> to vector<8x1xf32>
    %160 = vector.shape_cast %159 : vector<8x1xf32> to vector<8x1x1xf32>
    %161 = vector.broadcast %160 : vector<8x1x1xf32> to vector<8x8x1xf32>
    %162 = arith.subf %158, %161 : vector<8x8x1xf32>
    %163 = math.exp %162 : vector<8x8x1xf32>
    %164 = arith.mulf %163, %2 : vector<8x8x1xf32>
    %cst_41 = arith.constant dense<0.000000e+00> : vector<8x1xf32>
    %165 = vector.multi_reduction <add>, %164, %cst_41 [1] : vector<8x8x1xf32> to vector<8x1xf32>
    %166 = vector.shape_cast %165 : vector<8x1xf32> to vector<8x1x1xf32>
    %cst_42 = arith.constant 1.000000e-30 : f32
    %167 = vector.broadcast %cst_42 : f32 to vector<8x1x1xf32>
    %168 = arith.maximumf %166, %167 : vector<8x1x1xf32>
    %169 = tpu.reciprocal %168 {approx = true} : vector<8x1x1xf32> -> vector<8x1x1xf32>
    %170 = vector.broadcast %169 : vector<8x1x1xf32> to vector<8x8x1xf32>
    %171 = arith.mulf %164, %170 : vector<8x8x1xf32>
    %172 = vector.broadcast %171 : vector<8x8x1xf32> to vector<8x8x128xf32>
    %173 = arith.mulf %172, %1 : vector<8x8x128xf32>
    %cst_43 = arith.constant dense<0.000000e+00> : vector<8x128xf32>
    %174 = vector.multi_reduction <add>, %173, %cst_43 [1] : vector<8x8x128xf32> to vector<8x128xf32>
    %175 = tpu.concatenate %149, %174 in 1 : vector<8x128xf32>, vector<8x128xf32> -> vector<8x256xf32>
    %c0_44 = arith.constant 0 : index
    %c0_45 = arith.constant 0 : index
    %176 = vector.load %arg5[%c0_44, %c0_45] : memref<8x256xf32, #tpu.memory_space<vmem>>, vector<8x256xf32>
    tpu.vector_store %arg5[%c0_44, %c0_45], %175 {strides = array<i32>} : memref<8x256xf32, #tpu.memory_space<vmem>>, vector<8x256xf32>,
    return
  }
  func.func @transform_0(%arg0: i32) -> (i32, i32, i32) {
    %c0_i32 = arith.constant 0 : i32
    %c0_i32_0 = arith.constant 0 : i32
    %c0_i32_1 = arith.constant 0 : i32
    return %arg0, %c0_i32, %c0_i32_0 : i32, i32, i32
  }
  func.func @transform_1(%arg0: i32) -> (i32, i32, i32) {
    %c0_i32 = arith.constant 0 : i32
    %c0_i32_0 = arith.constant 0 : i32
    %c0_i32_1 = arith.constant 0 : i32
    return %arg0, %c0_i32, %c0_i32_0 : i32, i32, i32
  }
  func.func @transform_2(%arg0: i32) -> (i32, i32) {
    %c0_i32 = arith.constant 0 : i32
    %c0_i32_0 = arith.constant 0 : i32
    %c0_i32_1 = arith.constant 0 : i32
    return %c0_i32, %c0_i32_0 : i32, i32
  }
  func.func @transform_3(%arg0: i32) -> (i32, i32) {
    %c0_i32 = arith.constant 0 : i32
    %c0_i32_0 = arith.constant 0 : i32
    %c0_i32_1 = arith.constant 0 : i32
    return %c0_i32, %c0_i32_0 : i32, i32
  }
  func.func @transform_4(%arg0: i32) -> (i32, i32) {
    %c0_i32 = arith.constant 0 : i32
    %c0_i32_0 = arith.constant 0 : i32
    return %arg0, %c0_i32 : i32, i32
  }
}

module attributes {stable_mosaic.version = 11 : i64} {
  func.func @_head_kernel(%arg0: i32, %arg1: memref<8x640xf32, #tpu.memory_space<vmem>>, %arg2: memref<640x128xbf16, #tpu.memory_space<vmem>>, %arg3: memref<1x128xf32, #tpu.memory_space<vmem>>, %arg4: memref<128x64xbf16, #tpu.memory_space<vmem>>, %arg5: memref<1x64xf32, #tpu.memory_space<vmem>>, %arg6: memref<64x128xbf16, #tpu.memory_space<vmem>>, %arg7: memref<1x128xf32, #tpu.memory_space<vmem>>, %arg8: memref<8x128xf32, #tpu.memory_space<vmem>>) attributes {dimension_semantics = [#tpu.dimension_semantics<parallel>], iteration_bounds = array<i64: 1>, scalar_prefetch = 0 : i64, scratch_operands = 0 : i64, tpu.core_type = #tpu.core_type<tc>, window_params = [{transform_indices = @transform_0, window_bounds = array<i64: 8, 640>}, {pipeline_mode = #tpu.pipeline_mode<synchronous>, transform_indices = @transform_1, window_bounds = array<i64: 640, 128>}, {pipeline_mode = #tpu.pipeline_mode<synchronous>, transform_indices = @transform_2, window_bounds = array<i64: 1, 128>}, {pipeline_mode = #tpu.pipeline_mode<synchronous>, transform_indices = @transform_3, window_bounds = array<i64: 128, 64>}, {pipeline_mode = #tpu.pipeline_mode<synchronous>, transform_indices = @transform_4, window_bounds = array<i64: 1, 64>}, {pipeline_mode = #tpu.pipeline_mode<synchronous>, transform_indices = @transform_5, window_bounds = array<i64: 64, 128>}, {pipeline_mode = #tpu.pipeline_mode<synchronous>, transform_indices = @transform_6, window_bounds = array<i64: 1, 128>}, {transform_indices = @transform_7, window_bounds = array<i64: 8, 128>}]} {
    %c0 = arith.constant 0 : index
    %c0_0 = arith.constant 0 : index
    %0 = vector.load %arg1[%c0, %c0_0] : memref<8x640xf32, #tpu.memory_space<vmem>>, vector<8x640xf32>
    %1 = arith.truncf %0 : vector<8x640xf32> to vector<8x640xbf16>
    %c0_1 = arith.constant 0 : index
    %c0_2 = arith.constant 0 : index
    %2 = vector.load %arg2[%c0_1, %c0_2] : memref<640x128xbf16, #tpu.memory_space<vmem>>, vector<640x128xbf16>
    %cst = arith.constant dense<0.000000e+00> : vector<8x128xf32>
    %3 = tpu.matmul %1, %2, %cst {dimension_numbers = #tpu.dot_dimension_numbers<[1], [0], [0], [1], [0, 0, 1, 1], [], []>} : vector<8x640xbf16>, vector<640x128xbf16>, vector<8x128xf32> -> vector<8x128xf32>
    %c0_3 = arith.constant 0 : index
    %c0_4 = arith.constant 0 : index
    %4 = vector.load %arg3[%c0_3, %c0_4] : memref<1x128xf32, #tpu.memory_space<vmem>>, vector<1x128xf32>
    %5 = vector.broadcast %4 : vector<1x128xf32> to vector<8x128xf32>
    %6 = arith.addf %3, %5 : vector<8x128xf32>
    %cst_5 = arith.constant 0.000000e+00 : f32
    %7 = vector.broadcast %cst_5 : f32 to vector<8x128xf32>
    %8 = arith.cmpf ogt, %6, %7 : vector<8x128xf32>
    %cst_6 = arith.constant 0.00999999977 : f32
    %9 = vector.broadcast %cst_6 : f32 to vector<8x128xf32>
    %10 = arith.mulf %9, %6 : vector<8x128xf32>
    %11 = arith.select %8, %6, %10 : vector<8x128xi1>, vector<8x128xf32>
    %12 = arith.truncf %11 : vector<8x128xf32> to vector<8x128xbf16>
    %c0_7 = arith.constant 0 : index
    %c0_8 = arith.constant 0 : index
    %13 = vector.load %arg4[%c0_7, %c0_8] : memref<128x64xbf16, #tpu.memory_space<vmem>>, vector<128x64xbf16>
    %cst_9 = arith.constant dense<0.000000e+00> : vector<8x64xf32>
    %14 = tpu.matmul %12, %13, %cst_9 {dimension_numbers = #tpu.dot_dimension_numbers<[1], [0], [0], [1], [0, 0, 1, 1], [], []>} : vector<8x128xbf16>, vector<128x64xbf16>, vector<8x64xf32> -> vector<8x64xf32>
    %c0_10 = arith.constant 0 : index
    %c0_11 = arith.constant 0 : index
    %15 = vector.load %arg5[%c0_10, %c0_11] : memref<1x64xf32, #tpu.memory_space<vmem>>, vector<1x64xf32>
    %16 = vector.broadcast %15 : vector<1x64xf32> to vector<8x64xf32>
    %17 = arith.addf %14, %16 : vector<8x64xf32>
    %cst_12 = arith.constant 0.000000e+00 : f32
    %18 = vector.broadcast %cst_12 : f32 to vector<8x64xf32>
    %19 = arith.cmpf ogt, %17, %18 : vector<8x64xf32>
    %cst_13 = arith.constant 0.00999999977 : f32
    %20 = vector.broadcast %cst_13 : f32 to vector<8x64xf32>
    %21 = arith.mulf %20, %17 : vector<8x64xf32>
    %22 = arith.select %19, %17, %21 : vector<8x64xi1>, vector<8x64xf32>
    %23 = arith.truncf %22 : vector<8x64xf32> to vector<8x64xbf16>
    %c0_14 = arith.constant 0 : index
    %c0_15 = arith.constant 0 : index
    %24 = vector.load %arg6[%c0_14, %c0_15] : memref<64x128xbf16, #tpu.memory_space<vmem>>, vector<64x128xbf16>
    %cst_16 = arith.constant dense<0.000000e+00> : vector<8x128xf32>
    %25 = tpu.matmul %23, %24, %cst_16 {dimension_numbers = #tpu.dot_dimension_numbers<[1], [0], [0], [1], [0, 0, 1, 1], [], []>} : vector<8x64xbf16>, vector<64x128xbf16>, vector<8x128xf32> -> vector<8x128xf32>
    %c0_17 = arith.constant 0 : index
    %c0_18 = arith.constant 0 : index
    %26 = vector.load %arg7[%c0_17, %c0_18] : memref<1x128xf32, #tpu.memory_space<vmem>>, vector<1x128xf32>
    %27 = vector.broadcast %26 : vector<1x128xf32> to vector<8x128xf32>
    %28 = arith.addf %25, %27 : vector<8x128xf32>
    %cst_19 = arith.constant dense<0xFF800000> : vector<8xf32>
    %29 = vector.multi_reduction <maximumf>, %28, %cst_19 [1] : vector<8x128xf32> to vector<8xf32>
    %30 = vector.shape_cast %29 : vector<8xf32> to vector<8x1xf32>
    %31 = vector.broadcast %30 : vector<8x1xf32> to vector<8x128xf32>
    %32 = arith.subf %28, %31 : vector<8x128xf32>
    %33 = math.exp %32 : vector<8x128xf32>
    %cst_20 = arith.constant dense<0.000000e+00> : vector<8xf32>
    %34 = vector.multi_reduction <add>, %33, %cst_20 [1] : vector<8x128xf32> to vector<8xf32>
    %35 = vector.shape_cast %34 : vector<8xf32> to vector<8x1xf32>
    %36 = math.log %35 : vector<8x1xf32>
    %37 = vector.broadcast %36 : vector<8x1xf32> to vector<8x128xf32>
    %38 = arith.subf %32, %37 : vector<8x128xf32>
    %c0_21 = arith.constant 0 : index
    %c0_22 = arith.constant 0 : index
    %39 = vector.load %arg8[%c0_21, %c0_22] : memref<8x128xf32, #tpu.memory_space<vmem>>, vector<8x128xf32>
    tpu.vector_store %arg8[%c0_21, %c0_22], %38 {strides = array<i32>} : memref<8x128xf32, #tpu.memory_space<vmem>>, vector<8x128xf32>,
    return
  }
  func.func @transform_0(%arg0: i32) -> (i32, i32) {
    %c0_i32 = arith.constant 0 : i32
    %c0_i32_0 = arith.constant 0 : i32
    return %arg0, %c0_i32 : i32, i32
  }
  func.func @transform_1(%arg0: i32) -> (i32, i32) {
    %c0_i32 = arith.constant 0 : i32
    %c0_i32_0 = arith.constant 0 : i32
    %c0_i32_1 = arith.constant 0 : i32
    return %c0_i32, %c0_i32_0 : i32, i32
  }
  func.func @transform_2(%arg0: i32) -> (i32, i32) {
    %c0_i32 = arith.constant 0 : i32
    %c0_i32_0 = arith.constant 0 : i32
    %c0_i32_1 = arith.constant 0 : i32
    return %c0_i32, %c0_i32_0 : i32, i32
  }
  func.func @transform_3(%arg0: i32) -> (i32, i32) {
    %c0_i32 = arith.constant 0 : i32
    %c0_i32_0 = arith.constant 0 : i32
    %c0_i32_1 = arith.constant 0 : i32
    return %c0_i32, %c0_i32_0 : i32, i32
  }
  func.func @transform_4(%arg0: i32) -> (i32, i32) {
    %c0_i32 = arith.constant 0 : i32
    %c0_i32_0 = arith.constant 0 : i32
    %c0_i32_1 = arith.constant 0 : i32
    return %c0_i32, %c0_i32_0 : i32, i32
  }
  func.func @transform_5(%arg0: i32) -> (i32, i32) {
    %c0_i32 = arith.constant 0 : i32
    %c0_i32_0 = arith.constant 0 : i32
    %c0_i32_1 = arith.constant 0 : i32
    return %c0_i32, %c0_i32_0 : i32, i32
  }
  func.func @transform_6(%arg0: i32) -> (i32, i32) {
    %c0_i32 = arith.constant 0 : i32
    %c0_i32_0 = arith.constant 0 : i32
    %c0_i32_1 = arith.constant 0 : i32
    return %c0_i32, %c0_i32_0 : i32, i32
  }
  func.func @transform_7(%arg0: i32) -> (i32, i32) {
    %c0_i32 = arith.constant 0 : i32
    %c0_i32_0 = arith.constant 0 : i32
    return %arg0, %c0_i32 : i32, i32
  }
}

</mosaic_0001>

<bundles_post_ra>
// kernel: mul.14
= control target key start
LH: loop header
LB: loop body
LE: loop exit
PB: predicated region body
PF: predicated region fallthrough
CT: control target
= control target key end

     0   :  { %s34_s0 = inlined_call_operand.vmem [shape: f32[48], index: 0, kind: input, shape index: {}]   ;;  %s35_s1 = inlined_call_operand.vmem [shape: f32[48], index: 1, kind: input, shape index: {}]   ;;  %s36_s2 = inlined_call_operand.vmem [shape: f32[48], index: 2, kind: output, shape index: {}]  }
   0x1   :  { %v3_v0 = vld [vmem:[%s34_s0] sm:$0x1] }
   0x2   :  { %v4_v1 = vld [vmem:[%s35_s1] sm:$0x1] }
   0x3   :  { %v7_v2 = vmul.f32 %v4_v1, %v3_v0 }
   0x5   :  { %9 = vst [vmem:[%s36_s2] sm:$0x1] %v7_v2 }

// kernel: model_forward.14
= control target key start
LH: loop header
LB: loop body
LE: loop exit
PB: predicated region body
PF: predicated region fallthrough
CT: control target
= control target key end

     0   :  { %s1515_s18 = smov 0   ;;  %s1934_s0 = inlined_call_operand.vmem [shape: bf16[32,256], index: 0, kind: input, shape index: {}]   ;;  %s1935_s1 = inlined_call_operand.vmem [shape: bf16[256,384], index: 1, kind: input, shape index: {}]   ;;  %s1936_s2 = inlined_call_operand.vmem [shape: f32[1,384], index: 2, kind: input, shape index: {}]   ;;  %s1937_s3 = inlined_call_operand.vmem [shape: bf16[384,128], index: 3, kind: input, shape index: {}]   ;;  %s1938_s4 = inlined_call_operand.vmem [shape: bf16[32,384], index: 4, kind: output, shape index: {0}]   ;;  %s1939_s5 = inlined_call_operand.vmem [shape: f32[32,128], index: 5, kind: output, shape index: {1}]  }
   0x1 LB: > { %s1066_s19 = sadd.s32 4294967295, %s1480_s18   ;;  %p1070_p0 = scmp.ge.s32.totalorder %s1480_s18, 1  ;;  %s1480_s18 = sphi %s1515_s18, %s16_s18  }
   0x2   : > { %p192_p1 = scmp.lt.s32.totalorder %s1480_s18, 3 }
   0x4   : > { %p193_p2 = pnand %p1070_p0, %p192_p1 }
   0x5   : > { %s1071_s15 = sshll.u32 (!%p193_p2), %s1066_s19, 1 }
   0x6   : > { %196 = sbr.rel (%p193_p2) target bundleno = 485 (0x1e5), region = 36  ;;  %p228_p3 = scmp.lt.s32.totalorder (!%p193_p2), %s1071_s15, 3 }
   0xb   : > { %v1172_v0 = vld [vmem:[%s1935_s1 + $0xa8] sm:$0xf]  ;;  %v1401_v1 = vld [vmem:[%s1935_s1 + $0xb0] sm:$0xf0]  ;;  %v1400_v5 = vld [vmem:[%s1935_s1 + $0xac] sm:$0xf] }
   0xc   : > { %v1268_v2 = vld [vmem:[%s1935_s1 + $0x168] sm:$0xf]  ;;  %v1173_v3 = vor.u32 %v1401_v1, %v1172_v0  ;;  %v1425_v4 = vld [vmem:[%s1935_s1 + $0x170] sm:$0xf0]  ;;  %v1174_v6 = vld [vmem:[%s1935_s1 + $0xb4] sm:$0xf0] }
   0xd   : > { %v1269_v7 = vor.u32 %v1425_v4, %v1268_v2  ;;  %v1177_v8 = vor.u32 %v1400_v5, %v1174_v6  ;;  %v1424_v9 = vld [vmem:[%s1935_s1 + $0x16c] sm:$0xf]  ;;  %v1270_v10 = vld [vmem:[%s1935_s1 + $0x174] sm:$0xf0]  ;;  %v1160_v11 = vld [vmem:[%s1935_s1 + $0x90] sm:$0xf] }
   0xe   : > { %587 = vmatpush.bf16.msra.mxu0 %v1173_v3  ;;  %v1273_v12 = vor.u32 %v1424_v9, %v1270_v10  ;;  %v1398_v13 = vld [vmem:[%s1935_s1 + $0x98] sm:$0xf0]  ;;  %v1256_v14 = vld [vmem:[%s1935_s1 + $0x150] sm:$0xf]  ;;  %v1397_v18 = vld [vmem:[%s1935_s1 + $0x94] sm:$0xf] }
   0xf   : > { %v1422_v15 = vld [vmem:[%s1935_s1 + $0x158] sm:$0xf0]  ;;  %601 = vmatpush.bf16.msra.mxu1 %v1269_v7  ;;  %615 = vmatpush.bf16.msra.mxu2 %v1177_v8  ;;  %v1161_v16 = vor.u32 %v1398_v13, %v1160_v11  ;;  %v1162_v19 = vld [vmem:[%s1935_s1 + $0x9c] sm:$0xf0]  ;;  %v1421_v20 = vld [vmem:[%s1935_s1 + $0x154] sm:$0xf] }
  0x10   : > { %v1257_v17 = vor.u32 %v1422_v15, %v1256_v14  ;;  %629 = vmatpush.bf16.msra.mxu3 %v1273_v12  ;;  %v1165_v21 = vor.u32 %v1397_v18, %v1162_v19  ;;  %v1258_v22 = vld [vmem:[%s1935_s1 + $0x15c] sm:$0xf0]  ;;  %v1148_v23 = vld [vmem:[%s1935_s1 + $0x78] sm:$0xf]  ;;  %v1395_v24 = vld [vmem:[%s1935_s1 + $0x80] sm:$0xf0] }
  0x11   : > { %v1261_v25 = vor.u32 %v1421_v20, %v1258_v22  ;;  %v1244_v26 = vld [vmem:[%s1935_s1 + $0x138] sm:$0xf]  ;;  %v1419_v27 = vld [vmem:[%s1935_s1 + $0x140] sm:$0xf0]  ;;  %v1394_v28 = vld [vmem:[%s1935_s1 + $0x7c] sm:$0xf]  ;;  %v1149_v29 = vor.u32 %v1395_v24, %v1148_v23 }
  0x12   : > { %588 = vmatpush.bf16.msra.mxu0 %v1161_v16  ;;  %v1150_v30 = vld [vmem:[%s1935_s1 + $0x84] sm:$0xf0]  ;;  %v1418_v31 = vld [vmem:[%s1935_s1 + $0x13c] sm:$0xf]  ;;  %v1245_v33 = vor.u32 %v1419_v27, %v1244_v26  ;;  %v1136_v35 = vld [vmem:[%s1935_s1 + $0x60] sm:$0xf] }
  0x13   : > { %v1246_v32 = vld [vmem:[%s1935_s1 + $0x144] sm:$0xf0]  ;;  %602 = vmatpush.bf16.msra.mxu1 %v1257_v17  ;;  %616 = vmatpush.bf16.msra.mxu2 %v1165_v21  ;;  %v1153_v34 = vor.u32 %v1394_v28, %v1150_v30  ;;  %v1392_v36 = vld [vmem:[%s1935_s1 + $0x68] sm:$0xf0]  ;;  %v1232_v37 = vld [vmem:[%s1935_s1 + $0x120] sm:$0xf] }
  0x14   : > { %630 = vmatpush.bf16.msra.mxu3 %v1261_v25  ;;  %v1249_v38 = vor.u32 %v1418_v31, %v1246_v32  ;;  %v1416_v39 = vld [vmem:[%s1935_s1 + $0x128] sm:$0xf0]  ;;  %v1391_v40 = vld [vmem:[%s1935_s1 + $0x64] sm:$0xf]  ;;  %v1138_v41 = vld [vmem:[%s1935_s1 + $0x6c] sm:$0xf0]  ;;  %v1137_v44 = vor.u32 %v1392_v36, %v1136_v35 }
  0x15   : > { %v1415_v42 = vld [vmem:[%s1935_s1 + $0x124] sm:$0xf]  ;;  %v1234_v43 = vld [vmem:[%s1935_s1 + $0x12c] sm:$0xf0]  ;;  %v1233_v45 = vor.u32 %v1416_v39, %v1232_v37  ;;  %v1141_v46 = vor.u32 %v1391_v40, %v1138_v41  ;;  %v1124_v47 = vld [vmem:[%s1935_s1 + $0x48] sm:$0xf] }
  0x16   : > { %589 = vmatpush.bf16.msra.mxu0 %v1149_v29  ;;  %v1389_v48 = vld [vmem:[%s1935_s1 + $0x50] sm:$0xf0]  ;;  %v1220_v49 = vld [vmem:[%s1935_s1 + $0x108] sm:$0xf]  ;;  %v1237_v50 = vor.u32 %v1415_v42, %v1234_v43  ;;  %v1388_v52 = vld [vmem:[%s1935_s1 + $0x4c] sm:$0xf] }
  0x17   : > { %603 = vmatpush.bf16.msra.mxu1 %v1245_v33  ;;  %617 = vmatpush.bf16.msra.mxu2 %v1153_v34  ;;  %v1413_v51 = vld [vmem:[%s1935_s1 + $0x110] sm:$0xf0]  ;;  %v1126_v53 = vld [vmem:[%s1935_s1 + $0x54] sm:$0xf0]  ;;  %v1412_v54 = vld [vmem:[%s1935_s1 + $0x10c] sm:$0xf]  ;;  %v1125_v56 = vor.u32 %v1389_v48, %v1124_v47 }
  0x18   : > { %631 = vmatpush.bf16.msra.mxu3 %v1249_v38  ;;  %v1222_v55 = vld [vmem:[%s1935_s1 + $0x114] sm:$0xf0]  ;;  %v1221_v57 = vor.u32 %v1413_v51, %v1220_v49  ;;  %v1129_v58 = vor.u32 %v1388_v52, %v1126_v53  ;;  %v1112_v59 = vld [vmem:[%s1935_s1 + $0x30] sm:$0xf]  ;;  %v1386_v60 = vld [vmem:[%s1935_s1 + $0x38] sm:$0xf0] }
  0x19   : > { %v1208_v61 = vld [vmem:[%s1935_s1 + $0xf0] sm:$0xf]  ;;  %v1225_v62 = vor.u32 %v1412_v54, %v1222_v55  ;;  %v1410_v63 = vld [vmem:[%s1935_s1 + $0xf8] sm:$0xf0]  ;;  %v1385_v0 = vld [vmem:[%s1935_s1 + $0x34] sm:$0xf]  ;;  %v1113_v4 = vor.u32 %v1386_v60, %v1112_v59 }
  0x1a   : > { %590 = vmatpush.bf16.msra.mxu0 %v1137_v44  ;;  %v1114_v1 = vld [vmem:[%s1935_s1 + $0x3c] sm:$0xf0]  ;;  %v1409_v2 = vld [vmem:[%s1935_s1 + $0xf4] sm:$0xf]  ;;  %v1209_v5 = vor.u32 %v1410_v63, %v1208_v61  ;;  %v1100_v7 = vld [vmem:[%s1935_s1 + $0x18] sm:$0xf] }
  0x1b   : > { %604 = vmatpush.bf16.msra.mxu1 %v1233_v45  ;;  %618 = vmatpush.bf16.msra.mxu2 %v1141_v46  ;;  %v1210_v3 = vld [vmem:[%s1935_s1 + $0xfc] sm:$0xf0]  ;;  %v1117_v6 = vor.u32 %v1385_v0, %v1114_v1  ;;  %v1383_v8 = vld [vmem:[%s1935_s1 + $0x20] sm:$0xf0]  ;;  %v1196_v9 = vld [vmem:[%s1935_s1 + $0xd8] sm:$0xf] }
  0x1c   : > { %632 = vmatpush.bf16.msra.mxu3 %v1237_v50  ;;  %v1213_v10 = vor.u32 %v1409_v2, %v1210_v3  ;;  %v1407_v11 = vld [vmem:[%s1935_s1 + $0xe0] sm:$0xf0]  ;;  %v1382_v12 = vld [vmem:[%s1935_s1 + $0x1c] sm:$0xf]  ;;  %v1102_v13 = vld [vmem:[%s1935_s1 + $0x24] sm:$0xf0]  ;;  %v1101_v16 = vor.u32 %v1383_v8, %v1100_v7 }
  0x1d   : > { %v1406_v14 = vld [vmem:[%s1935_s1 + $0xdc] sm:$0xf]  ;;  %v1198_v15 = vld [vmem:[%s1935_s1 + $0xe4] sm:$0xf0]  ;;  %v1088_v17 = vld [vmem:[%s1935_s1] sm:$0xf]  ;;  %v1197_v19 = vor.u32 %v1407_v11, %v1196_v9  ;;  %v1105_v20 = vor.u32 %v1382_v12, %v1102_v13 }
  0x1e   : > { %591 = vmatpush.bf16.msra.mxu0 %v1125_v56  ;;  %v1380_v18 = vld [vmem:[%s1935_s1 + $0x8] sm:$0xf0]  ;;  %v1184_v21 = vld [vmem:[%s1935_s1 + $0xc0] sm:$0xf]  ;;  %v1379_v23 = vld [vmem:[%s1935_s1 + $0x4] sm:$0xf]  ;;  %v1201_v24 = vor.u32 %v1406_v14, %v1198_v15 }
  0x1f   : > { %605 = vmatpush.bf16.msra.mxu1 %v1221_v57  ;;  %619 = vmatpush.bf16.msra.mxu2 %v1129_v58  ;;  %v1404_v22 = vld [vmem:[%s1935_s1 + $0xc8] sm:$0xf0]  ;;  %v1090_v25 = vld [vmem:[%s1935_s1 + $0xc] sm:$0xf0]  ;;  %s1941_s15 = smov (!%p228_p3, %s1071_s15), 3  ;;  %v1089_v30 = vor.u32 %v1380_v18, %v1088_v17  ;;  %v1434_v52 = vld [vmem:[%s1937_s3 + $0x38] sm:$0xff] }
  0x20   : > { %633 = vmatpush.bf16.msra.mxu3 %v1225_v62  ;;  %v1180_v26 = vld [vmem:[%s1935_s1 + $0xb0] sm:$0xf]  ;;  %v1402_v27 = vld [vmem:[%s1935_s1 + $0xb8] sm:$0xf0]  ;;  %v1403_v31 = vld [vmem:[%s1935_s1 + $0xc4] sm:$0xf]  ;;  %v1185_v33 = vor.u32 %v1404_v22, %v1184_v21  ;;  %v1093_v34 = vor.u32 %v1379_v23, %v1090_v25 }
  0x21   : > { %v1276_v28 = vld [vmem:[%s1935_s1 + $0x170] sm:$0xf]  ;;  %v1426_v29 = vld [vmem:[%s1935_s1 + $0x178] sm:$0xf0]  ;;  %s1376_s17 = sshll.u32 %s1941_s15, 3  ;;  %v1181_v35 = vor.u32 %v1402_v27, %v1180_v26  ;;  %v1432_v0 = vld [vmem:[%s1937_s3 + $0x28] sm:$0xff] }
  0x22   : > { %592 = vmatpush.bf16.msra.mxu0 %v1113_v4  ;;  %v1186_v32 = vld [vmem:[%s1935_s1 + $0xcc] sm:$0xf0]  ;;  %s232_s22 = scalar_lea.vmem %s1934_s0, %s1376_s17  ;;  %v1277_v36 = vor.u32 %v1426_v29, %v1276_v28  ;;  %v1168_v43 = vld [vmem:[%s1935_s1 + $0x98] sm:$0xf]  ;;  %v1399_v44 = vld [vmem:[%s1935_s1 + $0xa0] sm:$0xf0]  ;;  %s245_s21 = scalar_lea.vmem %s1939_s5, %s1376_s17 }
  0x23   : > { %606 = vmatpush.bf16.msra.mxu1 %v1209_v5  ;;  %620 = vmatpush.bf16.msra.mxu2 %v1117_v6  ;;  %v1080_v37 = vld [vmem:[%s232_s22] sm:$0xf]  ;;  %v1378_v38 = vld [vmem:[%s232_s22 + $0x4] sm:$0xf0]  ;;  %v1377_v39 = vld [vmem:[%s232_s22 + $0x4] sm:$0xf]  ;;  %v1189_v40 = vor.u32 %v1403_v31, %v1186_v32  ;;  %v1169_v48 = vor.u32 %v1399_v44, %v1168_v43 }
  0x24   : > { %634 = vmatpush.bf16.msra.mxu3 %v1213_v10  ;;  %v1737_v41 = vor.u32 %v1378_v38, %v1080_v37  ;;  %v1082_v42 = vld [vmem:[%s232_s22 + $0x8] sm:$0xf0]  ;;  %v1264_v46 = vld [vmem:[%s1935_s1 + $0x158] sm:$0xf]  ;;  %v1423_v47 = vld [vmem:[%s1935_s1 + $0x160] sm:$0xf0] }
  0x25   : > { %v1745_v45 = vor.u32 %v1377_v39, %v1082_v42  ;;  %v1265_v49 = vor.u32 %v1423_v47, %v1264_v46  ;;  %v1156_v50 = vld [vmem:[%s1935_s1 + $0x80] sm:$0xf]  ;;  %v1396_v51 = vld [vmem:[%s1935_s1 + $0x88] sm:$0xf0]  ;;  %v1442_v55 = vld [vmem:[%s1937_s3 + $0x78] sm:$0xff]  ;;  %s1451_s17 = smul.u32 12, %s1941_s15 }
  0x26   : > { %593 = vmatpush.bf16.msra.mxu0 %v1101_v16  ;;  %v1252_v53 = vld [vmem:[%s1935_s1 + $0x140] sm:$0xf]  ;;  %v1420_v54 = vld [vmem:[%s1935_s1 + $0x148] sm:$0xf0]  ;;  %v1433_v56 = vld [vmem:[%s1937_s3 + $0x30] sm:$0xff]  ;;  %v1157_v57 = vor.u32 %v1396_v51, %v1156_v50 }
  0x27   : > { %607 = vmatpush.bf16.msra.mxu1 %v1197_v19  ;;  %621 = vmatpush.bf16.msra.mxu2 %v1105_v20  ;;  %v1253_v58 = vor.u32 %v1420_v54, %v1252_v53  ;;  %v1144_v59 = vld [vmem:[%s1935_s1 + $0x68] sm:$0xf]  ;;  %v1393_v60 = vld [vmem:[%s1935_s1 + $0x70] sm:$0xf0]  ;;  %v1132_v3 = vld [vmem:[%s1935_s1 + $0x50] sm:$0xf]  ;;  %s239_s19 = scalar_lea.vmem %s1938_s4, %s1451_s17 }
  0x28   : > { %635 = vmatpush.bf16.msra.mxu3 %v1201_v24  ;;  %v1441_v61 = vld [vmem:[%s1937_s3 + $0x70] sm:$0xff]  ;;  %v1240_v62 = vld [vmem:[%s1935_s1 + $0x128] sm:$0xf]  ;;  %v1145_v1 = vor.u32 %v1393_v60, %v1144_v59  ;;  %v1390_v4 = vld [vmem:[%s1935_s1 + $0x58] sm:$0xf0] }
  0x29   : > { %v1417_v63 = vld [vmem:[%s1935_s1 + $0x130] sm:$0xf0]  ;;  %v1228_v5 = vld [vmem:[%s1935_s1 + $0x110] sm:$0xf]  ;;  %v1414_v6 = vld [vmem:[%s1935_s1 + $0x118] sm:$0xf0]  ;;  %v1133_v8 = vor.u32 %v1390_v4, %v1132_v3 }
  0x2a   : > { %594 = vmatpush.bf16.msra.mxu0 %v1089_v30  ;;  %v1241_v2 = vor.u32 %v1417_v63, %v1240_v62  ;;  %v1431_v7 = vld [vmem:[%s1937_s3 + $0x20] sm:$0xff]  ;;  %v1229_v9 = vor.u32 %v1414_v6, %v1228_v5  ;;  %v1120_v10 = vld [vmem:[%s1935_s1 + $0x38] sm:$0xf]  ;;  %v1384_v17 = vld [vmem:[%s1935_s1 + $0x28] sm:$0xf0] }
  0x2b   : > { %608 = vmatpush.bf16.msra.mxu1 %v1185_v33  ;;  %622 = vmatpush.bf16.msra.mxu2 %v1093_v34  ;;  %v1387_v11 = vld [vmem:[%s1935_s1 + $0x40] sm:$0xf0]  ;;  %v1216_v12 = vld [vmem:[%s1935_s1 + $0xf8] sm:$0xf]  ;;  %v1108_v16 = vld [vmem:[%s1935_s1 + $0x20] sm:$0xf] }
  0x2c   : > { %636 = vmatpush.bf16.msra.mxu3 %v1189_v40  ;;  %v1411_v13 = vld [vmem:[%s1935_s1 + $0x100] sm:$0xf0]  ;;  %v1121_v14 = vor.u32 %v1387_v11, %v1120_v10  ;;  %v1204_v18 = vld [vmem:[%s1935_s1 + $0xe0] sm:$0xf]  ;;  %v1408_v19 = vld [vmem:[%s1935_s1 + $0xe8] sm:$0xf0]  ;;  %v1109_v20 = vor.u32 %v1384_v17, %v1108_v16 }
  0x2d   : > { %595 = vmatmul.bf16.vlgmr.msra.gmra.mxu0 %v1737_v41  ;;  %v1217_v15 = vor.u32 %v1411_v13, %v1216_v12  ;;  %v1205_v21 = vor.u32 %v1408_v19, %v1204_v18  ;;  %v1096_v22 = vld [vmem:[%s1935_s1 + $0x8] sm:$0xf]  ;;  %v1381_v23 = vld [vmem:[%s1935_s1 + $0x10] sm:$0xf0]  ;;  %v1430_v29 = vld [vmem:[%s1937_s3 + $0x18] sm:$0xff] }
  0x2e   : > { %643 = vmatpush.bf16.msrb.mxu0 %v1181_v35  ;;  %623 = vmatmul.bf16.vlgmr.msra.gmra.mxu2 %v1737_v41  ;;  %v1192_v24 = vld [vmem:[%s1935_s1 + $0xc8] sm:$0xf]  ;;  %v1405_v25 = vld [vmem:[%s1935_s1 + $0xd0] sm:$0xf0]  ;;  %v1097_v26 = vor.u32 %v1381_v23, %v1096_v22  ;;  %v1439_v30 = vld [vmem:[%s1937_s3 + $0x60] sm:$0xff] }
  0x2f   : > { %657 = vmatpush.bf16.msrb.mxu1 %v1277_v36  ;;  %884 = vmatpush.bf16.msrb.mxu2 %v1434_v52  ;;  %v1193_v27 = vor.u32 %v1405_v25, %v1192_v24  ;;  %v1440_v28 = vld [vmem:[%s1937_s3 + $0x68] sm:$0xff]  ;;  %v1429_v31 = vld [vmem:[%s1937_s3 + $0x10] sm:$0xff]  ;;  %v1438_v32 = vld [vmem:[%s1937_s3 + $0x58] sm:$0xff]  ;;  %v1482_v25 = vmov 2  }
  0x30   : > { %609 = vmatmul.bf16.vlgmr.msra.gmra.mxu1 %v1745_v45  ;;  %637 = vmatmul.bf16.vlgmr.msra.gmra.mxu3 %v1745_v45  ;;  %v1428_v33 = vld [vmem:[%s1937_s3 + $0x8] sm:$0xff]  ;;  %v1437_v34 = vld [vmem:[%s1937_s3 + $0x50] sm:$0xff]  ;;  %v1427_v35 = vld [vmem:[%s1937_s3] sm:$0xff] }
  0x31   : > { %898 = vmatpush.bf16.msrb.mxu3 %v1442_v55  ;;  %v1450_v36 = vld [vmem:[%s1937_s3 + $0xb8] sm:$0xff]  ;;  %v1436_v37 = vld [vmem:[%s1937_s3 + $0x48] sm:$0xff]  ;;  %v1449_v38 = vld [vmem:[%s1937_s3 + $0xb0] sm:$0xff]  ;;  %1465 = vset.pattern.permute.xlu1 %v1482_v25 }
  0x32   : > { %644 = vmatpush.bf16.msrb.mxu0 %v1169_v48  ;;  %v1435_v39 = vld [vmem:[%s1937_s3 + $0x40] sm:$0xff]  ;;  %v1448_v40 = vld [vmem:[%s1937_s3 + $0xa8] sm:$0xff] }
  0x33   : > { %658 = vmatpush.bf16.msrb.mxu1 %v1265_v49  ;;  %885 = vmatpush.bf16.msrb.mxu2 %v1433_v56  ;;  %v1447_v42 = vld [vmem:[%s1937_s3 + $0xa0] sm:$0xff]  ;;  %v1445_v49 = vld [vmem:[%s1937_s3 + $0x90] sm:$0xff]  ;;  %v1444_v54 = vld [vmem:[%s1937_s3 + $0x88] sm:$0xff] }
  0x35   : > { %899 = vmatpush.bf16.msrb.mxu3 %v1441_v61  ;;  %v1443_v61 = vld [vmem:[%s1937_s3 + $0x80] sm:$0xff] }
  0x36   : > { %645 = vmatpush.bf16.msrb.mxu0 %v1157_v57 }
  0x37   : > { %659 = vmatpush.bf16.msrb.mxu1 %v1253_v58  ;;  %886 = vmatpush.bf16.msrb.mxu2 %v1432_v0 }
  0x39   : > { %900 = vmatpush.bf16.msrb.mxu3 %v1440_v28 }
  0x3a   : > { %646 = vmatpush.bf16.msrb.mxu0 %v1145_v1 }
  0x3b   : > { %660 = vmatpush.bf16.msrb.mxu1 %v1241_v2  ;;  %887 = vmatpush.bf16.msrb.mxu2 %v1431_v7 }
  0x3d   : > { %901 = vmatpush.bf16.msrb.mxu3 %v1439_v30 }
  0x3e   : > { %647 = vmatpush.bf16.msrb.mxu0 %v1133_v8 }
  0x3f   : > { %661 = vmatpush.bf16.msrb.mxu1 %v1229_v9  ;;  %888 = vmatpush.bf16.msrb.mxu2 %v1430_v29 }
  0x41   : > { %902 = vmatpush.bf16.msrb.mxu3 %v1438_v32 }
  0x42   : > { %648 = vmatpush.bf16.msrb.mxu0 %v1121_v14 }
  0x43   : > { %662 = vmatpush.bf16.msrb.mxu1 %v1217_v15  ;;  %889 = vmatpush.bf16.msrb.mxu2 %v1429_v31 }
  0x45   : > { %903 = vmatpush.bf16.msrb.mxu3 %v1437_v34 }
  0x46   : > { %649 = vmatpush.bf16.msrb.mxu0 %v1109_v20 }
  0x47   : > { %663 = vmatpush.bf16.msrb.mxu1 %v1205_v21  ;;  %890 = vmatpush.bf16.msrb.mxu2 %v1428_v33 }
  0x49   : > { %904 = vmatpush.bf16.msrb.mxu3 %v1436_v37 }
  0x4a   : > { %650 = vmatpush.bf16.msrb.mxu0 %v1097_v26  ;;  %v1483_v26 = vmov 0  }
  0x4b   : > { %664 = vmatpush.bf16.msrb.mxu1 %v1193_v27  ;;  %891 = vmatpush.bf16.msrb.mxu2 %v1427_v35  ;;  %v1484_v27 = vmov 1  }
  0x4c   : > { %1463 = vset.pattern.permute.xlu0 %v1483_v26  ;;  %1467 = vset.pattern.permute.xlu2 %v1484_v27 }
  0x4d   : > { %651 = vmatmul.bf16.vlgmr.msrb.gmra.mxu0 %v1737_v41  ;;  %905 = vmatpush.bf16.msrb.mxu3 %v1435_v39  ;;  %v313_v41 = vld [vmem:[%s1936_s2] sm:$0x7] }
  0x4e   : > { %665 = vmatmul.bf16.vlgmr.msrb.gmra.mxu1 %v1745_v45  ;;  %912 = vmatpush.bf16.msra.mxu0 %v1450_v36  ;;  %v315_v43 = vperm.slane %v313_v41, 0  ;;  %v1446_v45 = vld [vmem:[%s1937_s3 + $0x98] sm:$0xff]  ;;  %v316_v48 = vperm.slane %v313_v41, 1  ;;  %v317_v11 = vperm.slane %v313_v41, 2 }
  0x52   : > { %913 = vmatpush.bf16.msra.mxu0 %v1449_v38 }
  0x56   : > { %914 = vmatpush.bf16.msra.mxu0 %v1448_v40 }
  0x5a   : > { %915 = vmatpush.bf16.msra.mxu0 %v1447_v42 }
  0x5e   : > { %916 = vmatpush.bf16.msra.mxu0 %v1446_v45 }
  0x62   : > { %917 = vmatpush.bf16.msra.mxu0 %v1445_v49 }
  0x66   : > { %918 = vmatpush.bf16.msra.mxu0 %v1444_v54 }
  0x6a   : > { %919 = vmatpush.bf16.msra.mxu0 %v1443_v61 }
  0xaa   : > { %v596_v44 = vpop.f32.mrf.mxu0 }
  0xab   : > { %v597_v46 = vadd.f32 %v596_v44, %v315_v43 }
  0xad   : > { %v610_v47 = vpop.f32.mrf.mxu1 }
  0xae   : > { %v611_v50 = vadd.f32 %v610_v47, %v597_v46 }
  0xb0   : > { %v677_v55 = vmul.f32 0.01, %v611_v50  ;;  %vm671_vm0 = vcmp.gt.f32.partialorder %v611_v50, 0.0 }
  0xb1   : > { %v624_v51 = vpop.f32.mrf.mxu2 }
  0xb2   : > { %v625_v52 = vadd.f32 %v624_v51, %v316_v48  ;;  %v598_v53 = vpop.f32.mrf.mxu0  ;;  %v1906_v63 = vsel %vm671_vm0, %v611_v50, %v677_v55 }
  0xb3   : > { %v599_v56 = vadd.f32 %v598_v53, %v315_v43  ;;  %v638_v57 = vpop.f32.mrf.mxu3 }
  0xb4   : > { %v639_v60 = vadd.f32 %v638_v57, %v625_v52 }
  0xb5   : > { %v612_v58 = vpop.f32.mrf.mxu1 }
  0xb6   : > { %v613_v59 = vadd.f32 %v612_v58, %v599_v56  ;;  %v678_v2 = vmul.f32 0.01, %v639_v60  ;;  %vm672_vm2 = vcmp.gt.f32.partialorder %v639_v60, 0.0 }
  0xb8   : > { %vm674_vm1 = vcmp.gt.f32.partialorder %v613_v59, 0.0  ;;  %v680_v62 = vmul.f32 0.01, %v613_v59  ;;  %v1912_v8 = vsel %vm672_vm2, %v639_v60, %v678_v2 }
  0xb9   : > { %v626_v0 = vpop.f32.mrf.mxu2 }
  0xba   : > { %v1908_v1 = vsel %vm674_vm1, %v613_v59, %v680_v62  ;;  %v627_v3 = vadd.f32 %v626_v0, %v316_v48 }
  0xbb   : > { %v689_v4 = vpack.c.bf16 %v1908_v1, %v1906_v63  ;;  %v640_v5 = vpop.f32.mrf.mxu3 }
  0xbc   : > { %v641_v6 = vadd.f32 %v640_v5, %v627_v3 }
  0xbd   : > { %892 = vmatmul.bf16.vlgmr.msrb.gmra.mxu2 %v689_v4 }
  0xbe   : > { %vm675_vm3 = vcmp.gt.f32.partialorder %v641_v6, 0.0  ;;  %v681_v7 = vmul.f32 0.01, %v641_v6 }
  0xc0   : > { %v1914_v9 = vsel %vm675_vm3, %v641_v6, %v681_v7 }
  0xc1   : > { %v690_v10 = vpack.c.bf16 %v1914_v9, %v1912_v8 }
  0xc3   : > { %906 = vmatmul.bf16.vlgmr.msrb.gmra.mxu3 %v690_v10 }
  0xca   : > { %v652_v12 = vpop.f32.mrf.mxu0 }
  0xcb   : > { %v666_v13 = vpop.f32.mrf.mxu1  ;;  %v653_v14 = vadd.f32 %v652_v12, %v317_v11 }
  0xcd   : > { %v667_v15 = vadd.f32 %v666_v13, %v653_v14 }
  0xcf   : > { %v679_v19 = vmul.f32 0.01, %v667_v15  ;;  %vm673_vm4 = vcmp.gt.f32.partialorder %v667_v15, 0.0 }
  0xd1   : > { %v685_v22 = vsel %vm673_vm4, %v667_v15, %v679_v19 }
  0xd2   : > { %v654_v16 = vpop.f32.mrf.mxu0 }
  0xd3   : > { %v655_v17 = vadd.f32 %v654_v16, %v317_v11  ;;  %v668_v18 = vpop.f32.mrf.mxu1 }
  0xd5   : > { %v669_v20 = vadd.f32 %v668_v18, %v655_v17 }
  0xd7   : > { %vm676_vm5 = vcmp.gt.f32.partialorder %v669_v20, 0.0  ;;  %v682_v21 = vmul.f32 0.01, %v669_v20 }
  0xd9   : > { %v688_v23 = vsel %vm676_vm5, %v669_v20, %v682_v21 }
  0xda   : > { %v691_v24 = vpack.c.bf16 %v688_v23, %v685_v22 }
  0xdc   : > { %920 = vmatmul.bf16.vlgmr.msra.gmra.mxu0 %v691_v24 }
 0x140   : > { %v893_v29 = vpop.f32.mrf.mxu2 }
 0x146   : > { %v907_v28 = vpop.f32.mrf.mxu3 }
 0x147   : > { %v908_v30 = vadd.f32 %v907_v28, %v893_v29 }
 0x148   : > { %v895_v34 = vpop.f32.mrf.mxu2 }
 0x14e   : > { %v909_v33 = vpop.f32.mrf.mxu3 }
 0x14f   : > { %v910_v35 = vadd.f32 %v909_v33, %v895_v34 }
 0x159   : > { %v921_v31 = vpop.f32.mrf.mxu0 }
 0x15a   : > { %v922_v32 = vadd.f32 %v921_v31, %v908_v30 }
 0x15c   : > { %926 = vst [vmem:[%s245_s21] sm:$0xff] %v922_v32  ;;  %1470 = vtanh.f32 %v922_v32 }
 0x161   : > { %v923_v36 = vpop.f32.mrf.mxu0 }
 0x162   : > { %v1471_v37 = vpop.eup %1470  ;;  %v924_v38 = vadd.f32 %v923_v36, %v910_v35 }
 0x163   : > { %961 = vperm.xlu1 %1465, %v1471_v37   ;;  %932 = vperm.xlu0 %1463, %v1471_v37  }
 0x164   : > { %927 = vst [vmem:[%s245_s21 + $0x8] sm:$0xff] %v924_v38  ;;  %1472 = vtanh.f32 %v924_v38 }
 0x16a   : > { %v1473_v39 = vpop.eup %1472 }
 0x16b   : > { %1466 = vset.pattern.permute.xlu1 %v1483_v26  ;;  %1464 = vset.pattern.permute.xlu0 %v1484_v27 }
 0x16c   : > { %951 = vperm.xlu2 %1467, %v1473_v39   ;;  %947 = vperm.xlu0 %1464, %v1471_v37  }
 0x16d   : > { %937 = vperm.xlu1 %1466, %v1473_v39  }
 0x174   : > { %1468 = vset.pattern.permute.xlu2 %v1482_v25  ;;  %1469 = vset.pattern.permute.xlu0 %v1482_v25 }
 0x175   : > { %965 = vperm.xlu2 %1468, %v1473_v39  }
 0x1c6   : > { %v952_v40 = vpop.permute.xlu2 %951 }
 0x1c7   : > { %v955_v50 = vmul.f32 %v952_v40, %v1914_v9 }
 0x1c9   : > { %v957_v56 = vpack.c.bf16 %v955_v50, %v955_v50 }
 0x1cb   : > { %959 = vst [vmem:[%s239_s19 + $0x10] sm:$0xf] %v957_v56 }
 0x1cf   : > { %v966_v41 = vpop.permute.xlu2 %965 }
 0x1d0   : > { %v969_v42 = vmul.f32 %v966_v41, %v688_v23 }
 0x1d2   : > { %v971_v49 = vpack.c.bf16 %v969_v42, %v969_v42 }
 0x1d4   : > { %973 = vst [vmem:[%s239_s19 + $0x14] sm:$0xf] %v971_v49 }
 0x1d5   : > { %v962_v43 = vpop.permute.xlu1 %961  ;;  %v933_v44 = vpop.permute.xlu0 %932 }
 0x1d6   : > { %v968_v45 = vmul.f32 %v962_v43, %v685_v22  ;;  %v940_v46 = vmul.f32 %v933_v44, %v1906_v63 }
 0x1d8   : > { %v970_v47 = vpack.c.bf16 %v968_v45, %v968_v45  ;;  %v942_v48 = vpack.c.bf16 %v940_v46, %v940_v46 }
 0x1da   : > { %972 = vst [vmem:[%s239_s19 + $0x8] sm:$0xf] %v970_v47 }
 0x1db   : > { %944 = vst [vmem:[%s239_s19] sm:$0xf] %v942_v48 }
 0x1de   : > { %v948_v51 = vpop.permute.xlu0 %947 }
 0x1df   : > { %v954_v52 = vmul.f32 %v948_v51, %v1912_v8  ;;  %v938_v53 = vpop.permute.xlu1 %937 }
 0x1e0   : > { %v941_v54 = vmul.f32 %v938_v53, %v1908_v1 }
 0x1e1   : > { %v956_v55 = vpack.c.bf16 %v954_v52, %v954_v52 }
 0x1e2   : > { %v943_v57 = vpack.c.bf16 %v941_v54, %v941_v54 }
 0x1e3   : > { %958 = vst [vmem:[%s239_s19 + $0x4] sm:$0xf] %v956_v55 }
 0x1e4   : > { %945 = vst [vmem:[%s239_s19 + $0xc] sm:$0xf] %v943_v57 }
 0x1e5 PF: > { %s16_s18 = sadd.s32 1, %s1480_s18  }
 0x1e6   : > { %p13_p4 = scmp.ge.s32.totalorder %s16_s18, 4  }
 0x1e8   :  { %15 = sbr.rel (!%p13_p4) target bundleno = 1 (0x1), region = 78 }

// kernel: model_forward.16
= control target key start
LH: loop header
LB: loop body
LE: loop exit
PB: predicated region body
PF: predicated region fallthrough
CT: control target
= control target key end

     0   :  { %s1074_s18 = smov 0   ;;  %s1222_s0 = inlined_call_operand.vmem [shape: bf16[32,512], index: 0, kind: input, shape index: {}]   ;;  %s1223_s1 = inlined_call_operand.vmem [shape: bf16[512,128], index: 1, kind: input, shape index: {}]   ;;  %s1224_s2 = inlined_call_operand.vmem [shape: f32[1,128], index: 2, kind: input, shape index: {}]   ;;  %s1225_s3 = inlined_call_operand.vmem [shape: bf16[128,128], index: 3, kind: input, shape index: {}]   ;;  %s1226_s4 = inlined_call_operand.vmem [shape: bf16[32,128], index: 4, kind: output, shape index: {0}]   ;;  %s1227_s5 = inlined_call_operand.vmem [shape: f32[32,128], index: 5, kind: output, shape index: {1}]  }
   0x1 LB: > { %s780_s19 = sadd.s32 4294967295, %s1041_s18   ;;  %p784_p0 = scmp.ge.s32.totalorder %s1041_s18, 1  ;;  %s1041_s18 = sphi %s1074_s18, %s16_s18  }
   0x2   : > { %p192_p1 = scmp.lt.s32.totalorder %s1041_s18, 3 }
   0x4   : > { %p193_p2 = pnand %p784_p0, %p192_p1 }
   0x5   : > { %s785_s21 = sshll.u32 (!%p193_p2), %s780_s19, 1 }
   0x6   : > { %196 = sbr.rel (%p193_p2) target bundleno = 455 (0x1c7), region = 36  ;;  %p227_p3 = scmp.lt.s32.totalorder (!%p193_p2), %s785_s21, 3 }
   0xb   : > { %v982_v0 = vld [vmem:[%s1223_s1 + $0x38] sm:$0xff]  ;;  %v981_v4 = vld [vmem:[%s1223_s1 + $0x30] sm:$0xff]  ;;  %v980_v8 = vld [vmem:[%s1223_s1 + $0x28] sm:$0xff]  ;;  %s1229_s21 = smov (!%p227_p3, %s785_s21), 3 }
   0xc   : > { %v990_v1 = vld [vmem:[%s1223_s1 + $0x78] sm:$0xff]  ;;  %529 = vmatpush.bf16.msra.mxu0 %v982_v0  ;;  %v989_v5 = vld [vmem:[%s1223_s1 + $0x70] sm:$0xff]  ;;  %v988_v9 = vld [vmem:[%s1223_s1 + $0x68] sm:$0xff]  ;;  %s970_s23 = sshll.u32 %s1229_s21, 4  ;;  %s791_s12 = sshll.u32 %s1229_s21, 3 }
   0xd   : > { %v998_v2 = vld [vmem:[%s1223_s1 + $0xb8] sm:$0xff]  ;;  %543 = vmatpush.bf16.msra.mxu1 %v990_v1  ;;  %v997_v6 = vld [vmem:[%s1223_s1 + $0xb0] sm:$0xff]  ;;  %v996_v10 = vld [vmem:[%s1223_s1 + $0xa8] sm:$0xff]  ;;  %s231_s19 = scalar_lea.vmem %s1222_s0, %s970_s23  ;;  %s243_s15 = scalar_lea.vmem %s1227_s5, %s791_s12 }
   0xe   : > { %v1006_v3 = vld [vmem:[%s1223_s1 + $0xf8] sm:$0xff]  ;;  %557 = vmatpush.bf16.msra.mxu2 %v998_v2  ;;  %v1005_v7 = vld [vmem:[%s1223_s1 + $0xf0] sm:$0xff]  ;;  %v1004_v11 = vld [vmem:[%s1223_s1 + $0xe8] sm:$0xff]  ;;  %s789_s16 = sshll.u32 %s1229_s21, 2 }
   0xf   : > { %571 = vmatpush.bf16.msra.mxu3 %v1006_v3  ;;  %v979_v12 = vld [vmem:[%s1223_s1 + $0x20] sm:$0xff]  ;;  %v978_v16 = vld [vmem:[%s1223_s1 + $0x18] sm:$0xff]  ;;  %v977_v20 = vld [vmem:[%s1223_s1 + $0x10] sm:$0xff]  ;;  %s237_s22 = scalar_lea.vmem %s1226_s4, %s789_s16 }
  0x10   : > { %530 = vmatpush.bf16.msra.mxu0 %v981_v4  ;;  %v987_v13 = vld [vmem:[%s1223_s1 + $0x60] sm:$0xff]  ;;  %v986_v17 = vld [vmem:[%s1223_s1 + $0x58] sm:$0xff]  ;;  %v985_v21 = vld [vmem:[%s1223_s1 + $0x50] sm:$0xff] }
  0x11   : > { %544 = vmatpush.bf16.msra.mxu1 %v989_v5  ;;  %v995_v14 = vld [vmem:[%s1223_s1 + $0xa0] sm:$0xff]  ;;  %v994_v18 = vld [vmem:[%s1223_s1 + $0x98] sm:$0xff]  ;;  %v993_v22 = vld [vmem:[%s1223_s1 + $0x90] sm:$0xff] }
  0x12   : > { %558 = vmatpush.bf16.msra.mxu2 %v997_v6  ;;  %v1003_v15 = vld [vmem:[%s1223_s1 + $0xe0] sm:$0xff]  ;;  %v1002_v19 = vld [vmem:[%s1223_s1 + $0xd8] sm:$0xff]  ;;  %v1001_v23 = vld [vmem:[%s1223_s1 + $0xd0] sm:$0xff] }
  0x13   : > { %572 = vmatpush.bf16.msra.mxu3 %v1005_v7  ;;  %v976_v24 = vld [vmem:[%s1223_s1 + $0x8] sm:$0xff]  ;;  %v975_v28 = vld [vmem:[%s1223_s1] sm:$0xff]  ;;  %v973_v33 = vld [vmem:[%s231_s19 + $0xc] sm:$0xf0] }
  0x14   : > { %531 = vmatpush.bf16.msra.mxu0 %v980_v8  ;;  %v984_v25 = vld [vmem:[%s1223_s1 + $0x48] sm:$0xff]  ;;  %v983_v29 = vld [vmem:[%s1223_s1 + $0x40] sm:$0xff]  ;;  %v796_v35 = vld [vmem:[%s231_s19 + $0x10] sm:$0xf0] }
  0x15   : > { %545 = vmatpush.bf16.msra.mxu1 %v988_v9  ;;  %v992_v26 = vld [vmem:[%s1223_s1 + $0x88] sm:$0xff]  ;;  %v991_v30 = vld [vmem:[%s1223_s1 + $0x80] sm:$0xff]  ;;  %v974_v37 = vld [vmem:[%s231_s19 + $0x14] sm:$0xf0] }
  0x16   : > { %559 = vmatpush.bf16.msra.mxu2 %v996_v10  ;;  %v1000_v27 = vld [vmem:[%s1223_s1 + $0xc8] sm:$0xff]  ;;  %v999_v31 = vld [vmem:[%s1223_s1 + $0xc0] sm:$0xff]  ;;  %v804_v39 = vld [vmem:[%s231_s19 + $0x18] sm:$0xf0]  ;;  %v1043_v10 = vmov 0  }
  0x17   : > { %573 = vmatpush.bf16.msra.mxu3 %v1004_v11  ;;  %v794_v32 = vld [vmem:[%s231_s19] sm:$0xf]  ;;  %v971_v34 = vld [vmem:[%s231_s19 + $0x4] sm:$0xf]  ;;  %v802_v36 = vld [vmem:[%s231_s19 + $0x8] sm:$0xf]  ;;  %1029 = vset.pattern.permute.xlu0 %v1043_v10 }
  0x18   : > { %532 = vmatpush.bf16.msra.mxu0 %v979_v12  ;;  %v972_v38 = vld [vmem:[%s231_s19 + $0xc] sm:$0xf]  ;;  %v1014_v40 = vld [vmem:[%s1225_s3 + $0x38] sm:$0xff]  ;;  %v795_v41 = vor.u32 %v973_v33, %v794_v32  ;;  %v799_v42 = vor.u32 %v971_v34, %v796_v35  ;;  %v803_v43 = vor.u32 %v974_v37, %v802_v36  ;;  %v1013_v45 = vld [vmem:[%s1225_s3 + $0x30] sm:$0xff] }
  0x19   : > { %546 = vmatpush.bf16.msra.mxu1 %v987_v13  ;;  %v807_v44 = vor.u32 %v972_v38, %v804_v39  ;;  %v1012_v46 = vld [vmem:[%s1225_s3 + $0x28] sm:$0xff]  ;;  %v1011_v47 = vld [vmem:[%s1225_s3 + $0x20] sm:$0xff]  ;;  %v1010_v48 = vld [vmem:[%s1225_s3 + $0x18] sm:$0xff] }
  0x1a   : > { %560 = vmatpush.bf16.msra.mxu2 %v995_v14  ;;  %v1009_v49 = vld [vmem:[%s1225_s3 + $0x10] sm:$0xff]  ;;  %v1008_v50 = vld [vmem:[%s1225_s3 + $0x8] sm:$0xff]  ;;  %v1007_v51 = vld [vmem:[%s1225_s3] sm:$0xff] }
  0x1b   : > { %574 = vmatpush.bf16.msra.mxu3 %v1003_v15  ;;  %v1030_v52 = vld [vmem:[%s1224_s2] ss:$0 sm:$0xff] }
  0x1c   : > { %533 = vmatpush.bf16.msra.mxu0 %v978_v16 }
  0x1d   : > { %547 = vmatpush.bf16.msra.mxu1 %v986_v17 }
  0x1e   : > { %561 = vmatpush.bf16.msra.mxu2 %v994_v18 }
  0x1f   : > { %575 = vmatpush.bf16.msra.mxu3 %v1002_v19 }
  0x20   : > { %534 = vmatpush.bf16.msra.mxu0 %v977_v20 }
  0x21   : > { %548 = vmatpush.bf16.msra.mxu1 %v985_v21 }
  0x22   : > { %562 = vmatpush.bf16.msra.mxu2 %v993_v22 }
  0x23   : > { %576 = vmatpush.bf16.msra.mxu3 %v1001_v23 }
  0x24   : > { %535 = vmatpush.bf16.msra.mxu0 %v976_v24 }
  0x25   : > { %549 = vmatpush.bf16.msra.mxu1 %v984_v25 }
  0x26   : > { %563 = vmatpush.bf16.msra.mxu2 %v992_v26 }
  0x27   : > { %577 = vmatpush.bf16.msra.mxu3 %v1000_v27 }
  0x28   : > { %536 = vmatpush.bf16.msra.mxu0 %v975_v28 }
  0x29   : > { %550 = vmatpush.bf16.msra.mxu1 %v983_v29 }
  0x2a   : > { %564 = vmatpush.bf16.msra.mxu2 %v991_v30 }
  0x2b   : > { %578 = vmatpush.bf16.msra.mxu3 %v999_v31  ;;  %537 = vmatmul.bf16.vlgmr.msra.gmra.mxu0 %v795_v41 }
  0x2c   : > { %656 = vmatpush.bf16.msrb.mxu0 %v1014_v40  ;;  %551 = vmatmul.bf16.vlgmr.msra.gmra.mxu1 %v799_v42 }
  0x2d   : > { %565 = vmatmul.bf16.vlgmr.msra.gmra.mxu2 %v803_v43 }
  0x2e   : > { %579 = vmatmul.bf16.vlgmr.msra.gmra.mxu3 %v807_v44 }
  0x30   : > { %657 = vmatpush.bf16.msrb.mxu0 %v1013_v45 }
  0x34   : > { %658 = vmatpush.bf16.msrb.mxu0 %v1012_v46 }
  0x38   : > { %659 = vmatpush.bf16.msrb.mxu0 %v1011_v47 }
  0x3c   : > { %660 = vmatpush.bf16.msrb.mxu0 %v1010_v48 }
  0x40   : > { %661 = vmatpush.bf16.msrb.mxu0 %v1009_v49 }
  0x44   : > { %662 = vmatpush.bf16.msrb.mxu0 %v1008_v50 }
  0x48   : > { %663 = vmatpush.bf16.msrb.mxu0 %v1007_v51 }
  0xa8   : > { %v538_v53 = vpop.f32.mrf.mxu0 }
  0xa9   : > { %v539_v54 = vadd.f32 %v1030_v52, %v538_v53  ;;  %v552_v55 = vpop.f32.mrf.mxu1 }
  0xab   : > { %v553_v56 = vadd.f32 %v552_v55, %v539_v54 }
  0xb0   : > { %v566_v57 = vpop.f32.mrf.mxu2  ;;  %v540_v59 = vpop.f32.mrf.mxu0 }
  0xb1   : > { %v580_v58 = vpop.f32.mrf.mxu3  ;;  %v567_v60 = vadd.f32 %v566_v57, %v553_v56  ;;  %v541_v61 = vadd.f32 %v1030_v52, %v540_v59  ;;  %v554_v62 = vpop.f32.mrf.mxu1 }
  0xb3   : > { %v581_v63 = vadd.f32 %v580_v58, %v567_v60  ;;  %v555_v0 = vadd.f32 %v554_v62, %v541_v61 }
  0xb5   : > { %v587_v4 = vmul.f32 0.01, %v581_v63  ;;  %vm585_vm0 = vcmp.gt.f32.partialorder %v581_v63, 0.0 }
  0xb7   : > { %v589_v7 = vsel %vm585_vm0, %v581_v63, %v587_v4 }
  0xb8   : > { %v568_v1 = vpop.f32.mrf.mxu2 }
  0xb9   : > { %v569_v2 = vadd.f32 %v568_v1, %v555_v0  ;;  %v582_v3 = vpop.f32.mrf.mxu3 }
  0xbb   : > { %v583_v5 = vadd.f32 %v582_v3, %v569_v2 }
  0xbd   : > { %vm586_vm1 = vcmp.gt.f32.partialorder %v583_v5, 0.0  ;;  %v588_v6 = vmul.f32 0.01, %v583_v5 }
  0xbf   : > { %v590_v8 = vsel %vm586_vm1, %v583_v5, %v588_v6 }
  0xc0   : > { %v591_v9 = vpack.c.bf16 %v590_v8, %v589_v7 }
  0xc2   : > { %664 = vmatmul.bf16.vlgmr.msrb.gmra.mxu0 %v591_v9 }
 0x13f   : > { %v665_v11 = vpop.f32.mrf.mxu0 }
 0x140   : > { %670 = vst [vmem:[%s243_s15] sm:$0xff] %v665_v11  ;;  %1031 = vtanh.f32 %v665_v11 }
 0x146   : > { %v1032_v12 = vpop.eup %1031 }
 0x147   : > { %676 = vperm.xlu0 %1029, %v1032_v12   ;;  %v667_v13 = vpop.f32.mrf.mxu0 }
 0x148   : > { %671 = vst [vmem:[%s243_s15 + $0x8] sm:$0xff] %v667_v13  ;;  %1033 = vtanh.f32 %v667_v13 }
 0x14e   : > { %v1034_v14 = vpop.eup %1033 }
 0x14f   : > { %681 = vperm.xlu0 %1029, %v1034_v14  }
 0x1b9   : > { %v677_v15 = vpop.permute.xlu0 %676 }
 0x1ba   : > { %v684_v17 = vmul.f32 %v677_v15, %v589_v7 }
 0x1c1   : > { %v682_v16 = vpop.permute.xlu0 %681 }
 0x1c2   : > { %v685_v18 = vmul.f32 %v682_v16, %v590_v8 }
 0x1c4   : > { %v1018_v19 = vpack.c.bf16 %v685_v18, %v684_v17 }
 0x1c6   : > { %1019 = vst [vmem:[%s237_s22] sm:$0xff] %v1018_v19  }
 0x1c7 PF: > { %s16_s18 = sadd.s32 1, %s1041_s18  }
 0x1c8   : > { %p13_p4 = scmp.ge.s32.totalorder %s16_s18, 4  }
 0x1ca   :  { %15 = sbr.rel (!%p13_p4) target bundleno = 1 (0x1), region = 78 }

// kernel: model_forward.17
= control target key start
LH: loop header
LB: loop body
LE: loop exit
PB: predicated region body
PF: predicated region fallthrough
CT: control target
= control target key end

     0   :  { %v544_v0 = vmov 0   ;;  %vm139_vm1 = vcmask 7168   ;;  %s851_s1 = inlined_call_operand.vmem [shape: f32[8,8,1], index: 1, kind: input, shape index: {}]   ;;  %s852_s0 = inlined_call_operand.vmem [shape: bf16[8,8,128], index: 0, kind: input, shape index: {}]   ;;  %s853_s2 = inlined_call_operand.vmem [shape: f32[8,256], index: 2, kind: output, shape index: {}]  }
   0x1   :  { %527 = vset.pattern.permute.xlu2 %v544_v0  ;;  %526 = vset.pattern.permute.xlu1 %v544_v0  ;;  %v563_v1 = vld [vmem:[%s851_s1 + $0x20] sm:$0xff]  ;;  %v29_v2 = vld [vmem:[%s851_s1 + $0x10] sm:$0xff]  ;;  %v575_v6 = vld [vmem:[%s851_s1 + $0x28] sm:$0xff] }
   0x2   :  { %v27_v3 = vld [vmem:[%s851_s1] sm:$0xff]  ;;  %525 = vset.pattern.permute.xlu0 %v544_v0  ;;  %vm39_vm0 = vcmp.gt.f32.partialorder %v563_v1, 0.0  ;;  %vm37_vm2 = vcmp.gt.f32.partialorder %v29_v2, 0.0  ;;  %v30_v7 = vld [vmem:[%s851_s1 + $0x18] sm:$0xff]  ;;  %v28_v10 = vld [vmem:[%s851_s1 + $0x8] sm:$0xff]  ;;  %vm40_vm4 = vcmp.gt.f32.partialorder %v575_v6, 0.0 }
   0x3   :  { %v47_v4 = vsel %vm39_vm0, 1, %v544_v0  ;;  %v45_v5 = vsel %vm37_vm2, 1, %v544_v0  ;;  %vm35_vm3 = vcmp.gt.f32.partialorder %v27_v3, 0.0  ;;  %v140_v9 = vsel %vm139_vm1, %v27_v3, 0.0  ;;  %v588_v15 = vld [vmem:[%s851_s1 + $0x38] sm:$0xff]  ;;  %v595_v19 = vld [vmem:[%s851_s1 + $0x30] sm:$0xff] }
   0x4   :  { %64 = vperm.xlu2 %527, %v47_v4   ;;  %58 = vperm.xlu1 %526, %v45_v5   ;;  %v43_v8 = vsel %vm35_vm3, 1, %v544_v0  ;;  %vm38_vm5 = vcmp.gt.f32.partialorder %v30_v7, 0.0  ;;  %v141_v11 = vrot.slane %v140_v9, 4  ;;  %vm36_vm6 = vcmp.gt.f32.partialorder %v28_v10, 0.0 }
   0x5   :  { %52 = vperm.xlu0 %525, %v43_v8   ;;  %v48_v12 = vsel %vm40_vm4, 1, %v544_v0  ;;  %v46_v13 = vsel %vm38_vm5, 1, %v544_v0  ;;  %v44_v14 = vsel %vm36_vm6, 1, %v544_v0  ;;  %v154_v17 = vsel %vm139_vm1, %v29_v2, 0.0 }
   0x6   :  { %v142_v16 = vadd.f32 %v141_v11, %v140_v9  ;;  %v161_v18 = vsel %vm139_vm1, %v30_v7, 0.0  ;;  %vm42_vm7 = vcmp.gt.f32.partialorder %v588_v15, 0.0  ;;  %v147_v20 = vsel %vm139_vm1, %v28_v10, 0.0 }
   0x7   :  { %v155_v21 = vrot.slane %v154_v17, 4  ;;  %v162_v22 = vrot.slane %v161_v18, 4  ;;  %vm41_vm8 = vcmp.gt.f32.partialorder %v595_v19, 0.0  ;;  %v50_v24 = vsel %vm42_vm7, 1, %v544_v0 }
   0x8   :  { %v143_v23 = vrot.slane %v142_v16, 2  ;;  %v148_v25 = vrot.slane %v147_v20, 4  ;;  %v175_v26 = vsel %vm139_vm1, %v575_v6, 0.0  ;;  %v49_v27 = vsel %vm41_vm8, 1, %v544_v0 }
   0x9   :  { %v156_v28 = vadd.f32 %v155_v21, %v154_v17  ;;  %v163_v29 = vadd.f32 %v162_v22, %v161_v18  ;;  %v182_v30 = vsel %vm139_vm1, %v595_v19, 0.0  ;;  %v168_v33 = vsel %vm139_vm1, %v563_v1, 0.0  ;;  %v615_v21 = vld [vmem:[%s852_s0 + $0x10] sm:$0xff]  }
   0xa   :  { %v144_v31 = vadd.f32 %v143_v23, %v142_v16  ;;  %v149_v32 = vadd.f32 %v148_v25, %v147_v20  ;;  %v176_v34 = vrot.slane %v175_v26, 4  ;;  %v183_v35 = vrot.slane %v182_v30, 4 }
   0xb   :  { %v157_v37 = vrot.slane %v156_v28, 2  ;;  %v164_v38 = vrot.slane %v163_v29, 2  ;;  %v169_v39 = vrot.slane %v168_v33, 4  ;;  %v189_v48 = vsel %vm139_vm1, %v588_v15, 0.0 }
   0xc   :  { %67 = vperm.xlu2 %527, %v48_v12   ;;  %61 = vperm.xlu1 %526, %v46_v13   ;;  %v145_v36 = vrot.slane %v144_v31, 1  ;;  %v150_v40 = vrot.slane %v149_v32, 2  ;;  %v177_v41 = vadd.f32 %v176_v34, %v175_v26  ;;  %v184_v42 = vadd.f32 %v183_v35, %v182_v30  ;;  %v630_v26 = vld [vmem:[%s852_s0] sm:$0xff]  }
   0xd   :  { %55 = vperm.xlu0 %525, %v44_v14   ;;  %v158_v44 = vadd.f32 %v157_v37, %v156_v28  ;;  %v165_v45 = vadd.f32 %v164_v38, %v163_v29  ;;  %v170_v46 = vadd.f32 %v169_v39, %v168_v33  ;;  %v190_v54 = vrot.slane %v189_v48, 4 }
   0xe   :  { %v146_v43 = vadd.f32 %v145_v36, %v144_v31  ;;  %v151_v47 = vadd.f32 %v150_v40, %v149_v32  ;;  %v178_v49 = vrot.slane %v177_v41, 2  ;;  %v185_v53 = vrot.slane %v184_v42, 2 }
   0xf   :  { %v159_v51 = vrot.slane %v158_v44, 1  ;;  %v166_v52 = vrot.slane %v165_v45, 1  ;;  %v171_v56 = vrot.slane %v170_v46, 2  ;;  %v191_v61 = vadd.f32 %v190_v54, %v189_v48 }
  0x10   :  { %v196_v50 = vmax.f32 %v146_v43, 1.0  ;;  %v152_v55 = vrot.slane %v151_v47, 1  ;;  %v179_v57 = vadd.f32 %v178_v49, %v177_v41  ;;  %v186_v60 = vadd.f32 %v185_v53, %v184_v42 }
  0x11   :  { %v160_v58 = vadd.f32 %v159_v51, %v158_v44  ;;  %v167_v59 = vadd.f32 %v166_v52, %v165_v45  ;;  %v172_v63 = vadd.f32 %v171_v56, %v170_v46  ;;  %v192_v8 = vrot.slane %v191_v61, 2  ;;  %v644_v51 = vld [vmem:[%s852_s0 + $0x18] sm:$0xff]  }
  0x12   :  { %v153_v62 = vadd.f32 %v152_v55, %v151_v47  ;;  %v187_v4 = vrot.slane %v186_v60, 1  ;;  %v515_v23 = vunpack.c.l.bf16 %v615_v21  ;;  %v516_v25 = vunpack.c.h.bf16 %v615_v21 }
  0x13   :  { %v198_v0 = vmax.f32 %v160_v58, 1.0  ;;  %v193_v11 = vadd.f32 %v192_v8, %v191_v61  ;;  %v507_v30 = vunpack.c.l.bf16 %v630_v26  ;;  %v508_v48 = vunpack.c.h.bf16 %v630_v26 }
  0x14   :  { %73 = vperm.xlu1 %526, %v50_v24   ;;  %206 = vperm.xlu2 %527, %v27_v3   ;;  %v180_v3 = vrot.slane %v179_v57, 1  ;;  %v197_v5 = vmax.f32 %v153_v62, 1.0  ;;  %v621_v24 = vld [vmem:[%s852_s0 + $0x8] sm:$0xff]   ;;  %vm468_vm1 = vcmask 1041409   ;;  %vm470_vm2 = vcmask 1042434  }
  0x15   :  { %70 = vperm.xlu0 %525, %v49_v27   ;;  %v512_v40 = vunpack.c.h.bf16 %v621_v24  ;;  %vm472_vm3 = vcmask 1043459   ;;  %vm474_vm4 = vcmask 1044484   ;;  %vm476_vm5 = vcmask 1045509  }
  0x16   :  { %v181_v9 = vadd.f32 %v180_v3, %v179_v57  ;;  %v519_v3 = vunpack.c.l.bf16 %v644_v51  ;;  %vm478_vm6 = vcmask 1046534   ;;  %vm854_vm7 = vcmask 1047559  }
  0x18   :  { %v201_v12 = vmax.f32 %v181_v9, 1.0 }
  0x1c   :  { %216 = vperm.xlu1 %526, %v29_v2   ;;  %221 = vperm.xlu2 %527, %v30_v7   ;;  %v199_v2 = vmax.f32 %v167_v59, 1.0  ;;  %v173_v7 = vrot.slane %v172_v63, 1  ;;  %v520_v59 = vunpack.c.h.bf16 %v644_v51 }
  0x1d   :  { %211 = vperm.xlu0 %525, %v28_v10  }
  0x1e   :  { %v174_v10 = vadd.f32 %v173_v7, %v172_v63 }
  0x20   :  { %v200_v14 = vmax.f32 %v174_v10, 1.0 }
  0x24   :  { %231 = vperm.xlu1 %526, %v575_v6   ;;  %302 = vperm.xlu2 %527, %v196_v50   ;;  %v188_v6 = vadd.f32 %v187_v4, %v186_v60 }
  0x25   :  { %226 = vperm.xlu0 %525, %v563_v1   ;;  %v194_v1 = vrot.slane %v193_v11, 1 }
  0x26   :  { %v202_v13 = vmax.f32 %v188_v6, 1.0 }
  0x27   :  { %v195_v16 = vadd.f32 %v194_v1, %v193_v11 }
  0x29   :  { %v203_v17 = vmax.f32 %v195_v16, 1.0 }
  0x2c   :  { %312 = vperm.xlu1 %526, %v198_v0   ;;  %317 = vperm.xlu2 %527, %v199_v2  }
  0x2d   :  { %307 = vperm.xlu0 %525, %v197_v5  }
  0x34   :  { %327 = vperm.xlu1 %526, %v201_v12   ;;  %332 = vperm.xlu2 %527, %v202_v13  }
  0x35   :  { %322 = vperm.xlu0 %525, %v200_v14  }
  0x3c   :  { %236 = vperm.xlu1 %526, %v595_v19   ;;  %241 = vperm.xlu2 %527, %v588_v15   ;;  %v511_v19 = vunpack.c.l.bf16 %v621_v24 }
  0x3d   :  { %337 = vperm.xlu0 %525, %v203_v17  }
  0x5e   :  { %v65_v18 = vpop.permute.xlu2 %64 }
  0x5f   :  { %vm79_vm9 = vcmp.eq.s32.totalorder %v65_v18, 1 }
  0x60   :  { %v87_v15 = vsel %vm79_vm9, %v515_v23, -1e+30 }
  0x61   :  { %v115_v27 = vrot.slane %v87_v15, 4 }
  0x63   :  { %v116_v34 = vmax.f32 %v87_v15, %v115_v27 }
  0x65   :  { %v117_v39 = vrot.slane %v116_v34, 2 }
  0x66   :  { %v68_v20 = vpop.permute.xlu2 %67 }
  0x67   :  { %vm80_vm10 = vcmp.eq.s32.totalorder %v68_v20, 1  ;;  %v118_v50 = vmax.f32 %v116_v34, %v117_v39 }
  0x68   :  { %v88_v33 = vsel %vm80_vm10, %v516_v25, -1e+30 }
  0x69   :  { %v121_v38 = vrot.slane %v88_v33, 4  ;;  %v119_v60 = vrot.slane %v118_v50, 1 }
  0x6b   :  { %v122_v45 = vmax.f32 %v88_v33, %v121_v38  ;;  %v120_v10 = vmax.f32 %v118_v50, %v119_v60 }
  0x6d   :  { %v123_v55 = vrot.slane %v122_v45, 2 }
  0x6e   :  { %v207_v22 = vpop.permute.xlu2 %206 }
  0x6f   :  { %v124_v4 = vmax.f32 %v122_v45, %v123_v55  ;;  %v244_v7 = vmul.f32 %v507_v30, %v207_v22 }
  0x71   :  { %v125_v22 = vrot.slane %v124_v4, 1  ;;  %v252_v15 = vrot.slane %v244_v7, 4 }
  0x73   :  { %v253_v45 = vadd.f32 %v252_v15, %v244_v7 }
  0x75   :  { %v254_v60 = vrot.slane %v253_v45, 2 }
  0x76   :  { %v59_v28 = vpop.permute.xlu1 %58  ;;  %v222_v29 = vpop.permute.xlu2 %221 }
  0x77   :  { %vm77_vm11 = vcmp.eq.s32.totalorder %v59_v28, 1  ;;  %v53_v32 = vpop.permute.xlu0 %52  ;;  %v247_v11 = vmul.f32 %v512_v40, %v222_v29 }
  0x78   :  { %v85_v31 = vsel %vm77_vm11, %v511_v19, -1e+30  ;;  %vm75_vm12 = vcmp.eq.s32.totalorder %v53_v32, 1 }
  0x79   :  { %v83_v35 = vsel %vm75_vm12, %v507_v30, -1e+30  ;;  %v103_v36 = vrot.slane %v85_v31, 4  ;;  %v270_v29 = vrot.slane %v247_v11, 4 }
  0x7a   :  { %v91_v37 = vrot.slane %v83_v35, 4 }
  0x7b   :  { %v104_v43 = vmax.f32 %v85_v31, %v103_v36 }
  0x7c   :  { %v92_v44 = vmax.f32 %v83_v35, %v91_v37 }
  0x7d   :  { %v105_v52 = vrot.slane %v104_v43, 2 }
  0x7e   :  { %v62_v41 = vpop.permute.xlu1 %61  ;;  %v638_v42 = vpop.permute.xlu2 %302  ;;  %v93_v53 = vrot.slane %v92_v44, 2 }
  0x7f   :  { %vm78_vm13 = vcmp.eq.s32.totalorder %v62_v41, 1  ;;  %v56_v47 = vpop.permute.xlu0 %55  ;;  %528 = vrcp.f32 %v638_v42  ;;  %v106_v63 = vmax.f32 %v104_v43, %v105_v52  ;;  %vm345_vm10 = vweird.f32 %v638_v42 }
  0x80   :  { %v86_v46 = vsel %vm78_vm13, %v512_v40, -1e+30  ;;  %vm76_vm14 = vcmp.eq.s32.totalorder %v56_v47, 1  ;;  %v94_v0 = vmax.f32 %v92_v44, %v93_v53  ;;  %v271_v53 = vadd.f32 %v270_v29, %v247_v11 }
  0x81   :  { %v109_v49 = vrot.slane %v86_v46, 4  ;;  %v84_v56 = vsel %vm76_vm14, %v508_v48, -1e+30  ;;  %v107_v13 = vrot.slane %v106_v63, 1  ;;  %v349_v29 = vand.u32 2147483647, %v638_v42 }
  0x82   :  { %v97_v58 = vrot.slane %v84_v56, 4  ;;  %v95_v14 = vrot.slane %v94_v0, 1 }
  0x83   :  { %v110_v54 = vmax.f32 %v86_v46, %v109_v49  ;;  %v108_v34 = vmax.f32 %v106_v63, %v107_v13  ;;  %vm350_vm14 = vcmp.eq.f32.partialorder %v349_v29, 8.507059e+37 }
  0x84   :  { %v98_v2 = vmax.f32 %v84_v56, %v97_v58  ;;  %v96_v35 = vmax.f32 %v94_v0, %v95_v14  ;;  %v126_v58 = vmax.f32 %v124_v4, %v125_v22  ;;  %v255_v4 = vadd.f32 %v254_v60, %v253_v45 }
  0x85   :  { %v111_v57 = vrot.slane %v110_v54, 2  ;;  %v658_v17 = vpop.eup %528 }
  0x86   :  { %v74_v61 = vpop.permute.xlu1 %73  ;;  %v650_v62 = vpop.permute.xlu2 %317  ;;  %v99_v9 = vrot.slane %v98_v2, 2  ;;  %v341_v36 = vmul.f32 %v658_v17, %v638_v42  ;;  %vm346_vm8 = vweird.f32 %v658_v17  ;;  %v256_v15 = vrot.slane %v255_v4, 1 }
  0x87   :  { %vm82_vm15 = vcmp.eq.s32.totalorder %v74_v61, 1  ;;  %530 = vrcp.f32 %v650_v62  ;;  %v71_v5 = vpop.permute.xlu0 %70  ;;  %v112_v8 = vmax.f32 %v110_v54, %v111_v57  ;;  %vm699_vm11 = vmor %vm345_vm10, %vm346_vm8  ;;  %vm390_vm12 = vweird.f32 %v650_v62 }
  0x88   :  { %v90_v6 = vsel %vm82_vm15, %v520_v59, -1e+30  ;;  %vm81_vm0 = vcmp.eq.s32.totalorder %v71_v5, 1  ;;  %v100_v1 = vmax.f32 %v98_v2, %v99_v9  ;;  %v342_v54 = vsub.f32 1.0, %v341_v36 }
  0x89   :  { %v133_v12 = vrot.slane %v90_v6, 4  ;;  %v89_v16 = vsel %vm81_vm0, %v519_v3, -1e+30  ;;  %v113_v27 = vrot.slane %v112_v8, 1  ;;  %v272_v2 = vrot.slane %v271_v53, 2 }
  0x8a   :  { %v127_v20 = vrot.slane %v89_v16, 4  ;;  %v101_v28 = vrot.slane %v100_v1, 1  ;;  %v343_v5 = vmul.f32 %v658_v17, %v342_v54 }
  0x8b   :  { %v134_v18 = vmax.f32 %v90_v6, %v133_v12  ;;  %v114_v46 = vmax.f32 %v112_v8, %v113_v27 }
  0x8c   :  { %v128_v32 = vmax.f32 %v89_v16, %v127_v20  ;;  %v102_v37 = vmax.f32 %v100_v1, %v101_v28  ;;  %v273_v16 = vadd.f32 %v272_v2, %v271_v53  ;;  %v351_v20 = vand.u32 2147483648, %v638_v42 }
  0x8d   :  { %v660_v30 = vpop.eup %530  ;;  %v135_v31 = vrot.slane %v134_v18, 2 }
  0x8e   :  { %v217_v33 = vpop.permute.xlu1 %216  ;;  %v386_v39 = vmul.f32 %v660_v30, %v650_v62  ;;  %v129_v40 = vrot.slane %v128_v32, 2  ;;  %v668_v43 = vpop.permute.xlu2 %332  ;;  %v469_v47 = vsel %vm468_vm1, %v102_v37, %v96_v35  ;;  %vm391_vm9 = vweird.f32 %v660_v30 }
  0x8f   :  { %v136_v38 = vmax.f32 %v134_v18, %v135_v31  ;;  %v246_v41 = vmul.f32 %v511_v19, %v217_v33  ;;  %v212_v44 = vpop.permute.xlu0 %211  ;;  %v471_v49 = vsel %vm470_vm2, %v108_v34, %v469_v47  ;;  %532 = vrcp.f32 %v668_v43  ;;  %vm710_vm13 = vmor %vm390_vm12, %vm391_vm9 }
  0x90   :  { %v130_v52 = vmax.f32 %v128_v32, %v129_v40  ;;  %v473_v55 = vsel %vm472_vm3, %v114_v46, %v471_v49  ;;  %v387_v24 = vsub.f32 1.0, %v386_v39  ;;  %v245_v13 = vmul.f32 %v508_v48, %v212_v44 }
  0x91   :  { %v137_v50 = vrot.slane %v136_v38, 1  ;;  %v475_v56 = vsel %vm474_vm4, %v120_v10, %v473_v55  ;;  %v264_v57 = vrot.slane %v246_v41, 4  ;;  %v344_v18 = vadd.f32 %v658_v17, %v343_v5 }
  0x92   :  { %v131_v19 = vrot.slane %v130_v52, 1  ;;  %v477_v7 = vsel %vm476_vm5, %v126_v58, %v475_v56  ;;  %v388_v8 = vmul.f32 %v660_v30, %v387_v24  ;;  %v396_v31 = vand.u32 2147483648, %v650_v62 }
  0x93   :  { %v138_v61 = vmax.f32 %v136_v38, %v137_v50  ;;  %v265_v6 = vadd.f32 %v264_v57, %v246_v41  ;;  %v274_v34 = vrot.slane %v273_v16, 1  ;;  %v352_v35 = vor.u32 1.1754944e-38, %v351_v20 }
  0x94   :  { %v132_v63 = vmax.f32 %v130_v52, %v131_v19  ;;  %v389_v22 = vadd.f32 %v660_v30, %v388_v8  ;;  %v348_v42 = vsel %vm699_vm11, %v658_v17, %v344_v18  ;;  %v441_v17 = vand.u32 2147483648, %v668_v43 }
  0x95   :  { %v679_v10 = vpop.eup %532  ;;  %v266_v26 = vrot.slane %v265_v6, 2  ;;  %v353_v47 = vsel %vm350_vm14, %v352_v35, %v348_v42  ;;  %v257_v49 = vadd.f32 %v256_v15, %v255_v4  ;;  %v275_v54 = vadd.f32 %v274_v34, %v273_v16 }
  0x96   :  { %v232_v0 = vpop.permute.xlu1 %231  ;;  %v479_v9 = vsel %vm478_vm6, %v132_v63, %v477_v7  ;;  %v242_v1 = vpop.permute.xlu2 %241  ;;  %v431_v48 = vmul.f32 %v679_v10, %v668_v43  ;;  %v393_v37 = vsel %vm710_vm13, %v660_v30, %v389_v22  ;;  %v740_v63 = vor.u32 1.1754944e-38, %v441_v17 }
  0x97   :  { %v227_v11 = vpop.permute.xlu0 %226  ;;  %v481_v12 = vsel %vm854_vm7, %v138_v61, %v479_v9  ;;  %v249_v14 = vmul.f32 %v516_v25, %v232_v0  ;;  %v258_v25 = vrot.slane %v245_v13, 4  ;;  %v251_v27 = vmul.f32 %v520_v59, %v242_v1 }
  0x98   :  { %483 = vst [vmem:[%s853_s2] sm:$0xff] %v481_v12  ;;  %v394_v59 = vand.u32 2147483647, %v650_v62  ;;  %v267_v38 = vadd.f32 %v266_v26, %v265_v6  ;;  %v432_v39 = vsub.f32 1.0, %v431_v48  ;;  %v248_v45 = vmul.f32 %v515_v23, %v227_v11 }
  0x99   :  { %v282_v32 = vrot.slane %v249_v14, 4  ;;  %v259_v41 = vadd.f32 %v258_v25, %v245_v13  ;;  %v294_v44 = vrot.slane %v251_v27, 4  ;;  %v397_v62 = vor.u32 1.1754944e-38, %v396_v31 }
  0x9a   :  { %vm395_vm15 = vcmp.eq.f32.partialorder %v394_v59, 8.507059e+37  ;;  %v268_v50 = vrot.slane %v267_v38, 1  ;;  %v433_v52 = vmul.f32 %v679_v10, %v432_v39  ;;  %v276_v23 = vrot.slane %v248_v45, 4 }
  0x9b   :  { %v283_v46 = vadd.f32 %v282_v32, %v249_v14  ;;  %v398_v30 = vsel %vm395_vm15, %v397_v62, %v393_v37  ;;  %v260_v55 = vrot.slane %v259_v41, 2  ;;  %v295_v21 = vadd.f32 %v294_v44, %v251_v27 }
  0x9c   :  { %v731_v24 = vmul.f32 %v353_v47, %v257_v49  ;;  %v737_v60 = vmul.f32 %v398_v30, %v275_v54  ;;  %v439_v61 = vand.u32 2147483647, %v668_v43  ;;  %v743_v0 = vadd.f32 %v268_v50, %v267_v38 }
  0x9d   :  { %v284_v19 = vrot.slane %v283_v46, 2  ;;  %v746_v2 = vadd.f32 %v679_v10, %v433_v52  ;;  %v261_v9 = vadd.f32 %v260_v55, %v259_v41  ;;  %v296_v6 = vrot.slane %v295_v21, 2 }
  0x9e   :  { %v706_v33 = vpop.permute.xlu1 %312  ;;  %v277_v11 = vadd.f32 %v276_v23, %v248_v45  ;;  %vm436_vm11 = vweird.f32 %v679_v10 }
  0x9f   :  { %534 = vrcp.f32 %v706_v33  ;;  %v722_v40 = vpop.permute.xlu0 %307  ;;  %v752_v4 = vadd.f32 %v284_v19, %v283_v46  ;;  %v379_v13 = vand.u32 2147483647, %v706_v33  ;;  %v381_v1 = vand.u32 2147483648, %v706_v33 }
  0xa0   :  { %536 = vrcp.f32 %v722_v40  ;;  %v364_v16 = vand.u32 2147483647, %v722_v40  ;;  %v366_v18 = vand.u32 2147483648, %v722_v40  ;;  %vm375_vm8 = vweird.f32 %v706_v33 }
  0xa1   :  { %v262_v48 = vrot.slane %v261_v9, 1  ;;  %v764_v15 = vadd.f32 %v296_v6, %v295_v21  ;;  %v278_v25 = vrot.slane %v277_v11, 2  ;;  %vm360_vm10 = vweird.f32 %v722_v40 }
  0xa2   :  { %v286_v27 = vrot.slane %v752_v4, 1  ;;  %vm775_vm13 = vcmp.eq.f32.partialorder %v379_v13, 8.507059e+37  ;;  %v382_v35 = vor.u32 1.1754944e-38, %v381_v1  ;;  %vm365_vm15 = vcmp.eq.f32.partialorder %v364_v16, 8.507059e+37 }
  0xa3   :  { %v367_v36 = vor.u32 1.1754944e-38, %v366_v18  ;;  %v279_v41 = vadd.f32 %v278_v25, %v277_v11  ;;  %v263_v62 = vadd.f32 %v262_v48, %v261_v9  ;;  %v298_v23 = vrot.slane %v764_v15, 1 }
  0xa4   :  { %v287_v48 = vadd.f32 %v286_v27, %v752_v4 }
  0xa5   :  { %v729_v53 = vpop.eup %534  ;;  %v280_v54 = vrot.slane %v279_v41, 1  ;;  %v299_v27 = vadd.f32 %v298_v23, %v764_v15 }
  0xa6   :  { %v371_v56 = vmul.f32 %v729_v53, %v706_v33  ;;  %v735_v57 = vpop.permute.xlu1 %327  ;;  %v537_v58 = vpop.eup %536  ;;  %vm376_vm0 = vweird.f32 %v729_v53 }
  0xa7   :  { %538 = vrcp.f32 %v735_v57  ;;  %v356_v7 = vmul.f32 %v537_v58, %v722_v40  ;;  %v749_v8 = vpop.permute.xlu0 %322  ;;  %vm361_vm9 = vweird.f32 %v537_v58  ;;  %vm771_vm12 = vmor %vm375_vm8, %vm376_vm0  ;;  %vm435_vm0 = vweird.f32 %v668_v43 }
  0xa8   :  { %v372_v5 = vsub.f32 1.0, %v371_v56  ;;  %540 = vrcp.f32 %v749_v8  ;;  %vm362_vm14 = vmor %vm360_vm10, %vm361_vm9  ;;  %v409_v46 = vand.u32 2147483647, %v749_v8  ;;  %v411_v17 = vand.u32 2147483648, %v749_v8 }
  0xa9   :  { %v357_v14 = vsub.f32 1.0, %v356_v7  ;;  %vm798_vm9 = vcmp.eq.f32.partialorder %v439_v61, 8.507059e+37  ;;  %v426_v55 = vand.u32 2147483648, %v735_v57  ;;  %v424_v56 = vand.u32 2147483647, %v735_v57 }
  0xaa   :  { %v373_v12 = vmul.f32 %v729_v53, %v372_v5  ;;  %vm410_vm7 = vcmp.eq.f32.partialorder %v409_v46, 8.507059e+37  ;;  %v412_v7 = vor.u32 1.1754944e-38, %v411_v17 }
  0xab   :  { %v358_v22 = vmul.f32 %v537_v58, %v357_v14  ;;  %v427_v13 = vor.u32 1.1754944e-38, %v426_v55 }
  0xac   :  { %v374_v20 = vadd.f32 %v729_v53, %v373_v12 }
  0xad   :  { %v762_v26 = vpop.eup %538  ;;  %v359_v31 = vadd.f32 %v537_v58, %v358_v22 }
  0xae   :  { %v416_v32 = vmul.f32 %v762_v26, %v735_v57  ;;  %v237_v33 = vpop.permute.xlu1 %236  ;;  %v541_v34 = vpop.eup %540  ;;  %v378_v42 = vsel %vm771_vm12, %v729_v53, %v374_v20  ;;  %vm421_vm8 = vweird.f32 %v762_v26  ;;  %vm420_vm12 = vweird.f32 %v735_v57 }
  0xaf   :  { %v250_v59 = vmul.f32 %v519_v3, %v237_v33  ;;  %v363_v37 = vsel %vm362_vm14, %v537_v58, %v359_v31  ;;  %v401_v39 = vmul.f32 %v541_v34, %v749_v8  ;;  %v789_v40 = vpop.permute.xlu0 %337  ;;  %v383_v47 = vsel %vm775_vm13, %v382_v35, %v378_v42  ;;  %vm806_vm13 = vmor %vm420_vm12, %vm421_vm8 }
  0xb0   :  { %v417_v38 = vsub.f32 1.0, %v416_v32  ;;  %v368_v44 = vsel %vm365_vm15, %v367_v36, %v363_v37  ;;  %542 = vrcp.f32 %v789_v40  ;;  %vm406_vm10 = vweird.f32 %v541_v34  ;;  %vm823_vm8 = vmor %vm435_vm0, %vm436_vm11 }
  0xb1   :  { %v288_v45 = vrot.slane %v250_v59, 4  ;;  %v402_v3 = vsub.f32 1.0, %v401_v39  ;;  %v369_v50 = vmul.f32 %v368_v44, %v263_v62  ;;  %vm405_vm14 = vweird.f32 %v749_v8 }
  0xb2   :  { %v418_v51 = vmul.f32 %v762_v26, %v417_v38  ;;  %v384_v5 = vmul.f32 %v383_v47, %v743_v0  ;;  %vm407_vm15 = vmor %vm405_vm14, %vm406_vm10  ;;  %v281_v8 = vadd.f32 %v280_v54, %v279_v41  ;;  %v456_v18 = vand.u32 2147483648, %v789_v40 }
  0xb3   :  { %v289_v49 = vadd.f32 %v288_v45, %v250_v59  ;;  %v403_v53 = vmul.f32 %v541_v34, %v402_v3  ;;  %v492_v6 = vsel %vm468_vm1, %v369_v50, %v731_v24  ;;  %vm425_vm1 = vcmp.eq.f32.partialorder %v424_v56, 8.507059e+37 }
  0xb4   :  { %v419_v52 = vadd.f32 %v762_v26, %v418_v51  ;;  %v438_v24 = vsel %vm823_vm8, %v679_v10, %v746_v2  ;;  %v493_v20 = vsel %vm470_vm2, %v384_v5, %v492_v6  ;;  %v454_v28 = vand.u32 2147483647, %v789_v40 }
  0xb5   :  { %v290_v21 = vrot.slane %v289_v49, 2  ;;  %v404_v58 = vadd.f32 %v541_v34, %v403_v53  ;;  %v443_v10 = vsel %vm798_vm9, %v740_v63, %v438_v24  ;;  %v494_v29 = vsel %vm472_vm3, %v737_v60, %v493_v20 }
  0xb6   :  { %v543_v61 = vpop.eup %542  ;;  %v423_v11 = vsel %vm806_vm13, %v762_v26, %v419_v52  ;;  %vm450_vm2 = vweird.f32 %v789_v40  ;;  %v457_v4 = vor.u32 1.1754944e-38, %v456_v18  ;;  %vm455_vm0 = vcmp.eq.f32.partialorder %v454_v28, 8.507059e+37 }
  0xb7   :  { %v291_v9 = vadd.f32 %v290_v21, %v289_v49  ;;  %v408_v12 = vsel %vm407_vm15, %v541_v34, %v404_v58  ;;  %v446_v57 = vmul.f32 %v543_v61, %v789_v40  ;;  %v428_v43 = vsel %vm425_vm1, %v427_v13, %v423_v11 }
  0xb8   :  { %v413_v14 = vsel %vm410_vm7, %v412_v7, %v408_v12  ;;  %vm451_vm7 = vweird.f32 %v543_v61  ;;  %v429_v2 = vmul.f32 %v428_v43, %v287_v48  ;;  %vm869_vm9 = vcmask 1047559  }
  0xb9   :  { %v292_v1 = vrot.slane %v291_v9, 1  ;;  %v447_v16 = vsub.f32 1.0, %v446_v57  ;;  %v414_v22 = vmul.f32 %v413_v14, %v281_v8  ;;  %vm452_vm11 = vmor %vm450_vm2, %vm451_vm7 }
  0xbb   :  { %v293_v26 = vadd.f32 %v292_v1, %v291_v9  ;;  %v448_v25 = vmul.f32 %v543_v61, %v447_v16  ;;  %v495_v32 = vsel %vm474_vm4, %v414_v22, %v494_v29 }
  0xbc   :  { %v496_v36 = vsel %vm476_vm5, %v429_v2, %v495_v32 }
  0xbd   :  { %v449_v31 = vadd.f32 %v543_v61, %v448_v25  ;;  %v444_v33 = vmul.f32 %v443_v10, %v293_v26 }
  0xbf   :  { %v453_v34 = vsel %vm452_vm11, %v543_v61, %v449_v31  ;;  %v497_v59 = vsel %vm478_vm6, %v444_v33, %v496_v36 }
  0xc0   :  { %v458_v35 = vsel %vm455_vm0, %v457_v4, %v453_v34 }
  0xc1   :  { %v459_v63 = vmul.f32 %v458_v35, %v299_v27 }
  0xc3   :  { %v498_v60 = vsel %vm869_vm9, %v459_v63, %v497_v59 }
  0xc4   :  { %500 = vst [vmem:[%s853_s2 + $0x8] sm:$0xff] %v498_v60 }

// kernel: model_forward.22
= control target key start
LH: loop header
LB: loop body
LE: loop exit
PB: predicated region body
PF: predicated region fallthrough
CT: control target
= control target key end

     0   :  { %vm911_vm13 = vcmask 7168   ;;  %s4581_s2 = inlined_call_operand.vmem [shape: bf16[384,512], index: 2, kind: input, shape index: {}]   ;;  %s4582_s3 = inlined_call_operand.vmem [shape: f32[1,512], index: 3, kind: input, shape index: {}]   ;;  %s4583_s0 = inlined_call_operand.vmem [shape: bf16[8,8,128], index: 0, kind: input, shape index: {}]   ;;  %s4584_s1 = inlined_call_operand.vmem [shape: f32[8,8,1], index: 1, kind: input, shape index: {}]   ;;  %s4585_s4 = inlined_call_operand.vmem [shape: f32[8,256], index: 4, kind: output, shape index: {}]  }
   0x1   :  { %v2433_v0 = vld [vmem:[%s4581_s2 + $0xe0] sm:$0xf]  ;;  %v2742_v1 = vld [vmem:[%s4581_s2 + $0xec] sm:$0xf0]  ;;  %v2740_v9 = vld [vmem:[%s4581_s2 + $0xe4] sm:$0xf] }
   0x2   :  { %v2561_v2 = vld [vmem:[%s4581_s2 + $0x1e0] sm:$0xf]  ;;  %v3020_v3 = vor.u32 %v2742_v1, %v2433_v0  ;;  %v2774_v4 = vld [vmem:[%s4581_s2 + $0x1ec] sm:$0xf0]  ;;  %v2435_v10 = vld [vmem:[%s4581_s2 + $0xf0] sm:$0xf0] }
   0x3   :  { %v2689_v5 = vld [vmem:[%s4581_s2 + $0x2e0] sm:$0xf]  ;;  %v2806_v6 = vld [vmem:[%s4581_s2 + $0x2ec] sm:$0xf0]  ;;  %v3031_v7 = vor.u32 %v2774_v4, %v2561_v2  ;;  %v3045_v12 = vor.u32 %v2740_v9, %v2435_v10  ;;  %v2736_v20 = vld [vmem:[%s4581_s2 + $0xc4] sm:$0xf] }
   0x4   :  { %v3033_v8 = vor.u32 %v2806_v6, %v2689_v5  ;;  %v2417_v11 = vld [vmem:[%s4581_s2 + $0xc0] sm:$0xf]  ;;  %628 = vmatpush.bf16.msra.mxu0 %v3020_v3  ;;  %v2738_v13 = vld [vmem:[%s4581_s2 + $0xcc] sm:$0xf0]  ;;  %v2419_v22 = vld [vmem:[%s4581_s2 + $0xd0] sm:$0xf0] }
   0x5   :  { %4740 = vst [vmem:[#allocation2_spill] sm:$0xff] %v3031_v7  ;;  %v2545_v14 = vld [vmem:[%s4581_s2 + $0x1c0] sm:$0xf]  ;;  %v2770_v15 = vld [vmem:[%s4581_s2 + $0x1cc] sm:$0xf0]  ;;  %641 = vmatpush.bf16.msra.mxu1 %v3031_v7  ;;  %v3058_v16 = vor.u32 %v2738_v13, %v2417_v11  ;;  %667 = vmatpush.bf16.msra.mxu3 %v3045_v12  ;;  %v3083_v25 = vor.u32 %v2736_v20, %v2419_v22 }
   0x6   :  { %654 = vmatpush.bf16.msra.mxu2 %v3033_v8  ;;  %v3060_v17 = vor.u32 %v2770_v15, %v2545_v14  ;;  %v2673_v18 = vld [vmem:[%s4581_s2 + $0x2c0] sm:$0xf]  ;;  %v2802_v19 = vld [vmem:[%s4581_s2 + $0x2cc] sm:$0xf0]  ;;  %v2732_v31 = vld [vmem:[%s4581_s2 + $0xa4] sm:$0xf] }
   0x7   :  { %v3072_v21 = vor.u32 %v2802_v19, %v2673_v18  ;;  %v2401_v23 = vld [vmem:[%s4581_s2 + $0xa0] sm:$0xf]  ;;  %v2734_v24 = vld [vmem:[%s4581_s2 + $0xac] sm:$0xf0]  ;;  %v2403_v32 = vld [vmem:[%s4581_s2 + $0xb0] sm:$0xf0] }
   0x8   :  { %4741 = vst [vmem:[#allocation3_spill] sm:$0xff] %v3060_v17  ;;  %v2529_v26 = vld [vmem:[%s4581_s2 + $0x1a0] sm:$0xf]  ;;  %v2766_v27 = vld [vmem:[%s4581_s2 + $0x1ac] sm:$0xf0]  ;;  %629 = vmatpush.bf16.msra.mxu0 %v3058_v16  ;;  %v3095_v29 = vor.u32 %v2734_v24, %v2401_v23  ;;  %v3122_v38 = vor.u32 %v2732_v31, %v2403_v32 }
   0x9   :  { %v2657_v28 = vld [vmem:[%s4581_s2 + $0x2a0] sm:$0xf]  ;;  %v2798_v30 = vld [vmem:[%s4581_s2 + $0x2ac] sm:$0xf0]  ;;  %642 = vmatpush.bf16.msra.mxu1 %v3060_v17  ;;  %v3108_v33 = vor.u32 %v2766_v27, %v2529_v26  ;;  %668 = vmatpush.bf16.msra.mxu3 %v3083_v25  ;;  %v2728_v42 = vld [vmem:[%s4581_s2 + $0x84] sm:$0xf] }
   0xa   :  { %655 = vmatpush.bf16.msra.mxu2 %v3072_v21  ;;  %v3110_v34 = vor.u32 %v2798_v30, %v2657_v28  ;;  %v2385_v35 = vld [vmem:[%s4581_s2 + $0x80] sm:$0xf]  ;;  %v2730_v36 = vld [vmem:[%s4581_s2 + $0x8c] sm:$0xf0]  ;;  %v2387_v43 = vld [vmem:[%s4581_s2 + $0x90] sm:$0xf0] }
   0xb   :  { %4742 = vst [vmem:[#allocation4_spill] sm:$0xff] %v3108_v33  ;;  %v2513_v37 = vld [vmem:[%s4581_s2 + $0x180] sm:$0xf]  ;;  %v2762_v39 = vld [vmem:[%s4581_s2 + $0x18c] sm:$0xf0]  ;;  %v3140_v44 = vor.u32 %v2730_v36, %v2385_v35  ;;  %v3158_v50 = vor.u32 %v2728_v42, %v2387_v43 }
   0xc   :  { %v2641_v40 = vld [vmem:[%s4581_s2 + $0x280] sm:$0xf]  ;;  %v2794_v41 = vld [vmem:[%s4581_s2 + $0x28c] sm:$0xf0]  ;;  %630 = vmatpush.bf16.msra.mxu0 %v3095_v29  ;;  %v3144_v45 = vor.u32 %v2762_v39, %v2513_v37  ;;  %v2724_v54 = vld [vmem:[%s4581_s2 + $0x64] sm:$0xf] }
   0xd   :  { %643 = vmatpush.bf16.msra.mxu1 %v3108_v33  ;;  %v3146_v46 = vor.u32 %v2794_v41, %v2641_v40  ;;  %v2369_v47 = vld [vmem:[%s4581_s2 + $0x60] sm:$0xf]  ;;  %v2726_v48 = vld [vmem:[%s4581_s2 + $0x6c] sm:$0xf0]  ;;  %669 = vmatpush.bf16.msra.mxu3 %v3122_v38  ;;  %v2371_v55 = vld [vmem:[%s4581_s2 + $0x70] sm:$0xf0] }
   0xe   :  { %656 = vmatpush.bf16.msra.mxu2 %v3110_v34  ;;  %4743 = vst [vmem:[#allocation5_spill] sm:$0xff] %v3144_v45  ;;  %v2497_v49 = vld [vmem:[%s4581_s2 + $0x160] sm:$0xf]  ;;  %v2758_v51 = vld [vmem:[%s4581_s2 + $0x16c] sm:$0xf0]  ;;  %v3176_v56 = vor.u32 %v2726_v48, %v2369_v47  ;;  %v3194_v62 = vor.u32 %v2724_v54, %v2371_v55 }
   0xf   :  { %v2625_v52 = vld [vmem:[%s4581_s2 + $0x260] sm:$0xf]  ;;  %v2790_v53 = vld [vmem:[%s4581_s2 + $0x26c] sm:$0xf0]  ;;  %v3180_v57 = vor.u32 %v2758_v51, %v2497_v49  ;;  %v2720_v2 = vld [vmem:[%s4581_s2 + $0x44] sm:$0xf] }
  0x10   :  { %631 = vmatpush.bf16.msra.mxu0 %v3140_v44  ;;  %v3182_v58 = vor.u32 %v2790_v53, %v2625_v52  ;;  %v2353_v59 = vld [vmem:[%s4581_s2 + $0x40] sm:$0xf]  ;;  %v2722_v60 = vld [vmem:[%s4581_s2 + $0x4c] sm:$0xf0]  ;;  %v2355_v4 = vld [vmem:[%s4581_s2 + $0x50] sm:$0xf0] }
  0x11   :  { %644 = vmatpush.bf16.msra.mxu1 %v3144_v45  ;;  %4744 = vst [vmem:[#allocation6_spill] sm:$0xff] %v3180_v57  ;;  %v2481_v61 = vld [vmem:[%s4581_s2 + $0x140] sm:$0xf]  ;;  %670 = vmatpush.bf16.msra.mxu3 %v3158_v50  ;;  %v2754_v63 = vld [vmem:[%s4581_s2 + $0x14c] sm:$0xf0]  ;;  %v3212_v5 = vor.u32 %v2722_v60, %v2353_v59  ;;  %v3230_v14 = vor.u32 %v2720_v2, %v2355_v4 }
  0x12   :  { %657 = vmatpush.bf16.msra.mxu2 %v3146_v46  ;;  %v2609_v0 = vld [vmem:[%s4581_s2 + $0x240] sm:$0xf]  ;;  %v2786_v1 = vld [vmem:[%s4581_s2 + $0x24c] sm:$0xf0]  ;;  %v3216_v6 = vor.u32 %v2754_v63, %v2481_v61  ;;  %v2716_v20 = vld [vmem:[%s4581_s2 + $0x24] sm:$0xf] }
  0x13   :  { %v3218_v9 = vor.u32 %v2786_v1, %v2609_v0  ;;  %v2337_v10 = vld [vmem:[%s4581_s2 + $0x20] sm:$0xf]  ;;  %v2718_v11 = vld [vmem:[%s4581_s2 + $0x2c] sm:$0xf0]  ;;  %v2339_v22 = vld [vmem:[%s4581_s2 + $0x30] sm:$0xf0] }
  0x14   :  { %632 = vmatpush.bf16.msra.mxu0 %v3176_v56  ;;  %4745 = vst [vmem:[#allocation7_spill] sm:$0xff] %v3216_v6  ;;  %v2465_v13 = vld [vmem:[%s4581_s2 + $0x120] sm:$0xf]  ;;  %v2750_v15 = vld [vmem:[%s4581_s2 + $0x12c] sm:$0xf0]  ;;  %v3248_v23 = vor.u32 %v2718_v11, %v2337_v10  ;;  %v3272_v35 = vor.u32 %v2716_v20, %v2339_v22 }
  0x15   :  { %645 = vmatpush.bf16.msra.mxu1 %v3180_v57  ;;  %671 = vmatpush.bf16.msra.mxu3 %v3194_v62  ;;  %v2593_v18 = vld [vmem:[%s4581_s2 + $0x220] sm:$0xf]  ;;  %v2782_v19 = vld [vmem:[%s4581_s2 + $0x22c] sm:$0xf0]  ;;  %v3258_v27 = vor.u32 %v2750_v15, %v2465_v13  ;;  %v2712_v37 = vld [vmem:[%s4581_s2 + $0x4] sm:$0xf] }
  0x16   :  { %658 = vmatpush.bf16.msra.mxu2 %v3182_v58  ;;  %4746 = vst [vmem:[#allocation8_spill] sm:$0xff] %v3248_v23  ;;  %v2321_v24 = vld [vmem:[%s4581_s2] sm:$0xf]  ;;  %v2714_v26 = vld [vmem:[%s4581_s2 + $0xc] sm:$0xf0]  ;;  %v3260_v28 = vor.u32 %v2782_v19, %v2593_v18 }
  0x17   :  { %4747 = vst [vmem:[#allocation9_spill] sm:$0xff] %v3258_v27  ;;  %v2449_v30 = vld [vmem:[%s4581_s2 + $0x100] sm:$0xf]  ;;  %v2746_v31 = vld [vmem:[%s4581_s2 + $0x10c] sm:$0xf0]  ;;  %v3293_v43 = vor.u32 %v2714_v26, %v2321_v24 }
  0x18   :  { %633 = vmatpush.bf16.msra.mxu0 %v3212_v5  ;;  %v2577_v32 = vld [vmem:[%s4581_s2 + $0x200] sm:$0xf]  ;;  %4748 = vst [vmem:[#allocation10_spill] sm:$0xff] %v3272_v35  ;;  %v2778_v36 = vld [vmem:[%s4581_s2 + $0x20c] sm:$0xf0]  ;;  %v3306_v51 = vor.u32 %v2746_v31, %v2449_v30 }
  0x19   :  { %646 = vmatpush.bf16.msra.mxu1 %v3216_v6  ;;  %672 = vmatpush.bf16.msra.mxu3 %v3230_v14  ;;  %v2323_v39 = vld [vmem:[%s4581_s2 + $0x10] sm:$0xf0]  ;;  %v2772_v40 = vld [vmem:[%s4581_s2 + $0x1e4] sm:$0xf]  ;;  %4749 = vst [vmem:[#allocation11_spill] sm:$0xff] %v3293_v43  ;;  %v3308_v52 = vor.u32 %v2778_v36, %v2577_v32 }
  0x1a   :  { %659 = vmatpush.bf16.msra.mxu2 %v3218_v9  ;;  %v2563_v41 = vld [vmem:[%s4581_s2 + $0x1f0] sm:$0xf0]  ;;  %v2804_v42 = vld [vmem:[%s4581_s2 + $0x2e4] sm:$0xf]  ;;  %v2441_v48 = vld [vmem:[%s4581_s2 + $0xe8] sm:$0xf]  ;;  %v3317_v55 = vor.u32 %v2712_v37, %v2323_v39 }
  0x1b   :  { %v2691_v47 = vld [vmem:[%s4581_s2 + $0x2f0] sm:$0xf0]  ;;  %v2743_v49 = vld [vmem:[%s4581_s2 + $0xf4] sm:$0xf0]  ;;  %4750 = vst [vmem:[#allocation12_spill] sm:$0xff] %v3306_v51  ;;  %v3319_v59 = vor.u32 %v2772_v40, %v2563_v41  ;;  %v4586_v37 = vmov 0.0|0.0  }
  0x1c   :  { %634 = vmatpush.bf16.msra.mxu0 %v3248_v23  ;;  %v2569_v53 = vld [vmem:[%s4581_s2 + $0x1e8] sm:$0xf]  ;;  %v2775_v54 = vld [vmem:[%s4581_s2 + $0x1f4] sm:$0xf0]  ;;  %4751 = vst [vmem:[#allocation13_spill] sm:$0xff] %v3317_v55  ;;  %v3321_v60 = vor.u32 %v2804_v42, %v2691_v47  ;;  %v3323_v61 = vor.u32 %v2743_v49, %v2441_v48 }
  0x1d   :  { %647 = vmatpush.bf16.msra.mxu1 %v3258_v27  ;;  %673 = vmatpush.bf16.msra.mxu3 %v3272_v35  ;;  %4752 = vst [vmem:[#allocation14_spill] sm:$0xff] %v3319_v59  ;;  %v2768_v63 = vld [vmem:[%s4581_s2 + $0x1c4] sm:$0xf]  ;;  %v2547_v0 = vld [vmem:[%s4581_s2 + $0x1d0] sm:$0xf0]  ;;  %v3335_v2 = vor.u32 %v2775_v54, %v2569_v53 }
  0x1e   :  { %660 = vmatpush.bf16.msra.mxu2 %v3260_v28  ;;  %4753 = vst [vmem:[#allocation15_spill] sm:$0xff] %v3321_v60  ;;  %v2800_v1 = vld [vmem:[%s4581_s2 + $0x2c4] sm:$0xf]  ;;  %v2675_v4 = vld [vmem:[%s4581_s2 + $0x2d0] sm:$0xf0]  ;;  %v3356_v18 = vor.u32 %v2768_v63, %v2547_v0 }
  0x1f   :  { %4754 = vst [vmem:[#allocation16_spill] sm:$0xff] %v3335_v2  ;;  %v2425_v10 = vld [vmem:[%s4581_s2 + $0xc8] sm:$0xf]  ;;  %v2739_v11 = vld [vmem:[%s4581_s2 + $0xd4] sm:$0xf0]  ;;  %v3360_v19 = vor.u32 %v2800_v1, %v2675_v4 }
  0x20   :  { %635 = vmatpush.bf16.msra.mxu0 %v3293_v43  ;;  %v2553_v13 = vld [vmem:[%s4581_s2 + $0x1c8] sm:$0xf]  ;;  %v2771_v15 = vld [vmem:[%s4581_s2 + $0x1d4] sm:$0xf0]  ;;  %4755 = vst [vmem:[#allocation17_spill] sm:$0xff] %v3356_v18  ;;  %v3362_v20 = vor.u32 %v2739_v11, %v2425_v10 }
  0x21   :  { %648 = vmatpush.bf16.msra.mxu1 %v3306_v51  ;;  %674 = vmatpush.bf16.msra.mxu3 %v3317_v55  ;;  %4756 = vst [vmem:[#allocation18_spill] sm:$0xff] %v3360_v19  ;;  %v2764_v22 = vld [vmem:[%s4581_s2 + $0x1a4] sm:$0xf]  ;;  %v2531_v24 = vld [vmem:[%s4581_s2 + $0x1b0] sm:$0xf0]  ;;  %v3374_v30 = vor.u32 %v2771_v15, %v2553_v13 }
  0x22   :  { %661 = vmatpush.bf16.msra.mxu2 %v3308_v52  ;;  %v2796_v26 = vld [vmem:[%s4581_s2 + $0x2a4] sm:$0xf]  ;;  %v2659_v31 = vld [vmem:[%s4581_s2 + $0x2b0] sm:$0xf0]  ;;  %v2409_v32 = vld [vmem:[%s4581_s2 + $0xa8] sm:$0xf]  ;;  %v3395_v41 = vor.u32 %v2764_v22, %v2531_v24 }
  0x23   :  { %4757 = vst [vmem:[#allocation19_spill] sm:$0xff] %v3374_v30  ;;  %v2735_v36 = vld [vmem:[%s4581_s2 + $0xb4] sm:$0xf0]  ;;  %636 = vmatmul.bf16.vlgmr.msra.gmra.mxu0 %v4586_v37  ;;  %v2537_v39 = vld [vmem:[%s4581_s2 + $0x1a8] sm:$0xf]  ;;  %v3400_v42 = vor.u32 %v2796_v26, %v2659_v31 }
  0x24   :  { %680 = vmatpush.bf16.msrb.mxu0 %v3319_v59  ;;  %v2767_v40 = vld [vmem:[%s4581_s2 + $0x1b4] sm:$0xf0]  ;;  %649 = vmatmul.bf16.vlgmr.msra.gmra.mxu1 %v4586_v37  ;;  %4758 = vst [vmem:[#allocation20_spill] sm:$0xff] %v3395_v41  ;;  %v3402_v47 = vor.u32 %v2735_v36, %v2409_v32  ;;  %v2760_v48 = vld [vmem:[%s4581_s2 + $0x184] sm:$0xf] }
  0x25   :  { %693 = vmatpush.bf16.msrb.mxu1 %v3321_v60  ;;  %719 = vmatpush.bf16.msrb.mxu3 %v3335_v2  ;;  %4759 = vst [vmem:[#allocation21_spill] sm:$0xff] %v3400_v42  ;;  %v2515_v49 = vld [vmem:[%s4581_s2 + $0x190] sm:$0xf0]  ;;  %v2792_v53 = vld [vmem:[%s4581_s2 + $0x284] sm:$0xf]  ;;  %v3414_v54 = vor.u32 %v2767_v40, %v2537_v39 }
  0x26   :  { %706 = vmatpush.bf16.msrb.mxu2 %v3323_v61  ;;  %675 = vmatmul.bf16.vlgmr.msra.gmra.mxu3 %v4586_v37  ;;  %v2643_v63 = vld [vmem:[%s4581_s2 + $0x290] sm:$0xf0]  ;;  %v2393_v0 = vld [vmem:[%s4581_s2 + $0x88] sm:$0xf]  ;;  %v2731_v1 = vld [vmem:[%s4581_s2 + $0x94] sm:$0xf0]  ;;  %v3432_v11 = vor.u32 %v2760_v48, %v2515_v49 }
  0x27   :  { %662 = vmatmul.bf16.vlgmr.msra.gmra.mxu2 %v4586_v37  ;;  %4760 = vst [vmem:[#allocation22_spill] sm:$0xff] %v3414_v54  ;;  %v2521_v4 = vld [vmem:[%s4581_s2 + $0x188] sm:$0xf]  ;;  %v2763_v10 = vld [vmem:[%s4581_s2 + $0x194] sm:$0xf0]  ;;  %v3436_v13 = vor.u32 %v2792_v53, %v2643_v63  ;;  %v3438_v15 = vor.u32 %v2731_v1, %v2393_v0 }
  0x28   :  { %681 = vmatpush.bf16.msrb.mxu0 %v3356_v18  ;;  %4761 = vst [vmem:[#allocation23_spill] sm:$0xff] %v3432_v11  ;;  %v2756_v22 = vld [vmem:[%s4581_s2 + $0x164] sm:$0xf]  ;;  %v2499_v24 = vld [vmem:[%s4581_s2 + $0x170] sm:$0xf0]  ;;  %v3450_v31 = vor.u32 %v2763_v10, %v2521_v4 }
  0x29   :  { %694 = vmatpush.bf16.msrb.mxu1 %v3360_v19  ;;  %720 = vmatpush.bf16.msrb.mxu3 %v3374_v30  ;;  %4762 = vst [vmem:[#allocation24_spill] sm:$0xff] %v3436_v13  ;;  %v2788_v26 = vld [vmem:[%s4581_s2 + $0x264] sm:$0xf]  ;;  %v2627_v32 = vld [vmem:[%s4581_s2 + $0x270] sm:$0xf0]  ;;  %v3468_v49 = vor.u32 %v2756_v22, %v2499_v24 }
  0x2a   :  { %707 = vmatpush.bf16.msrb.mxu2 %v3362_v20  ;;  %4763 = vst [vmem:[#allocation25_spill] sm:$0xff] %v3438_v15  ;;  %v2377_v36 = vld [vmem:[%s4581_s2 + $0x68] sm:$0xf]  ;;  %v2727_v39 = vld [vmem:[%s4581_s2 + $0x74] sm:$0xf0]  ;;  %v3472_v53 = vor.u32 %v2788_v26, %v2627_v32 }
  0x2b   :  { %4764 = vst [vmem:[#allocation26_spill] sm:$0xff] %v3450_v31  ;;  %v2505_v40 = vld [vmem:[%s4581_s2 + $0x168] sm:$0xf]  ;;  %v2759_v48 = vld [vmem:[%s4581_s2 + $0x174] sm:$0xf0]  ;;  %v3474_v63 = vor.u32 %v2727_v39, %v2377_v36 }
  0x2c   :  { %682 = vmatpush.bf16.msrb.mxu0 %v3395_v41  ;;  %4765 = vst [vmem:[#allocation27_spill] sm:$0xff] %v3468_v49  ;;  %v2752_v0 = vld [vmem:[%s4581_s2 + $0x144] sm:$0xf]  ;;  %v2483_v1 = vld [vmem:[%s4581_s2 + $0x150] sm:$0xf0]  ;;  %v3486_v10 = vor.u32 %v2759_v48, %v2505_v40 }
  0x2d   :  { %695 = vmatpush.bf16.msrb.mxu1 %v3400_v42  ;;  %721 = vmatpush.bf16.msrb.mxu3 %v3414_v54  ;;  %4766 = vst [vmem:[#allocation28_spill] sm:$0xff] %v3472_v53  ;;  %v2784_v4 = vld [vmem:[%s4581_s2 + $0x244] sm:$0xf]  ;;  %v2611_v22 = vld [vmem:[%s4581_s2 + $0x250] sm:$0xf0]  ;;  %v3504_v39 = vor.u32 %v2752_v0, %v2483_v1 }
  0x2e   :  { %708 = vmatpush.bf16.msrb.mxu2 %v3402_v47  ;;  %4767 = vst [vmem:[#allocation29_spill] sm:$0xff] %v3474_v63  ;;  %v2361_v24 = vld [vmem:[%s4581_s2 + $0x48] sm:$0xf]  ;;  %v2723_v26 = vld [vmem:[%s4581_s2 + $0x54] sm:$0xf0]  ;;  %v3508_v40 = vor.u32 %v2784_v4, %v2611_v22 }
  0x2f   :  { %4768 = vst [vmem:[#allocation30_spill] sm:$0xff] %v3486_v10  ;;  %v2489_v32 = vld [vmem:[%s4581_s2 + $0x148] sm:$0xf]  ;;  %v2755_v36 = vld [vmem:[%s4581_s2 + $0x154] sm:$0xf0]  ;;  %v3510_v48 = vor.u32 %v2723_v26, %v2361_v24 }
  0x30   :  { %683 = vmatpush.bf16.msrb.mxu0 %v3432_v11  ;;  %4769 = vst [vmem:[#allocation31_spill] sm:$0xff] %v3504_v39  ;;  %v2748_v37 = vld [vmem:[%s4581_s2 + $0x124] sm:$0xf]  ;;  %v3522_v1 = vor.u32 %v2755_v36, %v2489_v32  ;;  %v2595_v4 = vld [vmem:[%s4581_s2 + $0x230] sm:$0xf0] }
  0x31   :  { %696 = vmatpush.bf16.msrb.mxu1 %v3436_v13  ;;  %722 = vmatpush.bf16.msrb.mxu3 %v3450_v31  ;;  %4770 = vst [vmem:[#allocation32_spill] sm:$0xff] %v3508_v40  ;;  %v2467_v13 = vld [vmem:[%s4581_s2 + $0x130] sm:$0xf0]  ;;  %v2780_v0 = vld [vmem:[%s4581_s2 + $0x224] sm:$0xf] }
  0x32   :  { %709 = vmatpush.bf16.msrb.mxu2 %v3438_v15  ;;  %4771 = vst [vmem:[#allocation33_spill] sm:$0xff] %v3510_v48  ;;  %v2345_v22 = vld [vmem:[%s4581_s2 + $0x28] sm:$0xf]  ;;  %v2719_v24 = vld [vmem:[%s4581_s2 + $0x34] sm:$0xf0]  ;;  %v3540_v36 = vor.u32 %v2748_v37, %v2467_v13 }
  0x33   :  { %4772 = vst [vmem:[#allocation34_spill] sm:$0xff] %v3522_v1  ;;  %v2473_v26 = vld [vmem:[%s4581_s2 + $0x128] sm:$0xf]  ;;  %v2751_v32 = vld [vmem:[%s4581_s2 + $0x134] sm:$0xf0] }
  0x34   :  { %684 = vmatpush.bf16.msrb.mxu0 %v3468_v49  ;;  %4773 = vst [vmem:[#allocation35_spill] sm:$0xff] %v3540_v36  ;;  %v2451_v49 = vld [vmem:[%s4581_s2 + $0x110] sm:$0xf0]  ;;  %v2776_v37 = vld [vmem:[%s4581_s2 + $0x204] sm:$0xf] }
  0x35   :  { %697 = vmatpush.bf16.msrb.mxu1 %v3472_v53  ;;  %723 = vmatpush.bf16.msrb.mxu3 %v3486_v10  ;;  %v2744_v53 = vld [vmem:[%s4581_s2 + $0x104] sm:$0xf]  ;;  %v3550_v10 = vor.u32 %v2780_v0, %v2595_v4  ;;  %v2579_v13 = vld [vmem:[%s4581_s2 + $0x210] sm:$0xf0]  ;;  %v2715_v0 = vld [vmem:[%s4581_s2 + $0x14] sm:$0xf0] }
  0x36   :  { %710 = vmatpush.bf16.msrb.mxu2 %v3474_v63  ;;  %v3552_v63 = vor.u32 %v2719_v24, %v2345_v22  ;;  %v2457_v4 = vld [vmem:[%s4581_s2 + $0x108] sm:$0xf]  ;;  %v2747_v22 = vld [vmem:[%s4581_s2 + $0x114] sm:$0xf0]  ;;  %v2773_v11 = vld [vmem:[%s4581_s2 + $0x1ec] sm:$0xf]  ;;  %v3598_v42 = vor.u32 %v2776_v37, %v2579_v13 }
  0x37   :  { %4774 = vst [vmem:[#allocation36_spill] sm:$0xff] %v3550_v10  ;;  %v2697_v24 = vld [vmem:[%s4581_s2 + $0x2e8] sm:$0xf]  ;;  %v2571_v31 = vld [vmem:[%s4581_s2 + $0x1f8] sm:$0xf0]  ;;  %v3609_v15 = vor.u32 %v2747_v22, %v2457_v4 }
  0x38   :  { %685 = vmatpush.bf16.msrb.mxu0 %v3504_v39  ;;  %4775 = vst [vmem:[#allocation37_spill] sm:$0xff] %v3552_v63  ;;  %v2329_v39 = vld [vmem:[%s4581_s2 + $0x8] sm:$0xf]  ;;  %v3615_v37 = vor.u32 %v2773_v11, %v2571_v31  ;;  %v2803_v13 = vld [vmem:[%s4581_s2 + $0x2d4] sm:$0xf0] }
  0x39   :  { %698 = vmatpush.bf16.msrb.mxu1 %v3508_v40  ;;  %724 = vmatpush.bf16.msrb.mxu3 %v3522_v1  ;;  %v3564_v40 = vor.u32 %v2751_v32, %v2473_v26  ;;  %v2807_v26 = vld [vmem:[%s4581_s2 + $0x2f4] sm:$0xf0]  ;;  %v2741_v32 = vld [vmem:[%s4581_s2 + $0xec] sm:$0xf]  ;;  %v3585_v1 = vor.u32 %v2744_v53, %v2451_v49  ;;  %4778 = vst [vmem:[#allocation40_spill] sm:$0xff] %v3598_v42 }
  0x3a   :  { %711 = vmatpush.bf16.msrb.mxu2 %v3510_v48  ;;  %v2443_v48 = vld [vmem:[%s4581_s2 + $0xf8] sm:$0xf0]  ;;  %v3600_v49 = vor.u32 %v2715_v0, %v2329_v39  ;;  %v2805_v53 = vld [vmem:[%s4581_s2 + $0x2ec] sm:$0xf]  ;;  %4780 = vst [vmem:[#allocation42_spill] sm:$0xff] %v3609_v15  ;;  %v3611_v41 = vor.u32 %v2807_v26, %v2697_v24 }
  0x3b   :  { %4776 = vst [vmem:[#allocation38_spill] sm:$0xff] %v3564_v40  ;;  %v2681_v39 = vld [vmem:[%s4581_s2 + $0x2c8] sm:$0xf]  ;;  %v2737_v0 = vld [vmem:[%s4581_s2 + $0xcc] sm:$0xf] }
  0x3c   :  { %686 = vmatpush.bf16.msrb.mxu0 %v3540_v36  ;;  %4777 = vst [vmem:[#allocation39_spill] sm:$0xff] %v3585_v1  ;;  %v2699_v36 = vld [vmem:[%s4581_s2 + $0x2f8] sm:$0xf0]  ;;  %v2769_v31 = vld [vmem:[%s4581_s2 + $0x1cc] sm:$0xf]  ;;  %v3648_v24 = vor.u32 %v2803_v13, %v2681_v39  ;;  %v4788_v13 = vmov 0.0|0.0  }
  0x3d   :  { %699 = vmatpush.bf16.msrb.mxu1 %v3550_v10  ;;  %4779 = vst [vmem:[#allocation41_spill] sm:$0xff] %v3600_v49  ;;  %725 = vmatpush.bf16.msrb.mxu3 %v3564_v40  ;;  %v3613_v10 = vor.u32 %v2741_v32, %v2443_v48  ;;  %v3627_v4 = vor.u32 %v2805_v53, %v2699_v36  ;;  %v2427_v11 = vld [vmem:[%s4581_s2 + $0xd8] sm:$0xf0]  ;;  %v2801_v36 = vld [vmem:[%s4581_s2 + $0x2cc] sm:$0xf] }
  0x3e   :  { %712 = vmatpush.bf16.msrb.mxu2 %v3552_v63  ;;  %4781 = vst [vmem:[#allocation43_spill] sm:$0xff] %v3611_v41  ;;  %v2555_v48 = vld [vmem:[%s4581_s2 + $0x1d8] sm:$0xf0]  ;;  %v3652_v26 = vor.u32 %v2737_v0, %v2427_v11  ;;  %v2665_v53 = vld [vmem:[%s4581_s2 + $0x2a8] sm:$0xf] }
  0x3f   :  { %4782 = vst [vmem:[#allocation44_spill] sm:$0xff] %v3613_v10  ;;  %v2683_v22 = vld [vmem:[%s4581_s2 + $0x2d8] sm:$0xf0]  ;;  %v3654_v32 = vor.u32 %v2769_v31, %v2555_v48  ;;  %v2733_v39 = vld [vmem:[%s4581_s2 + $0xac] sm:$0xf] }
  0x40   :  { %4783 = vst [vmem:[#allocation45_spill] sm:$0xff] %v3615_v37  ;;  %687 = vmatpush.bf16.msrb.mxu0 %v3585_v1  ;;  %v3667_v0 = vor.u32 %v2801_v36, %v2683_v22  ;;  %v2411_v11 = vld [vmem:[%s4581_s2 + $0xb8] sm:$0xf0]  ;;  %v2765_v31 = vld [vmem:[%s4581_s2 + $0x1ac] sm:$0xf] }
  0x41   :  { %4784 = vst [vmem:[#allocation46_spill] sm:$0xff] %v3627_v4  ;;  %700 = vmatpush.bf16.msrb.mxu1 %v3598_v42  ;;  %726 = vmatpush.bf16.msrb.mxu3 %v3609_v15  ;;  %v2799_v42 = vld [vmem:[%s4581_s2 + $0x2b4] sm:$0xf0]  ;;  %v2539_v48 = vld [vmem:[%s4581_s2 + $0x1b8] sm:$0xf0] }
  0x42   :  { %713 = vmatpush.bf16.msrb.mxu2 %v3600_v49  ;;  %4785 = vst [vmem:[#allocation47_spill] sm:$0xff] %v3648_v24  ;;  %v2797_v36 = vld [vmem:[%s4581_s2 + $0x2ac] sm:$0xf]  ;;  %v2667_v22 = vld [vmem:[%s4581_s2 + $0x2b8] sm:$0xf0] }
  0x43   :  { %4786 = vst [vmem:[#allocation48_spill] sm:$0xff] %v3652_v26  ;;  %688 = vmatmul.bf16.vlgmr.msrb.gmra.mxu0 %v4788_v13  ;;  %v2791_v1 = vld [vmem:[%s4581_s2 + $0x274] sm:$0xf0] }
  0x44   :  { %732 = vmatpush.bf16.msra.mxu0 %v3611_v41  ;;  %4787 = vst [vmem:[#allocation49_spill] sm:$0xff] %v3654_v32  ;;  %701 = vmatmul.bf16.vlgmr.msrb.gmra.mxu1 %v4788_v13  ;;  %v3694_v41 = vor.u32 %v2765_v31, %v2539_v48  ;;  %v2523_v31 = vld [vmem:[%s4581_s2 + $0x198] sm:$0xf0]  ;;  %v2793_v48 = vld [vmem:[%s4581_s2 + $0x28c] sm:$0xf] }
  0x45   :  { %745 = vmatpush.bf16.msra.mxu1 %v3613_v10  ;;  %771 = vmatpush.bf16.msra.mxu3 %v3627_v4  ;;  %4789 = vst [vmem:[#allocation50_spill] sm:$0xff] %v3667_v0  ;;  %v3687_v10 = vor.u32 %v2799_v42, %v2665_v53  ;;  %v3692_v4 = vor.u32 %v2733_v39, %v2411_v11  ;;  %v2729_v42 = vld [vmem:[%s4581_s2 + $0x8c] sm:$0xf]  ;;  %v2395_v39 = vld [vmem:[%s4581_s2 + $0x98] sm:$0xf0] }
  0x46   :  { %758 = vmatpush.bf16.msra.mxu2 %v3615_v37  ;;  %727 = vmatmul.bf16.vlgmr.msrb.gmra.mxu3 %v4788_v13  ;;  %4792 = vst [vmem:[#allocation53_spill] sm:$0xff] %v3694_v41  ;;  %v2649_v37 = vld [vmem:[%s4581_s2 + $0x288] sm:$0xf]  ;;  %v3706_v53 = vor.u32 %v2797_v36, %v2667_v22  ;;  %v2761_v11 = vld [vmem:[%s4581_s2 + $0x18c] sm:$0xf] }
  0x47   :  { %714 = vmatmul.bf16.vlgmr.msrb.gmra.mxu2 %v4788_v13  ;;  %4790 = vst [vmem:[#allocation51_spill] sm:$0xff] %v3687_v10  ;;  %v2651_v36 = vld [vmem:[%s4581_s2 + $0x298] sm:$0xf0] }
  0x48   :  { %733 = vmatpush.bf16.msra.mxu0 %v3648_v24  ;;  %4791 = vst [vmem:[#allocation52_spill] sm:$0xff] %v3692_v4  ;;  %v2795_v24 = vld [vmem:[%s4581_s2 + $0x294] sm:$0xf0] }
  0x49   :  { %746 = vmatpush.bf16.msra.mxu1 %v3652_v26  ;;  %772 = vmatpush.bf16.msra.mxu3 %v3667_v0  ;;  %4793 = vst [vmem:[#allocation54_spill] sm:$0xff] %v3706_v53  ;;  %v3724_v22 = vor.u32 %v2795_v24, %v2649_v37  ;;  %v3728_v26 = vor.u32 %v2729_v42, %v2395_v39  ;;  %v2725_v37 = vld [vmem:[%s4581_s2 + $0x6c] sm:$0xf]  ;;  %v2379_v42 = vld [vmem:[%s4581_s2 + $0x78] sm:$0xf0] }
  0x4a   :  { %759 = vmatpush.bf16.msra.mxu2 %v3654_v32  ;;  %v3730_v0 = vor.u32 %v2761_v11, %v2523_v31  ;;  %v2633_v32 = vld [vmem:[%s4581_s2 + $0x268] sm:$0xf]  ;;  %v3742_v24 = vor.u32 %v2793_v48, %v2651_v36  ;;  %v2757_v39 = vld [vmem:[%s4581_s2 + $0x16c] sm:$0xf]  ;;  %v2507_v11 = vld [vmem:[%s4581_s2 + $0x178] sm:$0xf0] }
  0x4b   :  { %4794 = vst [vmem:[#allocation55_spill] sm:$0xff] %v3724_v22  ;;  %v2789_v31 = vld [vmem:[%s4581_s2 + $0x26c] sm:$0xf]  ;;  %v2635_v48 = vld [vmem:[%s4581_s2 + $0x278] sm:$0xf0]  ;;  %v3760_v36 = vor.u32 %v2791_v1, %v2633_v32 }
  0x4c   :  { %734 = vmatpush.bf16.msra.mxu0 %v3687_v10  ;;  %4795 = vst [vmem:[#allocation56_spill] sm:$0xff] %v3728_v26  ;;  %v2617_v10 = vld [vmem:[%s4581_s2 + $0x248] sm:$0xf]  ;;  %v2721_v1 = vld [vmem:[%s4581_s2 + $0x4c] sm:$0xf]  ;;  %v3778_v32 = vor.u32 %v2789_v31, %v2635_v48 }
  0x4d   :  { %747 = vmatpush.bf16.msra.mxu1 %v3692_v4  ;;  %4796 = vst [vmem:[#allocation57_spill] sm:$0xff] %v3730_v0  ;;  %773 = vmatpush.bf16.msra.mxu3 %v3706_v53  ;;  %v3764_v4 = vor.u32 %v2725_v37, %v2379_v42  ;;  %v3766_v53 = vor.u32 %v2757_v39, %v2507_v11  ;;  %v2363_v37 = vld [vmem:[%s4581_s2 + $0x58] sm:$0xf0]  ;;  %v2753_v42 = vld [vmem:[%s4581_s2 + $0x14c] sm:$0xf] }
  0x4e   :  { %760 = vmatpush.bf16.msra.mxu2 %v3694_v41  ;;  %4797 = vst [vmem:[#allocation58_spill] sm:$0xff] %v3742_v24  ;;  %v2787_v41 = vld [vmem:[%s4581_s2 + $0x254] sm:$0xf0]  ;;  %v2491_v39 = vld [vmem:[%s4581_s2 + $0x158] sm:$0xf0] }
  0x4f   :  { %4798 = vst [vmem:[#allocation59_spill] sm:$0xff] %v3760_v36  ;;  %v2785_v11 = vld [vmem:[%s4581_s2 + $0x24c] sm:$0xf]  ;;  %v2619_v31 = vld [vmem:[%s4581_s2 + $0x258] sm:$0xf0]  ;;  %v3796_v48 = vor.u32 %v2787_v41, %v2617_v10 }
  0x50   :  { %735 = vmatpush.bf16.msra.mxu0 %v3724_v22  ;;  %4799 = vst [vmem:[#allocation60_spill] sm:$0xff] %v3764_v4  ;;  %v2601_v22 = vld [vmem:[%s4581_s2 + $0x228] sm:$0xf]  ;;  %v2717_v41 = vld [vmem:[%s4581_s2 + $0x2c] sm:$0xf]  ;;  %v3814_v10 = vor.u32 %v2785_v11, %v2619_v31 }
  0x51   :  { %748 = vmatpush.bf16.msra.mxu1 %v3728_v26  ;;  %4800 = vst [vmem:[#allocation61_spill] sm:$0xff] %v3766_v53  ;;  %774 = vmatpush.bf16.msra.mxu3 %v3742_v24  ;;  %v3800_v26 = vor.u32 %v2721_v1, %v2363_v37  ;;  %v3802_v24 = vor.u32 %v2753_v42, %v2491_v39  ;;  %v2347_v1 = vld [vmem:[%s4581_s2 + $0x38] sm:$0xf0]  ;;  %v2749_v37 = vld [vmem:[%s4581_s2 + $0x12c] sm:$0xf] }
  0x52   :  { %761 = vmatpush.bf16.msra.mxu2 %v3730_v0  ;;  %4801 = vst [vmem:[#allocation62_spill] sm:$0xff] %v3778_v32  ;;  %v2783_v0 = vld [vmem:[%s4581_s2 + $0x234] sm:$0xf0]  ;;  %v2475_v42 = vld [vmem:[%s4581_s2 + $0x138] sm:$0xf0] }
  0x53   :  { %4802 = vst [vmem:[#allocation63_spill] sm:$0xff] %v3796_v48  ;;  %v2781_v39 = vld [vmem:[%s4581_s2 + $0x22c] sm:$0xf]  ;;  %v2603_v11 = vld [vmem:[%s4581_s2 + $0x238] sm:$0xf0]  ;;  %v3832_v31 = vor.u32 %v2783_v0, %v2601_v22 }
  0x54   :  { %736 = vmatpush.bf16.msra.mxu0 %v3760_v36  ;;  %4803 = vst [vmem:[#allocation64_spill] sm:$0xff] %v3800_v26  ;;  %v2585_v36 = vld [vmem:[%s4581_s2 + $0x208] sm:$0xf]  ;;  %v2713_v0 = vld [vmem:[%s4581_s2 + $0xc] sm:$0xf]  ;;  %v3850_v22 = vor.u32 %v2781_v39, %v2603_v11 }
  0x55   :  { %749 = vmatpush.bf16.msra.mxu1 %v3764_v4  ;;  %4804 = vst [vmem:[#allocation65_spill] sm:$0xff] %v3802_v24  ;;  %775 = vmatpush.bf16.msra.mxu3 %v3778_v32  ;;  %v3836_v4 = vor.u32 %v2717_v41, %v2347_v1  ;;  %v3838_v32 = vor.u32 %v2749_v37, %v2475_v42  ;;  %v2331_v41 = vld [vmem:[%s4581_s2 + $0x18] sm:$0xf0]  ;;  %v2745_v1 = vld [vmem:[%s4581_s2 + $0x10c] sm:$0xf] }
  0x56   :  { %762 = vmatpush.bf16.msra.mxu2 %v3766_v53  ;;  %4805 = vst [vmem:[#allocation66_spill] sm:$0xff] %v3814_v10  ;;  %v2779_v53 = vld [vmem:[%s4581_s2 + $0x214] sm:$0xf0]  ;;  %v2459_v37 = vld [vmem:[%s4581_s2 + $0x118] sm:$0xf0] }
  0x57   :  { %4806 = vst [vmem:[#allocation67_spill] sm:$0xff] %v3832_v31  ;;  %v2777_v42 = vld [vmem:[%s4581_s2 + $0x20c] sm:$0xf]  ;;  %v2587_v39 = vld [vmem:[%s4581_s2 + $0x218] sm:$0xf0]  ;;  %v3868_v11 = vor.u32 %v2779_v53, %v2585_v36 }
  0x58   :  { %737 = vmatpush.bf16.msra.mxu0 %v3796_v48  ;;  %4807 = vst [vmem:[#allocation68_spill] sm:$0xff] %v3836_v4  ;;  %v3877_v48 = vor.u32 %v2777_v42, %v2587_v39  ;;  %v4815_v53 = vld [vmem:[#allocation25_spill] sm:$0xff]  ;;  %v4821_v42 = vld [vmem:[#allocation30_spill] sm:$0xff]  ;;  %v4822_v39 = vld [vmem:[#allocation27_spill] sm:$0xff] }
  0x59   :  { %750 = vmatpush.bf16.msra.mxu1 %v3800_v26  ;;  %4808 = vst [vmem:[#allocation69_spill] sm:$0xff] %v3838_v32  ;;  %776 = vmatpush.bf16.msra.mxu3 %v3814_v10  ;;  %v3872_v26 = vor.u32 %v2713_v0, %v2331_v41  ;;  %v3874_v10 = vor.u32 %v2745_v1, %v2459_v37  ;;  %v4816_v36 = vld [vmem:[#allocation21_spill] sm:$0xff]  ;;  %v4817_v0 = vld [vmem:[#allocation26_spill] sm:$0xff]  ;;  %v4818_v41 = vld [vmem:[#allocation23_spill] sm:$0xff] }
  0x5a   :  { %763 = vmatpush.bf16.msra.mxu2 %v3802_v24  ;;  %4809 = vst [vmem:[#allocation70_spill] sm:$0xff] %v3850_v22  ;;  %v4819_v1 = vld [vmem:[#allocation29_spill] sm:$0xff]  ;;  %v4820_v37 = vld [vmem:[#allocation24_spill] sm:$0xff] }
  0x5b   :  { %4810 = vst [vmem:[#allocation71_spill] sm:$0xff] %v3868_v11 }
  0x5c   :  { %738 = vmatpush.bf16.msra.mxu0 %v3832_v31  ;;  %4811 = vst [vmem:[#allocation72_spill] sm:$0xff] %v3872_v26 }
  0x5d   :  { %751 = vmatpush.bf16.msra.mxu1 %v3836_v4  ;;  %4812 = vst [vmem:[#allocation73_spill] sm:$0xff] %v3874_v10  ;;  %777 = vmatpush.bf16.msra.mxu3 %v3850_v22 }
  0x5e   :  { %764 = vmatpush.bf16.msra.mxu2 %v3838_v32  ;;  %4813 = vst [vmem:[#allocation74_spill] sm:$0xff] %v3877_v48 }
  0x60   :  { %739 = vmatpush.bf16.msra.mxu0 %v3868_v11 }
  0x61   :  { %752 = vmatpush.bf16.msra.mxu1 %v3872_v26  ;;  %778 = vmatpush.bf16.msra.mxu3 %v3877_v48 }
  0x62   :  { %765 = vmatpush.bf16.msra.mxu2 %v3874_v10 }
  0x63   :  { %740 = vmatmul.bf16.vlgmr.msra.gmra.mxu0 %v4788_v13 }
  0x64   :  { %753 = vmatmul.bf16.vlgmr.msra.gmra.mxu1 %v4788_v13  ;;  %779 = vmatmul.bf16.vlgmr.msra.gmra.mxu3 %v4788_v13 }
  0x65   :  { %1240 = vmatpush.bf16.msrb.mxu3 %v3045_v12  ;;  %766 = vmatmul.bf16.vlgmr.msra.gmra.mxu2 %v4788_v13  ;;  %v4814_v13 = vld [vmem:[#allocation20_spill] sm:$0xff] }
  0x66   :  { %1227 = vmatpush.bf16.msrb.mxu2 %v3033_v8  ;;  %1201 = vmatpush.bf16.msrb.mxu0 %v3020_v3 }
  0x67   :  { %1214 = vmatpush.bf16.msrb.mxu1 %v3031_v7 }
  0x69   :  { %1241 = vmatpush.bf16.msrb.mxu3 %v3083_v25 }
  0x6a   :  { %1228 = vmatpush.bf16.msrb.mxu2 %v3072_v21  ;;  %1202 = vmatpush.bf16.msrb.mxu0 %v3058_v16 }
  0x6b   :  { %1215 = vmatpush.bf16.msrb.mxu1 %v3060_v17 }
  0x6d   :  { %1242 = vmatpush.bf16.msrb.mxu3 %v3122_v38 }
  0x6e   :  { %1229 = vmatpush.bf16.msrb.mxu2 %v3110_v34  ;;  %1203 = vmatpush.bf16.msrb.mxu0 %v3095_v29 }
  0x6f   :  { %1216 = vmatpush.bf16.msrb.mxu1 %v3108_v33 }
  0x71   :  { %1243 = vmatpush.bf16.msrb.mxu3 %v3158_v50 }
  0x72   :  { %1230 = vmatpush.bf16.msrb.mxu2 %v3146_v46  ;;  %1204 = vmatpush.bf16.msrb.mxu0 %v3140_v44 }
  0x73   :  { %1217 = vmatpush.bf16.msrb.mxu1 %v3144_v45 }
  0x75   :  { %1244 = vmatpush.bf16.msrb.mxu3 %v3194_v62 }
  0x76   :  { %1231 = vmatpush.bf16.msrb.mxu2 %v3182_v58  ;;  %1205 = vmatpush.bf16.msrb.mxu0 %v3176_v56 }
  0x77   :  { %1218 = vmatpush.bf16.msrb.mxu1 %v3180_v57 }
  0x79   :  { %1245 = vmatpush.bf16.msrb.mxu3 %v3230_v14 }
  0x7a   :  { %1232 = vmatpush.bf16.msrb.mxu2 %v3218_v9  ;;  %1206 = vmatpush.bf16.msrb.mxu0 %v3212_v5 }
  0x7b   :  { %1219 = vmatpush.bf16.msrb.mxu1 %v3216_v6  ;;  %v4828_v6 = vld [vmem:[#allocation35_spill] sm:$0xff] }
  0x7d   :  { %1246 = vmatpush.bf16.msrb.mxu3 %v3272_v35 }
  0x7e   :  { %1233 = vmatpush.bf16.msrb.mxu2 %v3260_v28  ;;  %1207 = vmatpush.bf16.msrb.mxu0 %v3248_v23 }
  0x7f   :  { %1220 = vmatpush.bf16.msrb.mxu1 %v3258_v27  ;;  %v4826_v27 = vld [vmem:[#allocation31_spill] sm:$0xff] }
  0x81   :  { %1247 = vmatpush.bf16.msrb.mxu3 %v3317_v55 }
  0x82   :  { %1234 = vmatpush.bf16.msrb.mxu2 %v3308_v52  ;;  %1208 = vmatpush.bf16.msrb.mxu0 %v3293_v43 }
  0x83   :  { %1221 = vmatpush.bf16.msrb.mxu1 %v3306_v51  ;;  %v4825_v51 = vld [vmem:[#allocation34_spill] sm:$0xff] }
  0x85   :  { %1292 = vmatpush.bf16.msra.mxu3 %v3335_v2 }
  0x86   :  { %1279 = vmatpush.bf16.msra.mxu2 %v3323_v61  ;;  %1253 = vmatpush.bf16.msra.mxu0 %v3319_v59 }
  0x87   :  { %1266 = vmatpush.bf16.msra.mxu1 %v3321_v60  ;;  %v4824_v60 = vld [vmem:[#allocation28_spill] sm:$0xff] }
  0x89   :  { %1293 = vmatpush.bf16.msra.mxu3 %v3374_v30 }
  0x8a   :  { %1280 = vmatpush.bf16.msra.mxu2 %v3362_v20  ;;  %1254 = vmatpush.bf16.msra.mxu0 %v3356_v18 }
  0x8b   :  { %1267 = vmatpush.bf16.msra.mxu1 %v3360_v19  ;;  %v4823_v19 = vld [vmem:[#allocation33_spill] sm:$0xff] }
  0x8d   :  { %1294 = vmatpush.bf16.msra.mxu3 %v3414_v54 }
  0x8e   :  { %1281 = vmatpush.bf16.msra.mxu2 %v3402_v47  ;;  %1255 = vmatpush.bf16.msra.mxu0 %v4814_v13 }
  0x8f   :  { %1268 = vmatpush.bf16.msra.mxu1 %v4816_v36  ;;  %v4827_v36 = vld [vmem:[#allocation32_spill] sm:$0xff] }
  0x91   :  { %1295 = vmatpush.bf16.msra.mxu3 %v4817_v0 }
  0x92   :  { %1282 = vmatpush.bf16.msra.mxu2 %v4815_v53  ;;  %1256 = vmatpush.bf16.msra.mxu0 %v4818_v41 }
  0x93   :  { %1269 = vmatpush.bf16.msra.mxu1 %v4820_v37  ;;  %v4829_v37 = vld [vmem:[#allocation36_spill] sm:$0xff] }
  0x95   :  { %1296 = vmatpush.bf16.msra.mxu3 %v4821_v42  ;;  %v4830_v42 = vld [vmem:[#allocation39_spill] sm:$0xff] }
  0x96   :  { %1283 = vmatpush.bf16.msra.mxu2 %v4819_v1  ;;  %1257 = vmatpush.bf16.msra.mxu0 %v4822_v39 }
  0x97   :  { %1270 = vmatpush.bf16.msra.mxu1 %v4824_v60  ;;  %v4831_v60 = vld [vmem:[#allocation40_spill] sm:$0xff] }
  0x99   :  { %1297 = vmatpush.bf16.msra.mxu3 %v4825_v51 }
  0x9a   :  { %1284 = vmatpush.bf16.msra.mxu2 %v4823_v19  ;;  %1258 = vmatpush.bf16.msra.mxu0 %v4826_v27 }
  0x9b   :  { %1271 = vmatpush.bf16.msra.mxu1 %v4827_v36 }
  0x9d   :  { %1298 = vmatpush.bf16.msra.mxu3 %v3564_v40 }
  0x9e   :  { %1285 = vmatpush.bf16.msra.mxu2 %v3552_v63  ;;  %1259 = vmatpush.bf16.msra.mxu0 %v4828_v6  ;;  %v137_v6 = vld [vmem:[%s4582_s3] sm:$0xf] }
  0x9f   :  { %1272 = vmatpush.bf16.msra.mxu1 %v4829_v37  ;;  %v3954_v45 = vperm.slane %v137_v6, 0  ;;  %v3956_v37 = vperm.slane %v137_v6, 1 }
  0xa0   :  { %v637_v51 = vpop.f32.mrf.mxu0 }
  0xa1   :  { %1299 = vmatpush.bf16.msra.mxu3 %v3609_v15  ;;  %v650_v27 = vpop.f32.mrf.mxu1  ;;  %4832 = vst [vmem:[#allocation25_spill] sm:$0xff] %v3954_v45  ;;  %v638_v15 = vadd.f32 %v637_v51, %v3954_v45 }
  0xa2   :  { %1286 = vmatpush.bf16.msra.mxu2 %v3600_v49  ;;  %1260 = vmatpush.bf16.msra.mxu0 %v4830_v42  ;;  %4833 = vst [vmem:[#allocation29_spill] sm:$0xff] %v3956_v37 }
  0xa3   :  { %1273 = vmatpush.bf16.msra.mxu1 %v4831_v60  ;;  %v651_v42 = vadd.f32 %v650_v27, %v638_v15 }
  0xa8   :  { %v639_v57 = vpop.f32.mrf.mxu0 }
  0xa9   :  { %v676_v0 = vpop.f32.mrf.mxu3  ;;  %v652_v36 = vpop.f32.mrf.mxu1 }
  0xaa   :  { %v663_v39 = vpop.f32.mrf.mxu2  ;;  %v677_v60 = vadd.f32 %v676_v0, %v3956_v37 }
  0xab   :  { %v664_v33 = vadd.f32 %v663_v39, %v651_v42 }
  0xb1   :  { %v678_v40 = vpop.f32.mrf.mxu3 }
  0xb2   :  { %v665_v41 = vpop.f32.mrf.mxu2  ;;  %v2703_v40 = vmul.f32 -1.442695, %v664_v33 }
  0xb4   :  { %2832 = vpow2.f32 %v2703_v40 }
  0xba   :  { %v2833_v49 = vpop.eup %2832 }
  0xbb   :  { %v787_v45 = vadd.f32 1.0, %v2833_v49 }
  0xbd   :  { %vm793_vm0 = vweird.f32 %v787_v45 }
  0xc0   :  { %v689_v54 = vpop.f32.mrf.mxu0 }
  0xc1   :  { %v690_v13 = vadd.f32 %v689_v54, %v677_v60  ;;  %v702_v57 = vpop.f32.mrf.mxu1  ;;  %v3960_v60 = vperm.slane %v137_v6, 3 }
  0xc3   :  { %v703_v36 = vadd.f32 %v702_v57, %v690_v13  ;;  %4834 = vst [vmem:[#allocation75_spill] sm:$0xff] %v3960_v60  ;;  %v3962_v13 = vperm.slane %v137_v6, 2 }
  0xc5   :  { %v2704_v17 = vmul.f32 -1.442695, %v703_v36  ;;  %4835 = vst [vmem:[#allocation76_spill] sm:$0xff] %v3962_v13 }
  0xc7   :  { %2834 = vpow2.f32 %v2704_v17 }
  0xc8   :  { %v691_v18 = vpop.f32.mrf.mxu0  ;;  %2836 = vrcp.f32 %v787_v45 }
  0xc9   :  { %v728_v30 = vpop.f32.mrf.mxu3  ;;  %v704_v2 = vpop.f32.mrf.mxu1 }
  0xca   :  { %v715_v41 = vpop.f32.mrf.mxu2 }
  0xcd   :  { %v2835_v51 = vpop.eup %2834 }
  0xce   :  { %v806_v0 = vadd.f32 1.0, %v2835_v51  ;;  %v2837_v15 = vpop.eup %2836 }
  0xcf   :  { %v789_v18 = vmul.f32 %v2837_v15, %v787_v45  ;;  %vm794_vm1 = vweird.f32 %v2837_v15 }
  0xd0   :  { %2838 = vrcp.f32 %v806_v0  ;;  %vm812_vm2 = vweird.f32 %v806_v0  ;;  %vm795_vm4 = vmor %vm793_vm0, %vm794_vm1 }
  0xd1   :  { %v730_v7 = vpop.f32.mrf.mxu3  ;;  %v790_v36 = vsub.f32 1.0, %v789_v18  ;;  %v818_v18 = vand.u32 2147483648, %v806_v0 }
  0xd2   :  { %v717_v59 = vpop.f32.mrf.mxu2  ;;  %v716_v7 = vadd.f32 %v715_v41, %v3962_v13  ;;  %v799_v41 = vand.u32 2147483648, %v787_v45 }
  0xd3   :  { %v791_v6 = vmul.f32 %v2837_v15, %v790_v36 }
  0xd4   :  { %v729_v37 = vadd.f32 %v728_v30, %v716_v7  ;;  %v800_v7 = vor.u32 1.1754944e-38, %v799_v41  ;;  %v2825_v41 = vld [vmem:[%s4583_s0 + $0x10] sm:$0xff]  }
  0xd6   :  { %v2839_v33 = vpop.eup %2838 }
  0xd7   :  { %v808_v17 = vmul.f32 %v2839_v33, %v806_v0  ;;  %vm813_vm3 = vweird.f32 %v2839_v33 }
  0xd8   :  { %vm814_vm5 = vmor %vm812_vm2, %vm813_vm3 }
  0xd9   :  { %v809_v40 = vsub.f32 1.0, %v808_v17  ;;  %v816_v17 = vand.u32 2147483647, %v806_v0 }
  0xdb   :  { %v810_v26 = vmul.f32 %v2839_v33, %v809_v40  ;;  %vm817_vm7 = vcmp.eq.f32.partialorder %v816_v17, 8.507059e+37 }
  0xe0   :  { %v741_v27 = vpop.f32.mrf.mxu0 }
  0xe1   :  { %v754_v54 = vpop.f32.mrf.mxu1  ;;  %v742_v43 = vadd.f32 %v741_v27, %v729_v37 }
  0xe2   :  { %v755_v2 = vadd.f32 %v754_v54, %v3960_v60  ;;  %v797_v60 = vand.u32 2147483647, %v787_v45 }
  0xe4   :  { %vm798_vm6 = vcmp.eq.f32.partialorder %v797_v60, 8.507059e+37 }
  0xe7   :  { %v780_v49 = vpop.f32.mrf.mxu3 }
  0xe8   :  { %v767_v59 = vpop.f32.mrf.mxu2  ;;  %v743_v39 = vpop.f32.mrf.mxu0 }
  0xe9   :  { %v768_v42 = vadd.f32 %v767_v59, %v755_v2  ;;  %v756_v57 = vpop.f32.mrf.mxu1  ;;  %v792_v2 = vadd.f32 %v2837_v15, %v791_v6  ;;  %v811_v59 = vadd.f32 %v2839_v33, %v810_v26  ;;  %v2809_v6 = vld [vmem:[%s4583_s0] sm:$0xff]  }
  0xeb   :  { %v781_v51 = vadd.f32 %v780_v49, %v768_v42  ;;  %v796_v37 = vsel %vm795_vm4, %v2837_v15, %v792_v2  ;;  %v819_v42 = vor.u32 1.1754944e-38, %v818_v18  ;;  %v2824_v2 = vld [vmem:[%s4583_s0 + $0x8] sm:$0xff]  }
  0xec   :  { %v801_v45 = vsel %vm798_vm6, %v800_v7, %v796_v37  ;;  %v3980_v7 = vunpack.c.l.bf16 %v2825_v41  ;;  %v3982_v37 = vunpack.c.l.bf16 %v2824_v2  ;;  %vm1186_vm6 = vcmask 1042434  }
  0xed   :  { %v2705_v55 = vmul.f32 -1.442695, %v781_v51 }
  0xef   :  { %2840 = vpow2.f32 %v2705_v55  ;;  %v782_v54 = vpop.f32.mrf.mxu3  ;;  %v815_v55 = vsel %vm814_vm5, %v2839_v33, %v811_v59  ;;  %vm1184_vm5 = vcmask 1041409  }
  0xf0   :  { %v769_v63 = vpop.f32.mrf.mxu2  ;;  %2842 = vtanh.f32 %v742_v43  ;;  %v820_v43 = vsel %vm817_vm7, %v819_v42, %v815_v55  ;;  %vm4731_vm7 = vcmask 1043459  }
  0xf1   :  { %v842_v39 = vmul.f32 0.0, %v820_v43 }
  0xf5   :  { %v2841_v30 = vpop.eup %2840 }
  0xf6   :  { %v826_v63 = vadd.f32 1.0, %v2841_v30  ;;  %v2843_v27 = vpop.eup %2842  ;;  %v3978_v30 = vunpack.c.l.bf16 %v2809_v6 }
  0xf7   :  { %v843_v49 = vmul.f32 %v2843_v27, %v801_v45 }
  0xf8   :  { %2844 = vrcp.f32 %v826_v63  ;;  %v838_v40 = vand.u32 2147483648, %v826_v63  ;;  %v836_v60 = vand.u32 2147483647, %v826_v63  ;;  %vm832_vm9 = vweird.f32 %v826_v63 }
  0xf9   :  { %v3966_v57 = vadd.f32 %v843_v49, %v842_v39 }
  0xfa   :  { %v839_v51 = vor.u32 1.1754944e-38, %v838_v40  ;;  %vm837_vm11 = vcmp.eq.f32.partialorder %v836_v60, 8.507059e+37  ;;  %v4838_v60 = vld [vmem:[#allocation43_spill] sm:$0xff] }
  0xfb   :  { %4836 = vst [vmem:[#allocation77_spill] sm:$0xff] %v3966_v57  ;;  %2846 = vtanh.f32 %v3966_v57 }
  0xfe   :  { %v2845_v26 = vpop.eup %2844 }
  0xff   :  { %v828_v36 = vmul.f32 %v2845_v26, %v826_v63  ;;  %vm833_vm8 = vweird.f32 %v2845_v26 }
 0x100   :  { %vm834_vm10 = vmor %vm832_vm9, %vm833_vm8  ;;  %vm4730_vm8 = vcmask 1044484   ;;  %vm4729_vm9 = vcmask 1045509  }
 0x101   :  { %v829_v0 = vsub.f32 1.0, %v828_v36  ;;  %v2847_v59 = vpop.eup %2846 }
 0x103   :  { %v830_v15 = vmul.f32 %v2845_v26, %v829_v0 }
 0x105   :  { %v831_v33 = vadd.f32 %v2845_v26, %v830_v15 }
 0x107   :  { %v835_v54 = vsel %vm834_vm10, %v2845_v26, %v831_v33  ;;  %v4837_v26 = vld [vmem:[#allocation45_spill] sm:$0xff]  ;;  %v4839_v33 = vld [vmem:[#allocation46_spill] sm:$0xff]  ;;  %vm4728_vm10 = vcmask 1046534  }
 0x108   :  { %v840_v18 = vsel %vm837_vm11, %v839_v51, %v835_v54  ;;  %v3995_v51 = vunpack.c.h.bf16 %v2809_v6  ;;  %v2826_v6 = vld [vmem:[%s4583_s0 + $0x18] sm:$0xff]   ;;  %vm4727_vm11 = vcmask 1047559  }
 0x109   :  { %v846_v17 = vmul.f32 %v2847_v59, %v840_v18  ;;  %v4840_v59 = vld [vmem:[#allocation49_spill] sm:$0xff]  ;;  %v3998_v18 = vunpack.c.h.bf16 %v2825_v41 }
 0x10b   :  { %v3984_v55 = vpack.c.bf16 %v846_v17, %v846_v17  ;;  %v855_v63 = vperm.slane %v846_v17, 0  ;;  %v851_v27 = vrot.slane %v846_v17, 4  ;;  %v849_v42 = vrot.slane %v846_v17, 2 }
 0x10c   :  { %v848_v39 = vrot.slane %v846_v17, 1  ;;  %v852_v40 = vrot.slane %v846_v17, 5  ;;  %v850_v15 = vrot.slane %v846_v17, 3 }
 0x10d   :  { %1209 = vmatmul.bf16.vlgmr.msrb.gmra.mxu0 %v3984_v55  ;;  %1235 = vmatmul.bf16.vlgmr.msrb.gmra.mxu2 %v3984_v55  ;;  %v871_v45 = vmul.f32 %v3978_v30, %v855_v63  ;;  %v859_v43 = vperm.slane %v851_v27, 0  ;;  %v857_v49 = vperm.slane %v849_v42, 0  ;;  %v4000_v27 = vunpack.c.h.bf16 %v2824_v2 }
 0x10e   :  { %1248 = vmatmul.bf16.vlgmr.msrb.gmra.mxu3 %v3984_v55  ;;  %1331 = vmatpush.bf16.msrb.mxu2 %v4837_v26  ;;  %v856_v54 = vperm.slane %v848_v39, 0  ;;  %v860_v63 = vperm.slane %v852_v40, 0  ;;  %v858_v42 = vperm.slane %v850_v15, 0  ;;  %v4843_v39 = vld [vmem:[#allocation53_spill] sm:$0xff]  ;;  %v4845_v40 = vld [vmem:[#allocation54_spill] sm:$0xff]  ;;  %v4013_v15 = vunpack.c.l.bf16 %v2826_v6 }
 0x10f   :  { %879 = vadd.xlane.f32.xlu0 %v871_v45  ;;  %v875_v36 = vmul.f32 %v3980_v7, %v859_v43  ;;  %v873_v0 = vmul.f32 %v3982_v37, %v857_v49  ;;  %1305 = vmatpush.bf16.msrb.mxu0 %v4838_v60  ;;  %v4841_v45 = vld [vmem:[#allocation47_spill] sm:$0xff]  ;;  %v4842_v43 = vld [vmem:[#allocation50_spill] sm:$0xff] }
 0x110   :  { %1344 = vmatpush.bf16.msrb.mxu3 %v4839_v33  ;;  %v872_v49 = vmul.f32 %v3995_v51, %v856_v54  ;;  %v853_v33 = vrot.slane %v846_v17, 6  ;;  %v876_v41 = vmul.f32 %v3998_v18, %v860_v63  ;;  %v874_v2 = vmul.f32 %v4000_v27, %v858_v42  ;;  %v4848_v63 = vld [vmem:[#allocation58_spill] sm:$0xff]  ;;  %v4849_v42 = vld [vmem:[#allocation61_spill] sm:$0xff] }
 0x111   :  { %887 = vadd.xlane.f32.xlu2 %v875_v36  ;;  %883 = vadd.xlane.f32.xlu1 %v873_v0  ;;  %v854_v36 = vrot.slane %v846_v17, 7  ;;  %v4844_v0 = vld [vmem:[#allocation51_spill] sm:$0xff] }
 0x112   :  { %1332 = vmatpush.bf16.msrb.mxu2 %v4840_v59  ;;  %v861_v54 = vperm.slane %v853_v33, 0  ;;  %v4851_v33 = vld [vmem:[#allocation62_spill] sm:$0xff] }
 0x113   :  { %1306 = vmatpush.bf16.msrb.mxu0 %v4841_v45  ;;  %v4016_v45 = vunpack.c.h.bf16 %v2826_v6  ;;  %v4852_v6 = vld [vmem:[#allocation63_spill] sm:$0xff] }
 0x114   :  { %1345 = vmatpush.bf16.msrb.mxu3 %v4842_v43  ;;  %v4846_v43 = vld [vmem:[#allocation57_spill] sm:$0xff]  ;;  %v877_v17 = vmul.f32 %v4013_v15, %v861_v54 }
 0x116   :  { %1333 = vmatpush.bf16.msrb.mxu2 %v4843_v39  ;;  %v862_v39 = vperm.slane %v854_v36, 0  ;;  %v4853_v36 = vld [vmem:[#allocation66_spill] sm:$0xff] }
 0x117   :  { %881 = vadd.xlane.f32.xlu0 %v872_v49  ;;  %1307 = vmatpush.bf16.msrb.mxu0 %v4844_v0  ;;  %v4847_v49 = vld [vmem:[#allocation55_spill] sm:$0xff] }
 0x118   :  { %1346 = vmatpush.bf16.msrb.mxu3 %v4845_v40 }
 0x119   :  { %889 = vadd.xlane.f32.xlu2 %v876_v41  ;;  %885 = vadd.xlane.f32.xlu1 %v874_v2  ;;  %v878_v41 = vmul.f32 %v4016_v45, %v862_v39  ;;  %v4850_v2 = vld [vmem:[#allocation59_spill] sm:$0xff] }
 0x11a   :  { %1334 = vmatpush.bf16.msrb.mxu2 %v4846_v43 }
 0x11b   :  { %1308 = vmatpush.bf16.msrb.mxu0 %v4847_v49 }
 0x11c   :  { %1347 = vmatpush.bf16.msrb.mxu3 %v4848_v63 }
 0x11d   :  { %1287 = vmatmul.bf16.vlgmr.msra.gmra.mxu2 %v3984_v55 }
 0x11e   :  { %1335 = vmatpush.bf16.msrb.mxu2 %v4849_v42 }
 0x11f   :  { %891 = vadd.xlane.f32.xlu0 %v877_v17  ;;  %1309 = vmatpush.bf16.msrb.mxu0 %v4850_v2 }
 0x120   :  { %1348 = vmatpush.bf16.msrb.mxu3 %v4851_v33 }
 0x121   :  { %893 = vadd.xlane.f32.xlu1 %v878_v41 }
 0x122   :  { %1336 = vmatpush.bf16.msrb.mxu2 %v3802_v24 }
 0x123   :  { %1310 = vmatpush.bf16.msrb.mxu0 %v4852_v6  ;;  %v2985_v6 = vmov 0  }
 0x124   :  { %1349 = vmatpush.bf16.msrb.mxu3 %v4853_v36  ;;  %2829 = vset.pattern.permute.xlu2 %v2985_v6 }
 0x125   :  { %2831 = vset.pattern.permute.xlu1 %v2985_v6  ;;  %2830 = vset.pattern.permute.xlu0 %v2985_v6 }
 0x126   :  { %1337 = vmatpush.bf16.msrb.mxu2 %v3838_v32 }
 0x127   :  { %1311 = vmatpush.bf16.msrb.mxu0 %v3832_v31 }
 0x128   :  { %1350 = vmatpush.bf16.msrb.mxu3 %v3850_v22 }
 0x12a   :  { %1338 = vmatpush.bf16.msrb.mxu2 %v3874_v10 }
 0x12b   :  { %1312 = vmatpush.bf16.msrb.mxu0 %v3868_v11 }
 0x12c   :  { %1351 = vmatpush.bf16.msrb.mxu3 %v3877_v48 }
 0x12e   :  { %1784 = vmatpush.bf16.msra.mxu2 %v3033_v8  ;;  %v4046_v8 = vld [vmem:[%s4584_s1] sm:$0xff] }
 0x12f   :  { %vm895_vm12 = vcmp.gt.f32.partialorder %v4046_v8, 0.0 }
 0x132   :  { %1785 = vmatpush.bf16.msra.mxu2 %v3072_v21  ;;  %v4051_v21 = vld [vmem:[%s4584_s1 + $0x20] sm:$0xff] }
 0x133   :  { %4854 = vst [vmem:[#allocation78_spill] sm:$0xff] %v4051_v21  ;;  %vm899_vm14 = vcmp.gt.f32.partialorder %v4051_v21, 0.0 }
 0x136   :  { %1786 = vmatpush.bf16.msra.mxu2 %v3110_v34  ;;  %v4056_v34 = vld [vmem:[%s4584_s1 + $0x10] sm:$0xff] }
 0x137   :  { %4855 = vst [vmem:[#allocation79_spill] sm:$0xff] %v4056_v34  ;;  %vm897_vm15 = vcmp.gt.f32.partialorder %v4056_v34, 0.0 }
 0x13a   :  { %1787 = vmatpush.bf16.msra.mxu2 %v3146_v46 }
 0x13e   :  { %1788 = vmatpush.bf16.msra.mxu2 %v3182_v58 }
 0x142   :  { %1789 = vmatpush.bf16.msra.mxu2 %v3218_v9 }
 0x146   :  { %1790 = vmatpush.bf16.msra.mxu2 %v3260_v28 }
 0x14a   :  { %1791 = vmatpush.bf16.msra.mxu2 %v3308_v52 }
 0x182   :  { %v880_v46 = vpop.xlane.xlu0 %879 }
 0x183   :  { %v903_v58 = vsel %vm895_vm12, %v880_v46, -1e+30  ;;  %v4079_v46 = vld [vmem:[%s4584_s1 + $0x8] sm:$0xff] }
 0x184   :  { %v912_v9 = vsel %vm911_vm13, %v903_v58, -inf  ;;  %v888_v28 = vpop.xlane.xlu2 %887  ;;  %v884_v52 = vpop.xlane.xlu1 %883  ;;  %4856 = vst [vmem:[#allocation80_spill] sm:$0xff] %v4079_v46  ;;  %vm896_vm0 = vcmp.gt.f32.partialorder %v4079_v46, 0.0 }
 0x185   :  { %v913_v39 = vrot.slane %v912_v9, 4  ;;  %v4066_v54 = vsel %vm899_vm14, %v888_v28, -1e+30  ;;  %v4070_v17 = vsel %vm897_vm15, %v884_v52, -1e+30  ;;  %v4084_v28 = vld [vmem:[%s4584_s1 + $0x28] sm:$0xff] }
 0x186   :  { %v940_v41 = vsel %vm911_vm13, %v4066_v54, -inf  ;;  %v926_v48 = vsel %vm911_vm13, %v4070_v17, -inf  ;;  %4857 = vst [vmem:[#allocation81_spill] sm:$0xff] %v4084_v28  ;;  %v4089_v52 = vld [vmem:[%s4584_s1 + $0x18] sm:$0xff]  ;;  %vm900_vm1 = vcmp.gt.f32.partialorder %v4084_v28, 0.0 }
 0x187   :  { %v914_v11 = vmax.f32 %v912_v9, %v913_v39  ;;  %v941_v10 = vrot.slane %v940_v41, 4  ;;  %v927_v22 = vrot.slane %v926_v48, 4  ;;  %4858 = vst [vmem:[#allocation82_spill] sm:$0xff] %v4089_v52  ;;  %vm898_vm2 = vcmp.gt.f32.partialorder %v4089_v52, 0.0 }
 0x189   :  { %v915_v31 = vrot.slane %v914_v11, 2  ;;  %v942_v32 = vmax.f32 %v940_v41, %v941_v10  ;;  %v928_v36 = vmax.f32 %v926_v48, %v927_v22 }
 0x18a   :  { %v4092_v9 = vpop.f32.mrf.mxu0  ;;  %v882_v39 = vpop.xlane.xlu0 %881 }
 0x18b   :  { %4859 = vst [vmem:[#allocation83_spill] sm:$0xff] %v4092_v9  ;;  %v916_v24 = vmax.f32 %v914_v11, %v915_v31  ;;  %v943_v33 = vrot.slane %v942_v32, 2  ;;  %v929_v2 = vrot.slane %v928_v36, 2  ;;  %v4098_v10 = vsel %vm896_vm0, %v882_v39, -1e+30  ;;  %v4105_v31 = vld [vmem:[%s4584_s1 + $0x30] sm:$0xff] }
 0x18c   :  { %v890_v48 = vpop.xlane.xlu2 %889  ;;  %v886_v22 = vpop.xlane.xlu1 %885  ;;  %v919_v49 = vsel %vm911_vm13, %v4098_v10, -inf  ;;  %4860 = vst [vmem:[#allocation84_spill] sm:$0xff] %v4105_v31  ;;  %vm901_vm3 = vcmp.gt.f32.partialorder %v4105_v31, 0.0 }
 0x18d   :  { %v917_v41 = vrot.slane %v916_v24, 1  ;;  %v944_v42 = vmax.f32 %v942_v32, %v943_v33  ;;  %v930_v63 = vmax.f32 %v928_v36, %v929_v2  ;;  %v920_v11 = vrot.slane %v919_v49, 4  ;;  %v4120_v36 = vld [vmem:[%s4584_s1 + $0x38] sm:$0xff] }
 0x18e   :  { %v4109_v6 = vsel %vm900_vm1, %v890_v48, -1e+30  ;;  %v4113_v39 = vsel %vm898_vm2, %v886_v22, -1e+30  ;;  %4861 = vst [vmem:[#allocation85_spill] sm:$0xff] %v4120_v36  ;;  %vm902_vm4 = vcmp.gt.f32.partialorder %v4120_v36, 0.0 }
 0x18f   :  { %v918_v43 = vmax.f32 %v916_v24, %v917_v41  ;;  %v945_v32 = vrot.slane %v944_v42, 1  ;;  %v931_v2 = vrot.slane %v930_v63, 1  ;;  %v947_v33 = vsel %vm911_vm13, %v4109_v6, -inf }
 0x190   :  { %v921_v40 = vmax.f32 %v919_v49, %v920_v11  ;;  %v948_v0 = vrot.slane %v947_v33, 4  ;;  %v933_v48 = vsel %vm911_vm13, %v4113_v39, -inf  ;;  %v4124_v59 = vpop.f32.mrf.mxu2 }
 0x191   :  { %4862 = vst [vmem:[#allocation86_spill] sm:$0xff] %v4124_v59  ;;  %v968_v24 = vsub.f32 %v903_v58, %v918_v43  ;;  %v946_v22 = vmax.f32 %v944_v42, %v945_v32  ;;  %v932_v41 = vmax.f32 %v930_v63, %v931_v2  ;;  %v934_v60 = vrot.slane %v933_v48, 4  ;;  %v4127_v26 = vpop.f32.mrf.mxu3 }
 0x192   :  { %v922_v57 = vrot.slane %v921_v40, 2  ;;  %v949_v13 = vmax.f32 %v947_v33, %v948_v0  ;;  %v1212_v9 = vpop.f32.mrf.mxu0  ;;  %v892_v35 = vpop.xlane.xlu0 %891 }
 0x193   :  { %v976_v49 = vmul.f32 1.442695, %v968_v24  ;;  %v972_v11 = vsub.f32 %v4066_v54, %v946_v22  ;;  %v970_v23 = vsub.f32 %v4070_v17, %v932_v41  ;;  %v935_v59 = vmax.f32 %v933_v48, %v934_v60 }
 0x194   :  { %v923_v4 = vmax.f32 %v921_v40, %v922_v57  ;;  %v950_v19 = vrot.slane %v949_v13, 2  ;;  %v909_v43 = vsel %vm901_vm3, %v892_v35, -1e+30  ;;  %v894_v63 = vpop.xlane.xlu1 %893 }
 0x195   :  { %2848 = vpow2.f32 %v976_v49  ;;  %v984_v42 = vmul.f32 1.442695, %v972_v11  ;;  %v980_v58 = vmul.f32 1.442695, %v970_v23  ;;  %v936_v0 = vrot.slane %v935_v59, 2 }
 0x196   :  { %v924_v9 = vrot.slane %v923_v4, 1  ;;  %v951_v32 = vmax.f32 %v949_v13, %v950_v19  ;;  %v954_v2 = vsel %vm911_vm13, %v909_v43, -inf  ;;  %v910_v54 = vsel %vm902_vm4, %v894_v63, -1e+30 }
 0x197   :  { %2850 = vpow2.f32 %v984_v42  ;;  %v937_v17 = vmax.f32 %v935_v59, %v936_v0  ;;  %v955_v60 = vrot.slane %v954_v2, 4  ;;  %v961_v57 = vsel %vm911_vm13, %v910_v54, -inf }
 0x198   :  { %2852 = vpow2.f32 %v980_v58  ;;  %v925_v40 = vmax.f32 %v923_v4, %v924_v9  ;;  %v952_v35 = vrot.slane %v951_v32, 1  ;;  %v962_v33 = vrot.slane %v961_v57, 4  ;;  %v1238_v48 = vpop.f32.mrf.mxu2 }
 0x199   :  { %v938_v24 = vrot.slane %v937_v17, 1  ;;  %v956_v23 = vmax.f32 %v954_v2, %v955_v60  ;;  %v1251_v22 = vpop.f32.mrf.mxu3 }
 0x19a   :  { %v969_v19 = vsub.f32 %v4098_v10, %v925_v40  ;;  %v953_v13 = vmax.f32 %v951_v32, %v952_v35  ;;  %v963_v41 = vmax.f32 %v961_v57, %v962_v33 }
 0x19b   :  { %v2849_v49 = vpop.eup %2848  ;;  %v939_v11 = vmax.f32 %v937_v17, %v938_v24  ;;  %v957_v63 = vrot.slane %v956_v23, 2 }
 0x19c   :  { %v978_v42 = vmul.f32 1.442695, %v969_v19  ;;  %v973_v59 = vsub.f32 %v4109_v6, %v953_v13  ;;  %v964_v0 = vrot.slane %v963_v41, 2  ;;  %v4141_v58 = vmul.f32 %v2849_v49, %v4046_v8 }
 0x19d   :  { %v2851_v4 = vpop.eup %2850  ;;  %v971_v9 = vsub.f32 %v4113_v39, %v939_v11  ;;  %v958_v48 = vmax.f32 %v956_v23, %v957_v63 }
 0x19e   :  { %v2853_v2 = vpop.eup %2852  ;;  %2854 = vpow2.f32 %v978_v42  ;;  %v986_v60 = vmul.f32 1.442695, %v973_v59  ;;  %v965_v10 = vmax.f32 %v963_v41, %v964_v0  ;;  %v1000_v32 = vsel %vm911_vm13, %v4141_v58, 0.0 }
 0x19f   :  { %v982_v17 = vmul.f32 1.442695, %v971_v9  ;;  %v959_v57 = vrot.slane %v958_v48, 1  ;;  %v1001_v40 = vrot.slane %v1000_v32, 4  ;;  %v4147_v6 = vmul.f32 %v2853_v2, %v4056_v34 }
 0x1a0   :  { %2856 = vpow2.f32 %v986_v60  ;;  %v966_v35 = vrot.slane %v965_v10, 1  ;;  %v4149_v33 = vpop.f32.mrf.mxu2  ;;  %v4152_v39 = vmul.f32 %v2851_v4, %v4051_v21 }
 0x1a1   :  { %2858 = vpow2.f32 %v982_v17  ;;  %v960_v24 = vmax.f32 %v958_v48, %v959_v57  ;;  %v1002_v23 = vadd.f32 %v1001_v40, %v1000_v32  ;;  %v1014_v19 = vsel %vm911_vm13, %v4147_v6, 0.0 }
 0x1a2   :  { %v967_v22 = vmax.f32 %v965_v10, %v966_v35  ;;  %v1028_v13 = vsel %vm911_vm13, %v4152_v39, 0.0  ;;  %v1015_v11 = vrot.slane %v1014_v19, 4 }
 0x1a3   :  { %v974_v41 = vsub.f32 %v909_v43, %v960_v24  ;;  %v1003_v49 = vrot.slane %v1002_v23, 2  ;;  %v1029_v63 = vrot.slane %v1028_v13, 4 }
 0x1a4   :  { %v2855_v42 = vpop.eup %2854  ;;  %v975_v59 = vsub.f32 %v910_v54, %v967_v22  ;;  %v1016_v4 = vadd.f32 %v1015_v11, %v1014_v19 }
 0x1a5   :  { %v988_v0 = vmul.f32 1.442695, %v974_v41  ;;  %v1004_v9 = vadd.f32 %v1003_v49, %v1002_v23  ;;  %v4159_v2 = vmul.f32 %v2855_v42, %v4079_v46  ;;  %v1030_v10 = vadd.f32 %v1029_v63, %v1028_v13 }
 0x1a6   :  { %v2857_v48 = vpop.eup %2856  ;;  %v990_v60 = vmul.f32 1.442695, %v975_v59  ;;  %v1017_v57 = vrot.slane %v1016_v4, 2 }
 0x1a7   :  { %v2859_v32 = vpop.eup %2858  ;;  %2860 = vpow2.f32 %v988_v0  ;;  %v1005_v17 = vrot.slane %v1004_v9, 1  ;;  %v1007_v43 = vsel %vm911_vm13, %v4159_v2, 0.0  ;;  %v4164_v54 = vmul.f32 %v2857_v48, %v4084_v28 }
 0x1a8   :  { %2862 = vpow2.f32 %v990_v60  ;;  %v1290_v40 = vpop.f32.mrf.mxu2  ;;  %v1008_v35 = vrot.slane %v1007_v43, 4  ;;  %v4167_v24 = vmul.f32 %v2859_v32, %v4089_v52  ;;  %v1018_v22 = vadd.f32 %v1017_v57, %v1016_v4 }
 0x1a9   :  { %v1006_v23 = vadd.f32 %v1005_v17, %v1004_v9  ;;  %v1035_v13 = vsel %vm911_vm13, %v4164_v54, 0.0  ;;  %v1031_v49 = vrot.slane %v1030_v10, 2 }
 0x1aa   :  { %v1009_v19 = vadd.f32 %v1008_v35, %v1007_v43  ;;  %v1021_v41 = vsel %vm911_vm13, %v4167_v24, 0.0  ;;  %v1019_v63 = vrot.slane %v1018_v22, 1  ;;  %v1036_v42 = vrot.slane %v1035_v13, 4 }
 0x1ab   :  { %v1056_v11 = vmax.f32 %v1006_v23, 1e-30  ;;  %v1022_v59 = vrot.slane %v1021_v41, 4  ;;  %v1032_v17 = vadd.f32 %v1031_v49, %v1030_v10 }
 0x1ac   :  { %v1010_v0 = vrot.slane %v1009_v19, 2  ;;  %v1020_v60 = vadd.f32 %v1019_v63, %v1018_v22  ;;  %v1037_v32 = vadd.f32 %v1036_v42, %v1035_v13 }
 0x1ad   :  { %v2861_v48 = vpop.eup %2860  ;;  %2864 = vrcp.f32 %v1056_v11  ;;  %v1023_v40 = vadd.f32 %v1022_v59, %v1021_v41  ;;  %v1033_v59 = vrot.slane %v1032_v17, 1 }
 0x1ae   :  { %v2863_v9 = vpop.eup %2862  ;;  %v1011_v4 = vadd.f32 %v1010_v0, %v1009_v19  ;;  %v4174_v57 = vmul.f32 %v2861_v48, %v4105_v31  ;;  %v1058_v43 = vmax.f32 %v1020_v60, 1e-30  ;;  %v1038_v35 = vrot.slane %v1037_v32, 2 }
 0x1af   :  { %v1024_v52 = vrot.slane %v1023_v40, 2  ;;  %v999_v23 = vmul.f32 %v2863_v9, %v4120_v36 }
 0x1b0   :  { %v1012_v28 = vrot.slane %v1011_v4, 1  ;;  %v1042_v21 = vsel %vm911_vm13, %v4174_v57, 0.0  ;;  %2866 = vrcp.f32 %v1058_v43  ;;  %v1039_v11 = vadd.f32 %v1038_v35, %v1037_v32 }
 0x1b1   :  { %v1025_v22 = vadd.f32 %v1024_v52, %v1023_v40  ;;  %v1049_v13 = vsel %vm911_vm13, %v999_v23, 0.0  ;;  %v1043_v10 = vrot.slane %v1042_v21, 4 }
 0x1b2   :  { %v1013_v41 = vadd.f32 %v1012_v28, %v1011_v4  ;;  %v1050_v19 = vrot.slane %v1049_v13, 4  ;;  %v1040_v63 = vrot.slane %v1039_v11, 1  ;;  %v1034_v28 = vadd.f32 %v1033_v59, %v1032_v17 }
 0x1b3   :  { %v2865_v49 = vpop.eup %2864  ;;  %v1026_v42 = vrot.slane %v1025_v22, 1  ;;  %v1044_v36 = vadd.f32 %v1043_v10, %v1042_v21 }
 0x1b4   :  { %v1072_v0 = vmul.f32 %v2865_v49, %v4141_v58  ;;  %v1057_v48 = vmax.f32 %v1013_v41, 1e-30  ;;  %v1051_v60 = vadd.f32 %v1050_v19, %v1049_v13  ;;  %v1041_v9 = vadd.f32 %v1040_v63, %v1039_v11 }
 0x1b5   :  { %v1027_v31 = vadd.f32 %v1026_v42, %v1025_v22  ;;  %v1045_v4 = vrot.slane %v1044_v36, 2  ;;  %v1060_v13 = vmax.f32 %v1034_v28, 1e-30 }
 0x1b6   :  { %1082 = vperm.xlu2 %2829, %v1072_v0   ;;  %2868 = vrcp.f32 %v1057_v48  ;;  %v1052_v32 = vrot.slane %v1051_v60, 2  ;;  %v2867_v52 = vpop.eup %2866  ;;  %v1061_v40 = vmax.f32 %v1041_v9, 1e-30 }
 0x1b7   :  { %v1059_v43 = vmax.f32 %v1027_v31, 1e-30  ;;  %v1074_v35 = vmul.f32 %v2867_v52, %v4147_v6  ;;  %v1046_v34 = vadd.f32 %v1045_v4, %v1044_v36 }
 0x1b8   :  { %v1053_v46 = vadd.f32 %v1052_v32, %v1051_v60  ;;  %2870 = vrcp.f32 %v1061_v40 }
 0x1b9   :  { %1092 = vperm.xlu1 %2831, %v1074_v35   ;;  %2872 = vrcp.f32 %v1059_v43  ;;  %v1047_v21 = vrot.slane %v1046_v34, 1 }
 0x1ba   :  { %v1054_v58 = vrot.slane %v1053_v46, 1  ;;  %2874 = vrcp.f32 %v1060_v13 }
 0x1bb   :  { %v1048_v6 = vadd.f32 %v1047_v21, %v1046_v34 }
 0x1bc   :  { %v2869_v11 = vpop.eup %2868  ;;  %v1055_v22 = vadd.f32 %v1054_v58, %v1053_v46 }
 0x1bd   :  { %v1073_v41 = vmul.f32 %v2869_v11, %v4159_v2  ;;  %v1062_v49 = vmax.f32 %v1048_v6, 1e-30 }
 0x1be   :  { %v1063_v19 = vmax.f32 %v1055_v22, 1e-30  ;;  %v2871_v10 = vpop.eup %2870 }
 0x1bf   :  { %1087 = vperm.xlu0 %2830, %v1073_v41   ;;  %v2873_v31 = vpop.eup %2872  ;;  %v1077_v17 = vmul.f32 %v2871_v10, %v4164_v54 }
 0x1c0   :  { %2876 = vrcp.f32 %v1063_v19  ;;  %v1075_v36 = vmul.f32 %v2873_v31, %v4167_v24  ;;  %v2875_v63 = vpop.eup %2874 }
 0x1c1   :  { %1107 = vperm.xlu1 %2831, %v1077_v17   ;;  %2878 = vrcp.f32 %v1062_v49  ;;  %v1076_v2 = vmul.f32 %v2875_v63, %v4152_v39 }
 0x1c2   :  { %1097 = vperm.xlu2 %2829, %v1075_v36  }
 0x1c6   :  { %v2877_v42 = vpop.eup %2876 }
 0x1c7   :  { %v1079_v46 = vmul.f32 %v2877_v42, %v999_v23  ;;  %v2879_v59 = vpop.eup %2878 }
 0x1c8   :  { %v1078_v0 = vmul.f32 %v2879_v59, %v4174_v57 }
 0x1c9   :  { %1117 = vperm.xlu1 %2831, %v1079_v46  }
 0x1ca   :  { %1102 = vperm.xlu2 %2829, %v1076_v2  }
 0x1d2   :  { %1112 = vperm.xlu2 %2829, %v1078_v0  }
 0x210   :  { %v1083_v54 = vpop.permute.xlu2 %1082 }
 0x211   :  { %v1120_v24 = vmul.f32 %v3978_v30, %v1083_v54 }
 0x213   :  { %v1128_v9 = vrot.slane %v1120_v24, 4 }
 0x215   :  { %v1129_v43 = vadd.f32 %v1128_v9, %v1120_v24 }
 0x217   :  { %v1130_v11 = vrot.slane %v1129_v43, 2 }
 0x219   :  { %v1131_v36 = vadd.f32 %v1130_v11, %v1129_v43 }
 0x21c   :  { %v1098_v48 = vpop.permute.xlu2 %1097 }
 0x21d   :  { %v1123_v60 = vmul.f32 %v4000_v27, %v1098_v48  ;;  %v1132_v48 = vrot.slane %v1131_v36, 1 }
 0x21f   :  { %v1146_v23 = vrot.slane %v1123_v60, 4 }
 0x221   :  { %v1147_v57 = vadd.f32 %v1146_v23, %v1123_v60 }
 0x223   :  { %v1148_v19 = vrot.slane %v1147_v57, 2 }
 0x224   :  { %v1103_v34 = vpop.permute.xlu2 %1102 }
 0x225   :  { %v1124_v32 = vmul.f32 %v3980_v7, %v1103_v34  ;;  %v1149_v2 = vadd.f32 %v1148_v19, %v1147_v57 }
 0x227   :  { %v1152_v28 = vrot.slane %v1124_v32, 4 }
 0x229   :  { %v1153_v22 = vadd.f32 %v1152_v28, %v1124_v32  ;;  %v1150_v32 = vrot.slane %v1149_v2, 1  ;;  %v1133_v28 = vadd.f32 %v1132_v48, %v1131_v36 }
 0x22b   :  { %v1093_v52 = vpop.permute.xlu1 %1092  ;;  %v1154_v49 = vrot.slane %v1153_v22, 2 }
 0x22c   :  { %v1122_v39 = vmul.f32 %v3982_v37, %v1093_v52  ;;  %v1113_v40 = vpop.permute.xlu2 %1112 }
 0x22d   :  { %v1126_v35 = vmul.f32 %v4013_v15, %v1113_v40  ;;  %v1155_v34 = vadd.f32 %v1154_v49, %v1153_v22 }
 0x22e   :  { %v1140_v4 = vrot.slane %v1122_v39, 4 }
 0x22f   :  { %v1164_v10 = vrot.slane %v1126_v35, 4 }
 0x230   :  { %v1141_v58 = vadd.f32 %v1140_v4, %v1122_v39  ;;  %v1156_v4 = vrot.slane %v1155_v34, 1 }
 0x231   :  { %v1088_v13 = vpop.permute.xlu0 %1087  ;;  %v1165_v59 = vadd.f32 %v1164_v10, %v1126_v35 }
 0x232   :  { %v1121_v21 = vmul.f32 %v3995_v51, %v1088_v13  ;;  %v1142_v41 = vrot.slane %v1141_v58, 2  ;;  %v1151_v13 = vadd.f32 %v1150_v32, %v1149_v2  ;;  %v1157_v10 = vadd.f32 %v1156_v4, %v1155_v34  ;;  %v4863_v34 = vld [vmem:[#allocation44_spill] sm:$0xff]  ;;  %v4892_v4 = vld [vmem:[#allocation30_spill] sm:$0xff] }
 0x233   :  { %v1108_v17 = vpop.permute.xlu1 %1107  ;;  %v1166_v23 = vrot.slane %v1165_v59, 2  ;;  %v4884_v32 = vld [vmem:[#allocation4_spill] sm:$0xff] }
 0x234   :  { %v1134_v31 = vrot.slane %v1121_v21, 4  ;;  %v1125_v6 = vmul.f32 %v3998_v18, %v1108_v17  ;;  %v1143_v42 = vadd.f32 %v1142_v41, %v1141_v58 }
 0x235   :  { %v1167_v11 = vadd.f32 %v1166_v23, %v1165_v59  ;;  %v4885_v23 = vld [vmem:[#allocation20_spill] sm:$0xff] }
 0x236   :  { %v1135_v63 = vadd.f32 %v1134_v31, %v1121_v21  ;;  %v1158_v46 = vrot.slane %v1125_v6, 4  ;;  %v1144_v60 = vrot.slane %v1143_v42, 1 }
 0x238   :  { %v1136_v0 = vrot.slane %v1135_v63, 2  ;;  %v1159_v54 = vadd.f32 %v1158_v46, %v1125_v6  ;;  %v1145_v35 = vadd.f32 %v1144_v60, %v1143_v42  ;;  %v1168_v6 = vrot.slane %v1167_v11, 1  ;;  %v4865_v60 = vld [vmem:[#allocation52_spill] sm:$0xff] }
 0x23a   :  { %v1137_v24 = vadd.f32 %v1136_v0, %v1135_v63  ;;  %v1160_v9 = vrot.slane %v1159_v54, 2  ;;  %v1169_v2 = vadd.f32 %v1168_v6, %v1167_v11  ;;  %v4897_v11 = vld [vmem:[#allocation35_spill] sm:$0xff]  ;;  %v4905_v6 = vld [vmem:[#allocation24_spill] sm:$0xff] }
 0x23b   :  { %v1118_v39 = vpop.permute.xlu1 %1117 }
 0x23c   :  { %v1138_v52 = vrot.slane %v1137_v24, 1  ;;  %v1161_v40 = vadd.f32 %v1160_v9, %v1159_v54  ;;  %v1127_v43 = vmul.f32 %v4016_v45, %v1118_v39  ;;  %v4883_v9 = vld [vmem:[#allocation19_spill] sm:$0xff]  ;;  %v4887_v39 = vld [vmem:[#allocation5_spill] sm:$0xff] }
 0x23e   :  { %v1139_v57 = vadd.f32 %v1138_v52, %v1137_v24  ;;  %v1170_v58 = vrot.slane %v1127_v43, 4  ;;  %v1162_v41 = vrot.slane %v1161_v40, 1  ;;  %v4864_v24 = vld [vmem:[#allocation48_spill] sm:$0xff]  ;;  %v4886_v52 = vld [vmem:[#allocation22_spill] sm:$0xff] }
 0x240   :  { %v1185_v22 = vsel %vm1184_vm5, %v1139_v57, %v1133_v28  ;;  %v1171_v19 = vadd.f32 %v1170_v58, %v1127_v43  ;;  %v1163_v49 = vadd.f32 %v1162_v41, %v1161_v40  ;;  %v4888_v40 = vld [vmem:[#allocation23_spill] sm:$0xff]  ;;  %v4889_v43 = vld [vmem:[#allocation26_spill] sm:$0xff] }
 0x241   :  { %v1187_v21 = vsel %vm1186_vm6, %v1145_v35, %v1185_v22  ;;  %v4891_v28 = vld [vmem:[#allocation27_spill] sm:$0xff]  ;;  %v4895_v58 = vld [vmem:[#allocation34_spill] sm:$0xff] }
 0x242   :  { %v1189_v31 = vsel %vm4731_vm7, %v1151_v13, %v1187_v21  ;;  %v1172_v17 = vrot.slane %v1171_v19, 2  ;;  %v4893_v57 = vld [vmem:[#allocation7_spill] sm:$0xff]  ;;  %v4896_v13 = vld [vmem:[#allocation9_spill] sm:$0xff]  ;;  %v4898_v22 = vld [vmem:[#allocation38_spill] sm:$0xff] }
 0x243   :  { %v1191_v36 = vsel %vm4730_vm8, %v1157_v10, %v1189_v31  ;;  %v4894_v35 = vld [vmem:[#allocation31_spill] sm:$0xff]  ;;  %v4899_v21 = vld [vmem:[#allocation12_spill] sm:$0xff]  ;;  %v4902_v10 = vld [vmem:[#allocation42_spill] sm:$0xff] }
 0x244   :  { %v1173_v63 = vadd.f32 %v1172_v17, %v1171_v19  ;;  %v1193_v42 = vsel %vm4729_vm9, %v1163_v49, %v1191_v36  ;;  %v4900_v41 = vld [vmem:[#allocation39_spill] sm:$0xff]  ;;  %v4903_v31 = vld [vmem:[#allocation18_spill] sm:$0xff]  ;;  %v4904_v17 = vld [vmem:[#allocation21_spill] sm:$0xff] }
 0x245   :  { %v1195_v0 = vsel %vm4728_vm10, %v1169_v2, %v1193_v42  ;;  %v4901_v19 = vld [vmem:[#allocation15_spill] sm:$0xff]  ;;  %v4906_v36 = vld [vmem:[#allocation28_spill] sm:$0xff] }
 0x246   :  { %v1174_v46 = vrot.slane %v1173_v63, 1  ;;  %v4907_v49 = vld [vmem:[#allocation32_spill] sm:$0xff]  ;;  %v4911_v2 = vld [vmem:[#allocation83_spill] sm:$0xff] }
 0x247   :  { %v4909_v42 = vld [vmem:[#allocation40_spill] sm:$0xff] }
 0x248   :  { %v1175_v59 = vadd.f32 %v1174_v46, %v1173_v63  ;;  %v4908_v63 = vld [vmem:[#allocation36_spill] sm:$0xff]  ;;  %v4910_v46 = vld [vmem:[#allocation25_spill] sm:$0xff] }
 0x24a   :  { %v1197_v54 = vsel %vm4727_vm11, %v1175_v59, %v1195_v0  ;;  %v1211_v59 = vadd.f32 %v4911_v2, %v4910_v46  ;;  %v4915_v2 = vld [vmem:[#allocation75_spill] sm:$0xff] }
 0x24b   :  { %v1200_v48 = vpack.c.bf16 %v1197_v54, %v1197_v54 }
 0x24d   :  { %1222 = vmatmul.bf16.vlgmr.msrb.gmra.mxu1 %v1200_v48  ;;  %1261 = vmatmul.bf16.vlgmr.msra.gmra.mxu0 %v1200_v48 }
 0x24e   :  { %1300 = vmatmul.bf16.vlgmr.msra.gmra.mxu3 %v1200_v48  ;;  %1339 = vmatmul.bf16.vlgmr.msrb.gmra.mxu2 %v1200_v48 }
 0x24f   :  { %1318 = vmatpush.bf16.msrb.mxu1 %v4863_v34  ;;  %1758 = vmatpush.bf16.msra.mxu0 %v3020_v3  ;;  %v4866_v3 = vld [vmem:[#allocation56_spill] sm:$0xff] }
 0x250   :  { %1797 = vmatpush.bf16.msra.mxu3 %v3045_v12  ;;  %1836 = vmatpush.bf16.msrb.mxu2 %v3323_v61  ;;  %v4867_v12 = vld [vmem:[#allocation60_spill] sm:$0xff]  ;;  %v4876_v61 = vld [vmem:[#allocation13_spill] sm:$0xff] }
 0x253   :  { %1319 = vmatpush.bf16.msrb.mxu1 %v4864_v24  ;;  %1759 = vmatpush.bf16.msra.mxu0 %v3058_v16  ;;  %v4868_v16 = vld [vmem:[#allocation64_spill] sm:$0xff] }
 0x254   :  { %1798 = vmatpush.bf16.msra.mxu3 %v3083_v25  ;;  %1837 = vmatpush.bf16.msrb.mxu2 %v3362_v20  ;;  %v4869_v25 = vld [vmem:[#allocation33_spill] sm:$0xff] }
 0x255   :  { %v4877_v20 = vld [vmem:[#allocation41_spill] sm:$0xff] }
 0x257   :  { %1320 = vmatpush.bf16.msrb.mxu1 %v4865_v60  ;;  %1760 = vmatpush.bf16.msra.mxu0 %v3095_v29  ;;  %v4870_v29 = vld [vmem:[#allocation68_spill] sm:$0xff] }
 0x258   :  { %1799 = vmatpush.bf16.msra.mxu3 %v3122_v38  ;;  %1838 = vmatpush.bf16.msrb.mxu2 %v3402_v47  ;;  %v4871_v38 = vld [vmem:[#allocation8_spill] sm:$0xff] }
 0x259   :  { %v4880_v47 = vld [vmem:[#allocation16_spill] sm:$0xff] }
 0x25b   :  { %1321 = vmatpush.bf16.msrb.mxu1 %v4866_v3  ;;  %1761 = vmatpush.bf16.msra.mxu0 %v3140_v44  ;;  %v4872_v44 = vld [vmem:[#allocation10_spill] sm:$0xff] }
 0x25c   :  { %1800 = vmatpush.bf16.msra.mxu3 %v3158_v50  ;;  %1839 = vmatpush.bf16.msrb.mxu2 %v4815_v53  ;;  %v4873_v50 = vld [vmem:[#allocation37_spill] sm:$0xff]  ;;  %v4881_v53 = vld [vmem:[#allocation3_spill] sm:$0xff] }
 0x25d   :  { %1274 = vmatmul.bf16.vlgmr.msra.gmra.mxu1 %v3984_v55  ;;  %1313 = vmatmul.bf16.vlgmr.msrb.gmra.mxu0 %v3984_v55 }
 0x25e   :  { %1352 = vmatmul.bf16.vlgmr.msrb.gmra.mxu3 %v3984_v55 }
 0x25f   :  { %1322 = vmatpush.bf16.msrb.mxu1 %v4867_v12  ;;  %1762 = vmatpush.bf16.msra.mxu0 %v3176_v56  ;;  %v4874_v56 = vld [vmem:[#allocation72_spill] sm:$0xff] }
 0x260   :  { %1801 = vmatpush.bf16.msra.mxu3 %v3194_v62  ;;  %1840 = vmatpush.bf16.msrb.mxu2 %v4819_v1  ;;  %v4875_v62 = vld [vmem:[#allocation11_spill] sm:$0xff]  ;;  %v4882_v1 = vld [vmem:[#allocation17_spill] sm:$0xff] }
 0x263   :  { %1323 = vmatpush.bf16.msrb.mxu1 %v4868_v16  ;;  %1763 = vmatpush.bf16.msra.mxu0 %v3212_v5  ;;  %v4878_v5 = vld [vmem:[#allocation2_spill] sm:$0xff] }
 0x264   :  { %1802 = vmatpush.bf16.msra.mxu3 %v3230_v14  ;;  %1841 = vmatpush.bf16.msrb.mxu2 %v4869_v25  ;;  %v4879_v14 = vld [vmem:[#allocation14_spill] sm:$0xff] }
 0x265   :  { %v4912_v25 = vld [vmem:[#allocation86_spill] sm:$0xff] }
 0x267   :  { %1324 = vmatpush.bf16.msrb.mxu1 %v4870_v29  ;;  %1764 = vmatpush.bf16.msra.mxu0 %v4871_v38 }
 0x268   :  { %1803 = vmatpush.bf16.msra.mxu3 %v4872_v44  ;;  %1842 = vmatpush.bf16.msrb.mxu2 %v4873_v50 }
 0x26b   :  { %1325 = vmatpush.bf16.msrb.mxu1 %v4874_v56  ;;  %1765 = vmatpush.bf16.msra.mxu0 %v4875_v62 }
 0x26c   :  { %1804 = vmatpush.bf16.msra.mxu3 %v4876_v61  ;;  %1843 = vmatpush.bf16.msrb.mxu2 %v4877_v20 }
 0x26e   :  { %1326 = vmatmul.bf16.vlgmr.msrb.gmra.mxu1 %v3984_v55  ;;  %v4890_v55 = vld [vmem:[#allocation6_spill] sm:$0xff] }
 0x26f   :  { %1771 = vmatpush.bf16.msra.mxu1 %v4878_v5  ;;  %1810 = vmatpush.bf16.msrb.mxu0 %v4879_v14  ;;  %v4913_v14 = vld [vmem:[#allocation29_spill] sm:$0xff] }
 0x270   :  { %1849 = vmatpush.bf16.msrb.mxu3 %v4880_v47  ;;  %v1250_v47 = vadd.f32 %v4127_v26, %v4913_v14 }
 0x273   :  { %1772 = vmatpush.bf16.msra.mxu1 %v4881_v53  ;;  %1811 = vmatpush.bf16.msrb.mxu0 %v4882_v1 }
 0x274   :  { %1850 = vmatpush.bf16.msrb.mxu3 %v4883_v9 }
 0x277   :  { %1773 = vmatpush.bf16.msra.mxu1 %v4884_v32  ;;  %1812 = vmatpush.bf16.msrb.mxu0 %v4885_v23 }
 0x278   :  { %1851 = vmatpush.bf16.msrb.mxu3 %v4886_v52 }
 0x27b   :  { %1774 = vmatpush.bf16.msra.mxu1 %v4887_v39  ;;  %1813 = vmatpush.bf16.msrb.mxu0 %v4888_v40  ;;  %v4914_v40 = vld [vmem:[#allocation76_spill] sm:$0xff] }
 0x27c   :  { %1852 = vmatpush.bf16.msrb.mxu3 %v4889_v43  ;;  %v1289_v43 = vadd.f32 %v4149_v33, %v4914_v40 }
 0x27f   :  { %1775 = vmatpush.bf16.msra.mxu1 %v4890_v55  ;;  %1814 = vmatpush.bf16.msrb.mxu0 %v4891_v28 }
 0x280   :  { %1853 = vmatpush.bf16.msrb.mxu3 %v4892_v4 }
 0x283   :  { %1776 = vmatpush.bf16.msra.mxu1 %v4893_v57  ;;  %1815 = vmatpush.bf16.msrb.mxu0 %v4894_v35 }
 0x284   :  { %1854 = vmatpush.bf16.msrb.mxu3 %v4895_v58 }
 0x287   :  { %1777 = vmatpush.bf16.msra.mxu1 %v4896_v13  ;;  %1816 = vmatpush.bf16.msrb.mxu0 %v4897_v11 }
 0x288   :  { %1855 = vmatpush.bf16.msrb.mxu3 %v4898_v22 }
 0x28b   :  { %1778 = vmatpush.bf16.msra.mxu1 %v4899_v21  ;;  %1817 = vmatpush.bf16.msrb.mxu0 %v4900_v41 }
 0x28c   :  { %1856 = vmatpush.bf16.msrb.mxu3 %v4902_v10 }
 0x28f   :  { %1823 = vmatpush.bf16.msrb.mxu1 %v4901_v19 }
 0x293   :  { %1824 = vmatpush.bf16.msrb.mxu1 %v4903_v31 }
 0x297   :  { %1825 = vmatpush.bf16.msrb.mxu1 %v4904_v17 }
 0x29b   :  { %1826 = vmatpush.bf16.msrb.mxu1 %v4905_v6 }
 0x29f   :  { %1827 = vmatpush.bf16.msrb.mxu1 %v4906_v36 }
 0x2a3   :  { %1828 = vmatpush.bf16.msrb.mxu1 %v4907_v49 }
 0x2a7   :  { %1829 = vmatpush.bf16.msrb.mxu1 %v4908_v63 }
 0x2ab   :  { %1830 = vmatpush.bf16.msrb.mxu1 %v4909_v42 }
 0x2ca   :  { %v1223_v0 = vpop.f32.mrf.mxu1  ;;  %v1262_v54 = vpop.f32.mrf.mxu0 }
 0x2cb   :  { %v1224_v48 = vadd.f32 %v1223_v0, %v1211_v59  ;;  %v1263_v1 = vadd.f32 %v1262_v54, %v1250_v47 }
 0x2cd   :  { %v1237_v38 = vadd.f32 %v4912_v25, %v1224_v48 }
 0x2cf   :  { %v2706_v44 = vmul.f32 -1.442695, %v1237_v38 }
 0x2d1   :  { %2880 = vpow2.f32 %v2706_v44  ;;  %v1301_v50 = vpop.f32.mrf.mxu3  ;;  %v1340_v62 = vpop.f32.mrf.mxu2 }
 0x2d2   :  { %v1225_v61 = vpop.f32.mrf.mxu1  ;;  %v1264_v20 = vpop.f32.mrf.mxu0  ;;  %v1302_v28 = vadd.f32 %v1301_v50, %v1289_v43 }
 0x2d7   :  { %v2881_v5 = vpop.eup %2880 }
 0x2d8   :  { %v1360_v53 = vadd.f32 1.0, %v2881_v5 }
 0x2d9   :  { %v1303_v9 = vpop.f32.mrf.mxu3  ;;  %v1342_v32 = vpop.f32.mrf.mxu2 }
 0x2da   :  { %2882 = vrcp.f32 %v1360_v53  ;;  %v1275_v23 = vpop.f32.mrf.mxu1  ;;  %v1314_v52 = vpop.f32.mrf.mxu0  ;;  %v1372_v22 = vand.u32 2147483648, %v1360_v53  ;;  %v1370_v19 = vand.u32 2147483647, %v1360_v53  ;;  %vm1366_vm10 = vweird.f32 %v1360_v53  ;;  %v4916_v32 = vld [vmem:[#allocation77_spill] sm:$0xff] }
 0x2db   :  { %v1276_v39 = vadd.f32 %v1275_v23, %v1263_v1  ;;  %v1315_v57 = vadd.f32 %v1314_v52, %v1302_v28 }
 0x2dc   :  { %v1373_v33 = vor.u32 1.1754944e-38, %v1372_v22  ;;  %vm1371_vm8 = vcmp.eq.f32.partialorder %v1370_v19, 8.507059e+37 }
 0x2dd   :  { %v2707_v55 = vmul.f32 -1.442695, %v1276_v39 }
 0x2df   :  { %2884 = vpow2.f32 %v2707_v55 }
 0x2e0   :  { %v2883_v4 = vpop.eup %2882  ;;  %2886 = vtanh.f32 %v1315_v57 }
 0x2e1   :  { %v1362_v35 = vmul.f32 %v2883_v4, %v1360_v53  ;;  %v1353_v58 = vpop.f32.mrf.mxu3  ;;  %vm1367_vm11 = vweird.f32 %v2883_v4 }
 0x2e2   :  { %v1277_v13 = vpop.f32.mrf.mxu1  ;;  %v1316_v26 = vpop.f32.mrf.mxu0  ;;  %vm1368_vm9 = vmor %vm1366_vm10, %vm1367_vm11 }
 0x2e3   :  { %v1363_v11 = vsub.f32 1.0, %v1362_v35 }
 0x2e5   :  { %v2885_v21 = vpop.eup %2884  ;;  %v1364_v41 = vmul.f32 %v2883_v4, %v1363_v11 }
 0x2e6   :  { %v1379_v10 = vadd.f32 1.0, %v2885_v21  ;;  %v2887_v36 = vpop.eup %2886 }
 0x2e7   :  { %v1365_v31 = vadd.f32 %v2883_v4, %v1364_v41 }
 0x2e8   :  { %2888 = vrcp.f32 %v1379_v10  ;;  %v1391_v44 = vand.u32 2147483648, %v1379_v10  ;;  %v1389_v20 = vand.u32 2147483647, %v1379_v10 }
 0x2e9   :  { %v1369_v17 = vsel %vm1368_vm9, %v2883_v4, %v1365_v31  ;;  %v1355_v6 = vpop.f32.mrf.mxu3  ;;  %vm1385_vm9 = vweird.f32 %v1379_v10 }
 0x2ea   :  { %v1374_v49 = vsel %vm1371_vm8, %v1373_v33, %v1369_v17  ;;  %v1392_v53 = vor.u32 1.1754944e-38, %v1391_v44  ;;  %vm1390_vm8 = vcmp.eq.f32.partialorder %v1389_v20, 8.507059e+37  ;;  %v4922_v20 = vld [vmem:[#allocation50_spill] sm:$0xff] }
 0x2eb   :  { %v1416_v63 = vmul.f32 %v2887_v36, %v1374_v49  ;;  %v1327_v42 = vpop.f32.mrf.mxu1  ;;  %v4917_v49 = vld [vmem:[#allocation45_spill] sm:$0xff] }
 0x2ec   :  { %v1328_v59 = vadd.f32 %v1327_v42, %v4915_v2 }
 0x2ee   :  { %v2889_v0 = vpop.eup %2888  ;;  %v1341_v54 = vadd.f32 %v1340_v62, %v1328_v59 }
 0x2ef   :  { %v1381_v48 = vmul.f32 %v2889_v0, %v1379_v10  ;;  %vm1386_vm7 = vweird.f32 %v2889_v0 }
 0x2f0   :  { %v1354_v25 = vadd.f32 %v1353_v58, %v1341_v54  ;;  %vm1387_vm10 = vmor %vm1385_vm9, %vm1386_vm7  ;;  %v4918_v54 = vld [vmem:[#allocation43_spill] sm:$0xff] }
 0x2f1   :  { %v1382_v38 = vsub.f32 1.0, %v1381_v48  ;;  %v4919_v48 = vld [vmem:[#allocation46_spill] sm:$0xff] }
 0x2f2   :  { %v2708_v50 = vmul.f32 -1.442695, %v1354_v25 }
 0x2f3   :  { %v1383_v61 = vmul.f32 %v2889_v0, %v1382_v38  ;;  %v1329_v5 = vpop.f32.mrf.mxu1  ;;  %v4920_v38 = vld [vmem:[#allocation49_spill] sm:$0xff] }
 0x2f4   :  { %2890 = vpow2.f32 %v2708_v50 }
 0x2f5   :  { %v1384_v47 = vadd.f32 %v2889_v0, %v1383_v61  ;;  %v4921_v61 = vld [vmem:[#allocation47_spill] sm:$0xff] }
 0x2f7   :  { %v1388_v1 = vsel %vm1387_vm10, %v2889_v0, %v1384_v47 }
 0x2f8   :  { %v1393_v9 = vsel %vm1390_vm8, %v1392_v53, %v1388_v1  ;;  %v4923_v53 = vld [vmem:[#allocation53_spill] sm:$0xff]  ;;  %vm4956_vm8 = vcmask 1043459  }
 0x2f9   :  { %v1415_v23 = vmul.f32 %v1393_v9, %v4916_v32 }
 0x2fa   :  { %v2891_v62 = vpop.eup %2890 }
 0x2fb   :  { %v4279_v52 = vadd.f32 %v1416_v63, %v1415_v23  ;;  %v1399_v39 = vadd.f32 1.0, %v2891_v62  ;;  %v4924_v23 = vld [vmem:[#allocation51_spill] sm:$0xff]  ;;  %v4925_v62 = vld [vmem:[#allocation54_spill] sm:$0xff] }
 0x2fd   :  { %2892 = vrcp.f32 %v1399_v39  ;;  %v1411_v4 = vand.u32 2147483648, %v1399_v39  ;;  %v1409_v35 = vand.u32 2147483647, %v1399_v39  ;;  %vm1405_vm7 = vweird.f32 %v1399_v39 }
 0x2fe   :  { %2894 = vtanh.f32 %v4279_v52 }
 0x2ff   :  { %v1412_v13 = vor.u32 1.1754944e-38, %v1411_v4  ;;  %vm1410_vm10 = vcmp.eq.f32.partialorder %v1409_v35, 8.507059e+37  ;;  %v4928_v4 = vld [vmem:[#allocation58_spill] sm:$0xff]  ;;  %v4929_v35 = vld [vmem:[#allocation61_spill] sm:$0xff] }
 0x303   :  { %v2893_v43 = vpop.eup %2892 }
 0x304   :  { %v1401_v55 = vmul.f32 %v2893_v43, %v1399_v39  ;;  %vm1406_vm11 = vweird.f32 %v2893_v43  ;;  %v2895_v11 = vpop.eup %2894 }
 0x305   :  { %vm1407_vm9 = vmor %vm1405_vm7, %vm1406_vm11  ;;  %vm4957_vm11 = vcmask 1044484   ;;  %vm4958_vm7 = vcmask 1045509  }
 0x306   :  { %v1402_v28 = vsub.f32 1.0, %v1401_v55 }
 0x308   :  { %v1403_v57 = vmul.f32 %v2893_v43, %v1402_v28  ;;  %v4927_v28 = vld [vmem:[#allocation55_spill] sm:$0xff] }
 0x30a   :  { %v1404_v58 = vadd.f32 %v2893_v43, %v1403_v57 }
 0x30c   :  { %v1408_v26 = vsel %vm1407_vm9, %v2893_v43, %v1404_v58  ;;  %v4926_v43 = vld [vmem:[#allocation57_spill] sm:$0xff]  ;;  %vm4959_vm9 = vcmask 1046534  }
 0x30d   :  { %v1413_v22 = vsel %vm1410_vm10, %v1412_v13, %v1408_v26  ;;  %v4930_v13 = vld [vmem:[#allocation59_spill] sm:$0xff]  ;;  %v4931_v26 = vld [vmem:[#allocation62_spill] sm:$0xff]  ;;  %vm4960_vm10 = vcmask 1047559  }
 0x30e   :  { %v1419_v21 = vmul.f32 %v2895_v11, %v1413_v22  ;;  %v4932_v11 = vld [vmem:[#allocation65_spill] sm:$0xff]  ;;  %v4933_v22 = vld [vmem:[#allocation63_spill] sm:$0xff] }
 0x310   :  { %v4282_v41 = vpack.c.bf16 %v1419_v21, %v1419_v21  ;;  %v1428_v19 = vperm.slane %v1419_v21, 0  ;;  %v1422_v10 = vrot.slane %v1419_v21, 2  ;;  %v1421_v31 = vrot.slane %v1419_v21, 1 }
 0x311   :  { %v1424_v36 = vrot.slane %v1419_v21, 4  ;;  %v1425_v59 = vrot.slane %v1419_v21, 5  ;;  %v1423_v0 = vrot.slane %v1419_v21, 3  ;;  %v1427_v47 = vrot.slane %v1419_v21, 7 }
 0x312   :  { %1766 = vmatmul.bf16.vlgmr.msra.gmra.mxu0 %v4282_v41  ;;  %1792 = vmatmul.bf16.vlgmr.msra.gmra.mxu2 %v4282_v41  ;;  %v1444_v33 = vmul.f32 %v3978_v30, %v1428_v19  ;;  %v1430_v17 = vperm.slane %v1422_v10, 0  ;;  %v1429_v6 = vperm.slane %v1421_v31, 0  ;;  %v1426_v32 = vrot.slane %v1419_v21, 6  ;;  %v4934_v21 = vld [vmem:[#allocation66_spill] sm:$0xff]  ;;  %v4935_v19 = vld [vmem:[#allocation69_spill] sm:$0xff]  ;;  %v4936_v10 = vld [vmem:[#allocation67_spill] sm:$0xff] }
 0x313   :  { %1805 = vmatmul.bf16.vlgmr.msra.gmra.mxu3 %v4282_v41  ;;  %1888 = vmatpush.bf16.msra.mxu2 %v4917_v49  ;;  %v1432_v25 = vperm.slane %v1424_v36, 0  ;;  %v1433_v44 = vperm.slane %v1425_v59, 0  ;;  %v1431_v50 = vperm.slane %v1423_v0, 0  ;;  %v1435_v39 = vperm.slane %v1427_v47, 0  ;;  %v4937_v31 = vld [vmem:[#allocation70_spill] sm:$0xff] }
 0x314   :  { %1452 = vadd.xlane.f32.xlu0 %v1444_v33  ;;  %v1446_v63 = vmul.f32 %v3982_v37, %v1430_v17  ;;  %v1445_v42 = vmul.f32 %v3995_v51, %v1429_v6  ;;  %1862 = vmatpush.bf16.msra.mxu0 %v4918_v54  ;;  %v1434_v55 = vperm.slane %v1426_v32, 0  ;;  %v4938_v33 = vld [vmem:[#allocation73_spill] sm:$0xff]  ;;  %v4939_v17 = vld [vmem:[#allocation71_spill] sm:$0xff]  ;;  %v4940_v6 = vld [vmem:[#allocation74_spill] sm:$0xff] }
 0x315   :  { %1901 = vmatpush.bf16.msra.mxu3 %v4919_v48  ;;  %v1448_v5 = vmul.f32 %v3980_v7, %v1432_v25  ;;  %v1449_v1 = vmul.f32 %v3998_v18, %v1433_v44  ;;  %v1447_v9 = vmul.f32 %v4000_v27, %v1431_v50  ;;  %v1451_v57 = vmul.f32 %v4016_v45, %v1435_v39 }
 0x316   :  { %1456 = vadd.xlane.f32.xlu1 %v1446_v63  ;;  %1454 = vadd.xlane.f32.xlu2 %v1445_v42  ;;  %v1450_v58 = vmul.f32 %v4013_v15, %v1434_v55 }
 0x317   :  { %1889 = vmatpush.bf16.msra.mxu2 %v4920_v38 }
 0x318   :  { %1863 = vmatpush.bf16.msra.mxu0 %v4921_v61 }
 0x319   :  { %1902 = vmatpush.bf16.msra.mxu3 %v4922_v20 }
 0x31b   :  { %1890 = vmatpush.bf16.msra.mxu2 %v4923_v53 }
 0x31c   :  { %1460 = vadd.xlane.f32.xlu0 %v1448_v5  ;;  %1864 = vmatpush.bf16.msra.mxu0 %v4924_v23 }
 0x31d   :  { %1903 = vmatpush.bf16.msra.mxu3 %v4925_v62 }
 0x31e   :  { %1462 = vadd.xlane.f32.xlu1 %v1449_v1  ;;  %1458 = vadd.xlane.f32.xlu2 %v1447_v9 }
 0x31f   :  { %1891 = vmatpush.bf16.msra.mxu2 %v4926_v43 }
 0x320   :  { %1865 = vmatpush.bf16.msra.mxu0 %v4927_v28 }
 0x321   :  { %1904 = vmatpush.bf16.msra.mxu3 %v4928_v4 }
 0x322   :  { %1844 = vmatmul.bf16.vlgmr.msrb.gmra.mxu2 %v4282_v41 }
 0x323   :  { %1892 = vmatpush.bf16.msra.mxu2 %v4929_v35 }
 0x324   :  { %1466 = vadd.xlane.f32.xlu0 %v1451_v57  ;;  %1866 = vmatpush.bf16.msra.mxu0 %v4930_v13 }
 0x325   :  { %1905 = vmatpush.bf16.msra.mxu3 %v4931_v26 }
 0x326   :  { %1464 = vadd.xlane.f32.xlu2 %v1450_v58 }
 0x327   :  { %1893 = vmatpush.bf16.msra.mxu2 %v4932_v11 }
 0x328   :  { %1867 = vmatpush.bf16.msra.mxu0 %v4933_v22 }
 0x329   :  { %1906 = vmatpush.bf16.msra.mxu3 %v4934_v21 }
 0x32b   :  { %1894 = vmatpush.bf16.msra.mxu2 %v4935_v19 }
 0x32c   :  { %1868 = vmatpush.bf16.msra.mxu0 %v4936_v10 }
 0x32d   :  { %1907 = vmatpush.bf16.msra.mxu3 %v4937_v31 }
 0x32f   :  { %1895 = vmatpush.bf16.msra.mxu2 %v4938_v33 }
 0x330   :  { %1869 = vmatpush.bf16.msra.mxu0 %v4939_v17 }
 0x331   :  { %1908 = vmatpush.bf16.msra.mxu3 %v4940_v6 }
 0x387   :  { %v1453_v36 = vpop.xlane.xlu0 %1452 }
 0x388   :  { %v1468_v49 = vsel %vm895_vm12, %v1453_v36, -1e+30 }
 0x389   :  { %v1476_v63 = vsel %vm911_vm13, %v1468_v49, -inf  ;;  %v1457_v42 = vpop.xlane.xlu1 %1456  ;;  %v1455_v59 = vpop.xlane.xlu2 %1454 }
 0x38a   :  { %v1477_v0 = vrot.slane %v1476_v63, 4  ;;  %v1470_v48 = vsel %vm897_vm15, %v1457_v42, -1e+30  ;;  %v1469_v38 = vsel %vm896_vm0, %v1455_v59, -1e+30 }
 0x38b   :  { %v1490_v44 = vsel %vm911_vm13, %v1470_v48, -inf  ;;  %v1483_v50 = vsel %vm911_vm13, %v1469_v38, -inf }
 0x38c   :  { %v1478_v61 = vmax.f32 %v1476_v63, %v1477_v0  ;;  %v1491_v20 = vrot.slane %v1490_v44, 4  ;;  %v1484_v5 = vrot.slane %v1483_v50, 4 }
 0x38e   :  { %v1479_v47 = vrot.slane %v1478_v61, 2  ;;  %v1492_v53 = vmax.f32 %v1490_v44, %v1491_v20  ;;  %v1485_v1 = vmax.f32 %v1483_v50, %v1484_v5 }
 0x38f   :  { %v4329_v9 = vpop.f32.mrf.mxu0  ;;  %v1461_v32 = vpop.xlane.xlu0 %1460 }
 0x390   :  { %v1480_v23 = vmax.f32 %v1478_v61, %v1479_v47  ;;  %v1493_v62 = vrot.slane %v1492_v53, 2  ;;  %v1486_v39 = vrot.slane %v1485_v1, 2  ;;  %v1472_v55 = vsel %vm899_vm14, %v1461_v32, -1e+30 }
 0x391   :  { %v1463_v28 = vpop.xlane.xlu1 %1462  ;;  %v1459_v4 = vpop.xlane.xlu2 %1458  ;;  %v1504_v13 = vsel %vm911_vm13, %v1472_v55, -inf }
 0x392   :  { %v1481_v57 = vrot.slane %v1480_v23, 1  ;;  %v1494_v35 = vmax.f32 %v1492_v53, %v1493_v62  ;;  %v1487_v58 = vmax.f32 %v1485_v1, %v1486_v39  ;;  %v1505_v26 = vrot.slane %v1504_v13, 4 }
 0x393   :  { %v4336_v22 = vsel %vm900_vm1, %v1463_v28, -1e+30  ;;  %v4340_v19 = vsel %vm898_vm2, %v1459_v4, -1e+30 }
 0x394   :  { %v1482_v10 = vmax.f32 %v1480_v23, %v1481_v57  ;;  %v1495_v31 = vrot.slane %v1494_v35, 1  ;;  %v1488_v33 = vrot.slane %v1487_v58, 1  ;;  %v1511_v17 = vsel %vm911_vm13, %v4336_v22, -inf }
 0x395   :  { %v1506_v6 = vmax.f32 %v1504_v13, %v1505_v26  ;;  %v1512_v36 = vrot.slane %v1511_v17, 4  ;;  %v1497_v63 = vsel %vm911_vm13, %v4340_v19, -inf  ;;  %v4346_v42 = vpop.f32.mrf.mxu2 }
 0x396   :  { %v1532_v59 = vsub.f32 %v1468_v49, %v1482_v10  ;;  %v1496_v0 = vmax.f32 %v1494_v35, %v1495_v31  ;;  %v1489_v44 = vmax.f32 %v1487_v58, %v1488_v33  ;;  %v1498_v50 = vrot.slane %v1497_v63, 4  ;;  %v4348_v61 = vpop.f32.mrf.mxu3 }
 0x397   :  { %v1507_v20 = vrot.slane %v1506_v6, 2  ;;  %v1513_v5 = vmax.f32 %v1511_v17, %v1512_v36  ;;  %v1769_v47 = vpop.f32.mrf.mxu0  ;;  %v1467_v53 = vpop.xlane.xlu0 %1466 }
 0x398   :  { %v1540_v1 = vmul.f32 1.442695, %v1532_v59  ;;  %v1534_v32 = vsub.f32 %v1470_v48, %v1496_v0  ;;  %v1533_v23 = vsub.f32 %v1469_v38, %v1489_v44  ;;  %v1499_v62 = vmax.f32 %v1497_v63, %v1498_v50 }
 0x399   :  { %v1508_v39 = vmax.f32 %v1506_v6, %v1507_v20  ;;  %v1514_v28 = vrot.slane %v1513_v5, 2  ;;  %v4352_v57 = vsel %vm902_vm4, %v1467_v53, -1e+30  ;;  %v1465_v49 = vpop.xlane.xlu2 %1464 }
 0x39a   :  { %2896 = vpow2.f32 %v1540_v1  ;;  %v1544_v35 = vmul.f32 1.442695, %v1534_v32  ;;  %v1542_v58 = vmul.f32 1.442695, %v1533_v23  ;;  %v1500_v13 = vrot.slane %v1499_v62, 2 }
 0x39b   :  { %v1509_v26 = vrot.slane %v1508_v39, 1  ;;  %v1515_v10 = vmax.f32 %v1513_v5, %v1514_v28  ;;  %v1525_v31 = vsel %vm911_vm13, %v4352_v57, -inf  ;;  %v1474_v48 = vsel %vm901_vm3, %v1465_v49, -1e+30 }
 0x39c   :  { %2898 = vpow2.f32 %v1544_v35  ;;  %v1501_v38 = vmax.f32 %v1499_v62, %v1500_v13  ;;  %v1526_v17 = vrot.slane %v1525_v31, 4  ;;  %v1518_v6 = vsel %vm911_vm13, %v1474_v48, -inf }
 0x39d   :  { %2900 = vpow2.f32 %v1542_v58  ;;  %v1510_v36 = vmax.f32 %v1508_v39, %v1509_v26  ;;  %v1516_v63 = vrot.slane %v1515_v10, 1  ;;  %v1519_v59 = vrot.slane %v1518_v6, 4  ;;  %v1795_v0 = vpop.f32.mrf.mxu2  ;;  %v4363_v39 = vld [vmem:[%s4584_s1] sm:$0xff] }
 0x39e   :  { %v1502_v44 = vrot.slane %v1501_v38, 1  ;;  %v1527_v50 = vmax.f32 %v1525_v31, %v1526_v17  ;;  %v1808_v20 = vpop.f32.mrf.mxu3  ;;  %4948 = vst [vmem:[#allocation44_spill] sm:$0xff] %v4363_v39  ;;  %v4384_v0 = vld [vmem:[%s4584_s1 + $0x8] sm:$0xff] }
 0x39f   :  { %v1536_v5 = vsub.f32 %v1472_v55, %v1510_v36  ;;  %v1517_v47 = vmax.f32 %v1515_v10, %v1516_v63  ;;  %v1520_v53 = vmax.f32 %v1518_v6, %v1519_v59  ;;  %v4374_v36 = vld [vmem:[%s4584_s1 + $0x10] sm:$0xff]  ;;  %4950 = vst [vmem:[#allocation52_spill] sm:$0xff] %v4384_v0 }
 0x3a0   :  { %v2897_v1 = vpop.eup %2896  ;;  %v1503_v32 = vmax.f32 %v1501_v38, %v1502_v44  ;;  %v1528_v23 = vrot.slane %v1527_v50, 2  ;;  %4949 = vst [vmem:[#allocation48_spill] sm:$0xff] %v4374_v36 }
 0x3a1   :  { %v1548_v28 = vmul.f32 1.442695, %v1536_v5  ;;  %v1537_v62 = vsub.f32 %v4336_v22, %v1517_v47  ;;  %v1521_v49 = vrot.slane %v1520_v53, 2  ;;  %v4366_v35 = vmul.f32 %v4363_v39, %v2897_v1 }
 0x3a2   :  { %v2899_v58 = vpop.eup %2898  ;;  %v1535_v55 = vsub.f32 %v4340_v19, %v1503_v32  ;;  %v1529_v13 = vmax.f32 %v1527_v50, %v1528_v23 }
 0x3a3   :  { %v2901_v26 = vpop.eup %2900  ;;  %2902 = vpow2.f32 %v1548_v28  ;;  %v1550_v10 = vmul.f32 1.442695, %v1537_v62  ;;  %v1522_v31 = vmax.f32 %v1520_v53, %v1521_v49  ;;  %v1564_v22 = vsel %vm911_vm13, %v4366_v35, 0.0 }
 0x3a4   :  { %v1546_v38 = vmul.f32 1.442695, %v1535_v55  ;;  %v1530_v17 = vrot.slane %v1529_v13, 1  ;;  %v1565_v6 = vrot.slane %v1564_v22, 4  ;;  %v4377_v63 = vmul.f32 %v4374_v36, %v2899_v58 }
 0x3a5   :  { %2904 = vpow2.f32 %v1550_v10  ;;  %v1523_v19 = vrot.slane %v1522_v31, 1  ;;  %v4379_v59 = vpop.f32.mrf.mxu2  ;;  %v4387_v44 = vmul.f32 %v4384_v0, %v2901_v26 }
 0x3a6   :  { %2906 = vpow2.f32 %v1546_v38  ;;  %v1531_v50 = vmax.f32 %v1529_v13, %v1530_v17  ;;  %v1566_v20 = vadd.f32 %v1565_v6, %v1564_v22  ;;  %v1578_v47 = vsel %vm911_vm13, %v4377_v63, 0.0 }
 0x3a7   :  { %v1524_v5 = vmax.f32 %v1522_v31, %v1523_v19  ;;  %v1571_v53 = vsel %vm911_vm13, %v4387_v44, 0.0  ;;  %v1579_v23 = vrot.slane %v1578_v47, 4  ;;  %v4397_v31 = vld [vmem:[%s4584_s1 + $0x20] sm:$0xff] }
 0x3a8   :  { %v1539_v1 = vsub.f32 %v4352_v57, %v1531_v50  ;;  %v1567_v32 = vrot.slane %v1566_v20, 2  ;;  %v1572_v28 = vrot.slane %v1571_v53, 4  ;;  %4951 = vst [vmem:[#allocation56_spill] sm:$0xff] %v4397_v31 }
 0x3a9   :  { %v2903_v62 = vpop.eup %2902  ;;  %v1538_v49 = vsub.f32 %v1474_v48, %v1524_v5  ;;  %v1580_v26 = vadd.f32 %v1579_v23, %v1578_v47  ;;  %v4415_v47 = vld [vmem:[%s4584_s1 + $0x18] sm:$0xff] }
 0x3aa   :  { %v1554_v58 = vmul.f32 1.442695, %v1539_v1  ;;  %v1568_v55 = vadd.f32 %v1567_v32, %v1566_v20  ;;  %v1573_v10 = vadd.f32 %v1572_v28, %v1571_v53  ;;  %v4400_v38 = vmul.f32 %v4397_v31, %v2903_v62  ;;  %v4407_v20 = vld [vmem:[%s4584_s1 + $0x28] sm:$0xff]  ;;  %4953 = vst [vmem:[#allocation64_spill] sm:$0xff] %v4415_v47 }
 0x3ab   :  { %v2905_v13 = vpop.eup %2904  ;;  %v1552_v22 = vmul.f32 1.442695, %v1538_v49  ;;  %v1581_v6 = vrot.slane %v1580_v26, 2  ;;  %4952 = vst [vmem:[#allocation60_spill] sm:$0xff] %v4407_v20 }
 0x3ac   :  { %v2907_v57 = vpop.eup %2906  ;;  %2908 = vpow2.f32 %v1554_v58  ;;  %v1569_v17 = vrot.slane %v1568_v55, 1  ;;  %v1574_v19 = vrot.slane %v1573_v10, 2  ;;  %v1592_v50 = vsel %vm911_vm13, %v4400_v38, 0.0 }
 0x3ad   :  { %2910 = vpow2.f32 %v1552_v22  ;;  %v1847_v48 = vpop.f32.mrf.mxu2  ;;  %v4410_v5 = vmul.f32 %v4407_v20, %v2905_v13  ;;  %v4418_v53 = vmul.f32 %v4415_v47, %v2907_v57  ;;  %v1582_v32 = vadd.f32 %v1581_v6, %v1580_v26  ;;  %v4427_v6 = vld [vmem:[%s4584_s1 + $0x38] sm:$0xff] }
 0x3ae   :  { %v1570_v1 = vadd.f32 %v1569_v17, %v1568_v55  ;;  %v1575_v23 = vadd.f32 %v1574_v19, %v1573_v10  ;;  %v1593_v28 = vrot.slane %v1592_v50, 4  ;;  %4954 = vst [vmem:[#allocation33_spill] sm:$0xff] %v4427_v6 }
 0x3af   :  { %v1599_v62 = vsel %vm911_vm13, %v4410_v5, 0.0  ;;  %v1585_v49 = vsel %vm911_vm13, %v4418_v53, 0.0  ;;  %v1583_v13 = vrot.slane %v1582_v32, 1 }
 0x3b0   :  { %v1620_v58 = vmax.f32 %v1570_v1, 1e-30  ;;  %v1576_v22 = vrot.slane %v1575_v23, 1  ;;  %v1594_v48 = vadd.f32 %v1593_v28, %v1592_v50  ;;  %v1600_v31 = vrot.slane %v1599_v62, 4  ;;  %v4433_v28 = vld [vmem:[%s4584_s1 + $0x30] sm:$0xff] }
 0x3b1   :  { %v1586_v20 = vrot.slane %v1585_v49, 4  ;;  %v1584_v57 = vadd.f32 %v1583_v13, %v1582_v32  ;;  %4955 = vst [vmem:[#allocation68_spill] sm:$0xff] %v4433_v28 }
 0x3b2   :  { %v2909_v0 = vpop.eup %2908  ;;  %2912 = vrcp.f32 %v1620_v58  ;;  %v1577_v47 = vadd.f32 %v1576_v22, %v1575_v23  ;;  %v1595_v55 = vrot.slane %v1594_v48, 2  ;;  %v1601_v10 = vadd.f32 %v1600_v31, %v1599_v62 }
 0x3b3   :  { %v2911_v26 = vpop.eup %2910  ;;  %v1587_v17 = vadd.f32 %v1586_v20, %v1585_v49  ;;  %v1563_v19 = vmul.f32 %v4427_v6, %v2909_v0  ;;  %v1622_v1 = vmax.f32 %v1584_v57, 1e-30 }
 0x3b4   :  { %v1621_v36 = vmax.f32 %v1577_v47, 1e-30  ;;  %v1596_v50 = vadd.f32 %v1595_v55, %v1594_v48  ;;  %v1562_v32 = vmul.f32 %v4433_v28, %v2911_v26  ;;  %v1602_v23 = vrot.slane %v1601_v10, 2 }
 0x3b5   :  { %v1588_v31 = vrot.slane %v1587_v17, 2  ;;  %v1613_v20 = vsel %vm911_vm13, %v1563_v19, 0.0  ;;  %2914 = vrcp.f32 %v1622_v1 }
 0x3b6   :  { %v1597_v62 = vrot.slane %v1596_v50, 1  ;;  %v1614_v49 = vrot.slane %v1613_v20, 4  ;;  %v1606_v58 = vsel %vm911_vm13, %v1562_v32, 0.0  ;;  %2916 = vrcp.f32 %v1621_v36 }
 0x3b7   :  { %v1603_v0 = vadd.f32 %v1602_v23, %v1601_v10  ;;  %v1589_v47 = vadd.f32 %v1588_v31, %v1587_v17  ;;  %v1607_v13 = vrot.slane %v1606_v58, 4 }
 0x3b8   :  { %v2913_v22 = vpop.eup %2912  ;;  %v1598_v48 = vadd.f32 %v1597_v62, %v1596_v50  ;;  %v1615_v57 = vadd.f32 %v1614_v49, %v1613_v20 }
 0x3b9   :  { %v1636_v55 = vmul.f32 %v2913_v22, %v4366_v35  ;;  %v1604_v6 = vrot.slane %v1603_v0, 1  ;;  %v1590_v26 = vrot.slane %v1589_v47, 1  ;;  %v1608_v28 = vadd.f32 %v1607_v13, %v1606_v58 }
 0x3ba   :  { %v1624_v39 = vmax.f32 %v1598_v48, 1e-30  ;;  %v1616_v4 = vrot.slane %v1615_v57, 2 }
 0x3bb   :  { %1646 = vperm.xlu1 %2831, %v1636_v55   ;;  %v1605_v1 = vadd.f32 %v1604_v6, %v1603_v0  ;;  %v1591_v33 = vadd.f32 %v1590_v26, %v1589_v47  ;;  %v1609_v43 = vrot.slane %v1608_v28, 2  ;;  %v2915_v11 = vpop.eup %2914 }
 0x3bc   :  { %2918 = vrcp.f32 %v1624_v39  ;;  %v1617_v36 = vadd.f32 %v1616_v4, %v1615_v57  ;;  %v2917_v10 = vpop.eup %2916  ;;  %v1638_v17 = vmul.f32 %v2915_v11, %v4377_v63 }
 0x3bd   :  { %v1625_v23 = vmax.f32 %v1605_v1, 1e-30  ;;  %v1623_v50 = vmax.f32 %v1591_v33, 1e-30  ;;  %v1610_v31 = vadd.f32 %v1609_v43, %v1608_v28  ;;  %v1637_v35 = vmul.f32 %v2917_v10, %v4387_v44 }
 0x3be   :  { %v1618_v20 = vrot.slane %v1617_v36, 1  ;;  %1656 = vperm.xlu0 %2830, %v1638_v17  }
 0x3bf   :  { %2920 = vrcp.f32 %v1625_v23  ;;  %v1611_v62 = vrot.slane %v1610_v31, 1  ;;  %1651 = vperm.xlu2 %2829, %v1637_v35  }
 0x3c0   :  { %2922 = vrcp.f32 %v1623_v50  ;;  %v1619_v6 = vadd.f32 %v1618_v20, %v1617_v36 }
 0x3c1   :  { %v1612_v49 = vadd.f32 %v1611_v62, %v1610_v31 }
 0x3c2   :  { %v2919_v58 = vpop.eup %2918  ;;  %v1627_v0 = vmax.f32 %v1619_v6, 1e-30 }
 0x3c3   :  { %v1626_v39 = vmax.f32 %v1612_v49, 1e-30  ;;  %v1640_v11 = vmul.f32 %v2919_v58, %v4400_v38 }
 0x3c4   :  { %2924 = vrcp.f32 %v1627_v0 }
 0x3c5   :  { %v2921_v4 = vpop.eup %2920  ;;  %2926 = vrcp.f32 %v1626_v39 }
 0x3c6   :  { %v2923_v33 = vpop.eup %2922  ;;  %v1641_v43 = vmul.f32 %v2921_v4, %v4410_v5  ;;  %1666 = vperm.xlu0 %2830, %v1640_v11  }
 0x3c7   :  { %v1639_v63 = vmul.f32 %v2923_v33, %v4418_v53 }
 0x3c8   :  { %1671 = vperm.xlu2 %2829, %v1641_v43  }
 0x3c9   :  { %1661 = vperm.xlu1 %2831, %v1639_v63  }
 0x3ca   :  { %v2925_v44 = vpop.eup %2924 }
 0x3cb   :  { %v2927_v28 = vpop.eup %2926  ;;  %v1643_v47 = vmul.f32 %v2925_v44, %v1563_v19 }
 0x3cc   :  { %v1642_v13 = vmul.f32 %v2927_v28, %v1562_v32 }
 0x3ce   :  { %1681 = vperm.xlu0 %2830, %v1643_v47  }
 0x3d1   :  { %1676 = vperm.xlu1 %2831, %v1642_v13  }
 0x419   :  { %v1652_v22 = vpop.permute.xlu2 %1651 }
 0x41a   :  { %v1685_v48 = vmul.f32 %v3995_v51, %v1652_v22 }
 0x41c   :  { %v1698_v26 = vrot.slane %v1685_v48, 4 }
 0x41e   :  { %v1699_v17 = vadd.f32 %v1698_v26, %v1685_v48 }
 0x420   :  { %v1700_v50 = vrot.slane %v1699_v17, 2 }
 0x422   :  { %v1672_v36 = vpop.permute.xlu2 %1671  ;;  %v1701_v39 = vadd.f32 %v1700_v50, %v1699_v17 }
 0x423   :  { %v1689_v19 = vmul.f32 %v3998_v18, %v1672_v36 }
 0x424   :  { %v1702_v47 = vrot.slane %v1701_v39, 1 }
 0x425   :  { %v1722_v62 = vrot.slane %v1689_v19, 4 }
 0x427   :  { %v1723_v43 = vadd.f32 %v1722_v62, %v1689_v19 }
 0x42d   :  { %v1647_v57 = vpop.permute.xlu1 %1646 }
 0x42e   :  { %v1684_v38 = vmul.f32 %v3978_v30, %v1647_v57 }
 0x430   :  { %v1692_v55 = vrot.slane %v1684_v38, 4  ;;  %v1657_v5 = vpop.permute.xlu0 %1656 }
 0x431   :  { %v1686_v1 = vmul.f32 %v3982_v37, %v1657_v5 }
 0x432   :  { %v1693_v53 = vadd.f32 %v1692_v55, %v1684_v38  ;;  %v1724_v55 = vrot.slane %v1723_v43, 2 }
 0x433   :  { %v1704_v10 = vrot.slane %v1686_v1, 4 }
 0x434   :  { %v1694_v32 = vrot.slane %v1693_v53, 2 }
 0x435   :  { %v1705_v23 = vadd.f32 %v1704_v10, %v1686_v1  ;;  %v1703_v10 = vadd.f32 %v1702_v47, %v1701_v39 }
 0x436   :  { %v1695_v6 = vadd.f32 %v1694_v32, %v1693_v53 }
 0x437   :  { %v1706_v31 = vrot.slane %v1705_v23, 2 }
 0x438   :  { %v1667_v35 = vpop.permute.xlu0 %1666  ;;  %v1696_v63 = vrot.slane %v1695_v6, 1 }
 0x439   :  { %v1688_v20 = vmul.f32 %v3980_v7, %v1667_v35  ;;  %v1707_v4 = vadd.f32 %v1706_v31, %v1705_v23  ;;  %v1725_v31 = vadd.f32 %v1724_v55, %v1723_v43 }
 0x43a   :  { %v1697_v26 = vadd.f32 %v1696_v63, %v1695_v6 }
 0x43b   :  { %v1662_v49 = vpop.permute.xlu1 %1661  ;;  %v1716_v58 = vrot.slane %v1688_v20, 4  ;;  %v1708_v13 = vrot.slane %v1707_v4, 1 }
 0x43c   :  { %v1687_v0 = vmul.f32 %v4000_v27, %v1662_v49  ;;  %v1748_v35 = vsel %vm1184_vm5, %v1703_v10, %v1697_v26 }
 0x43d   :  { %v1717_v11 = vadd.f32 %v1716_v58, %v1688_v20  ;;  %v1709_v17 = vadd.f32 %v1708_v13, %v1707_v4 }
 0x43e   :  { %v1710_v33 = vrot.slane %v1687_v0, 4 }
 0x43f   :  { %v1718_v44 = vrot.slane %v1717_v11, 2  ;;  %v1749_v58 = vsel %vm1186_vm6, %v1709_v17, %v1748_v35 }
 0x440   :  { %v1711_v28 = vadd.f32 %v1710_v33, %v1687_v0  ;;  %v1682_v22 = vpop.permute.xlu0 %1681  ;;  %v1726_v33 = vrot.slane %v1725_v31, 1 }
 0x441   :  { %v1719_v48 = vadd.f32 %v1718_v44, %v1717_v11  ;;  %v1691_v38 = vmul.f32 %v4016_v45, %v1682_v22 }
 0x442   :  { %v1712_v57 = vrot.slane %v1711_v28, 2  ;;  %v1727_v47 = vadd.f32 %v1726_v33, %v1725_v31 }
 0x443   :  { %v1677_v5 = vpop.permute.xlu1 %1676  ;;  %v1734_v53 = vrot.slane %v1691_v38, 4  ;;  %v1720_v23 = vrot.slane %v1719_v48, 1 }
 0x444   :  { %v1713_v1 = vadd.f32 %v1712_v57, %v1711_v28  ;;  %v1690_v36 = vmul.f32 %v4013_v15, %v1677_v5 }
 0x445   :  { %v1735_v32 = vadd.f32 %v1734_v53, %v1691_v38  ;;  %v1721_v6 = vadd.f32 %v1720_v23, %v1719_v48 }
 0x446   :  { %v1714_v19 = vrot.slane %v1713_v1, 1  ;;  %v1728_v50 = vrot.slane %v1690_v36, 4 }
 0x447   :  { %v1736_v62 = vrot.slane %v1735_v32, 2 }
 0x448   :  { %v1715_v20 = vadd.f32 %v1714_v19, %v1713_v1  ;;  %v1729_v49 = vadd.f32 %v1728_v50, %v1690_v36 }
 0x449   :  { %v1737_v0 = vadd.f32 %v1736_v62, %v1735_v32 }
 0x44a   :  { %v1730_v11 = vrot.slane %v1729_v49, 2  ;;  %v1750_v63 = vsel %vm4956_vm8, %v1715_v20, %v1749_v58 }
 0x44b   :  { %v1738_v39 = vrot.slane %v1737_v0, 1  ;;  %v1751_v44 = vsel %vm4957_vm11, %v1721_v6, %v1750_v63 }
 0x44c   :  { %v1731_v4 = vadd.f32 %v1730_v11, %v1729_v49  ;;  %v1752_v22 = vsel %vm4958_vm7, %v1727_v47, %v1751_v44 }
 0x44d   :  { %v1739_v43 = vadd.f32 %v1738_v39, %v1737_v0 }
 0x44e   :  { %v1732_v28 = vrot.slane %v1731_v4, 1 }
 0x450   :  { %v1733_v13 = vadd.f32 %v1732_v28, %v1731_v4 }
 0x452   :  { %v1753_v57 = vsel %vm4959_vm9, %v1733_v13, %v1752_v22 }
 0x453   :  { %v1754_v38 = vsel %vm4960_vm10, %v1739_v43, %v1753_v57 }
 0x454   :  { %v1757_v48 = vpack.c.bf16 %v1754_v38, %v1754_v38 }
 0x456   :  { %1779 = vmatmul.bf16.vlgmr.msra.gmra.mxu1 %v1757_v48  ;;  %1818 = vmatmul.bf16.vlgmr.msrb.gmra.mxu0 %v1757_v48 }
 0x457   :  { %1857 = vmatmul.bf16.vlgmr.msrb.gmra.mxu3 %v1757_v48  ;;  %1896 = vmatmul.bf16.vlgmr.msra.gmra.mxu2 %v1757_v48 }
 0x458   :  { %1875 = vmatpush.bf16.msra.mxu1 %v4863_v34  ;;  %v1768_v34 = vadd.f32 %v4329_v9, %v4910_v46 }
 0x45c   :  { %1876 = vmatpush.bf16.msra.mxu1 %v4864_v24 }
 0x460   :  { %1877 = vmatpush.bf16.msra.mxu1 %v4865_v60 }
 0x464   :  { %1878 = vmatpush.bf16.msra.mxu1 %v4866_v3 }
 0x466   :  { %1831 = vmatmul.bf16.vlgmr.msrb.gmra.mxu1 %v4282_v41  ;;  %1870 = vmatmul.bf16.vlgmr.msra.gmra.mxu0 %v4282_v41 }
 0x467   :  { %1909 = vmatmul.bf16.vlgmr.msra.gmra.mxu3 %v4282_v41 }
 0x468   :  { %1879 = vmatpush.bf16.msra.mxu1 %v4867_v12 }
 0x46c   :  { %1880 = vmatpush.bf16.msra.mxu1 %v4868_v16 }
 0x470   :  { %1881 = vmatpush.bf16.msra.mxu1 %v4870_v29  ;;  %v1807_v29 = vadd.f32 %v4348_v61, %v4913_v14 }
 0x474   :  { %1882 = vmatpush.bf16.msra.mxu1 %v4874_v56 }
 0x477   :  { %1883 = vmatmul.bf16.vlgmr.msra.gmra.mxu1 %v4282_v41 }
 0x4d3   :  { %v1780_v24 = vpop.f32.mrf.mxu1  ;;  %v1819_v60 = vpop.f32.mrf.mxu0 }
 0x4d4   :  { %v1781_v3 = vadd.f32 %v1780_v24, %v1768_v34  ;;  %v1820_v41 = vadd.f32 %v1819_v60, %v1807_v29 }
 0x4d6   :  { %v1794_v55 = vadd.f32 %v4346_v42, %v1781_v3  ;;  %v1846_v42 = vadd.f32 %v4379_v59, %v4914_v40 }
 0x4d8   :  { %v2709_v26 = vmul.f32 -1.442695, %v1794_v55 }
 0x4da   :  { %2928 = vpow2.f32 %v2709_v26  ;;  %v1858_v5 = vpop.f32.mrf.mxu3  ;;  %v1897_v12 = vpop.f32.mrf.mxu2 }
 0x4db   :  { %v1782_v1 = vpop.f32.mrf.mxu1  ;;  %v1821_v16 = vpop.f32.mrf.mxu0  ;;  %v1859_v19 = vadd.f32 %v1858_v5, %v1846_v42 }
 0x4e0   :  { %v2929_v53 = vpop.eup %2928 }
 0x4e1   :  { %v1917_v56 = vadd.f32 1.0, %v2929_v53 }
 0x4e2   :  { %v1860_v36 = vpop.f32.mrf.mxu3  ;;  %v1899_v10 = vpop.f32.mrf.mxu2 }
 0x4e3   :  { %2930 = vrcp.f32 %v1917_v56  ;;  %v1832_v46 = vpop.f32.mrf.mxu1  ;;  %v1871_v9 = vpop.f32.mrf.mxu0  ;;  %v1929_v62 = vand.u32 2147483648, %v1917_v56  ;;  %v1927_v6 = vand.u32 2147483647, %v1917_v56  ;;  %vm1923_vm11 = vweird.f32 %v1917_v56 }
 0x4e4   :  { %v1833_v17 = vadd.f32 %v1832_v46, %v1820_v41  ;;  %v1872_v50 = vadd.f32 %v1871_v9, %v1859_v19 }
 0x4e5   :  { %v1930_v40 = vor.u32 1.1754944e-38, %v1929_v62  ;;  %vm1928_vm9 = vcmp.eq.f32.partialorder %v1927_v6, 8.507059e+37 }
 0x4e6   :  { %v2710_v23 = vmul.f32 -1.442695, %v1833_v17 }
 0x4e8   :  { %2932 = vpow2.f32 %v2710_v23 }
 0x4e9   :  { %v2931_v32 = vpop.eup %2930  ;;  %2934 = vtanh.f32 %v1872_v50 }
 0x4ea   :  { %v1919_v31 = vmul.f32 %v2931_v32, %v1917_v56  ;;  %v1910_v35 = vpop.f32.mrf.mxu3  ;;  %vm1924_vm8 = vweird.f32 %v2931_v32 }
 0x4eb   :  { %v1834_v20 = vpop.f32.mrf.mxu1  ;;  %v1873_v14 = vpop.f32.mrf.mxu0  ;;  %vm1925_vm7 = vmor %vm1923_vm11, %vm1924_vm8 }
 0x4ec   :  { %v1920_v61 = vsub.f32 1.0, %v1919_v31 }
 0x4ee   :  { %v2933_v49 = vpop.eup %2932  ;;  %v1921_v58 = vmul.f32 %v2931_v32, %v1920_v61 }
 0x4ef   :  { %v1936_v0 = vadd.f32 1.0, %v2933_v49  ;;  %v2935_v63 = vpop.eup %2934 }
 0x4f0   :  { %v1922_v11 = vadd.f32 %v2931_v32, %v1921_v58 }
 0x4f1   :  { %2936 = vrcp.f32 %v1936_v0  ;;  %v1948_v38 = vand.u32 2147483648, %v1936_v0  ;;  %v1946_v24 = vand.u32 2147483647, %v1936_v0  ;;  %vm1942_vm8 = vweird.f32 %v1936_v0 }
 0x4f2   :  { %v1926_v59 = vsel %vm1925_vm7, %v2931_v32, %v1922_v11  ;;  %v1912_v33 = vpop.f32.mrf.mxu3 }
 0x4f3   :  { %v1931_v39 = vsel %vm1928_vm9, %v1930_v40, %v1926_v59  ;;  %v1949_v55 = vor.u32 1.1754944e-38, %v1948_v38  ;;  %vm1947_vm7 = vcmp.eq.f32.partialorder %v1946_v24, 8.507059e+37 }
 0x4f4   :  { %v1973_v4 = vmul.f32 %v2935_v63, %v1931_v39  ;;  %v1884_v44 = vpop.f32.mrf.mxu1 }
 0x4f5   :  { %v1885_v28 = vadd.f32 %v1884_v44, %v4915_v2 }
 0x4f7   :  { %v2937_v47 = vpop.eup %2936  ;;  %v1898_v43 = vadd.f32 %v1897_v12, %v1885_v28 }
 0x4f8   :  { %v1938_v13 = vmul.f32 %v2937_v47, %v1936_v0  ;;  %vm1943_vm10 = vweird.f32 %v2937_v47 }
 0x4f9   :  { %v1911_v22 = vadd.f32 %v1910_v35, %v1898_v43  ;;  %vm1944_vm11 = vmor %vm1942_vm8, %vm1943_vm10 }
 0x4fa   :  { %v1939_v57 = vsub.f32 1.0, %v1938_v13 }
 0x4fb   :  { %v2711_v48 = vmul.f32 -1.442695, %v1911_v22 }
 0x4fc   :  { %v1940_v34 = vmul.f32 %v2937_v47, %v1939_v57  ;;  %v1886_v60 = vpop.f32.mrf.mxu1 }
 0x4fd   :  { %2938 = vpow2.f32 %v2711_v48 }
 0x4fe   :  { %v1941_v3 = vadd.f32 %v2937_v47, %v1940_v34 }
 0x500   :  { %v1945_v26 = vsel %vm1944_vm11, %v2937_v47, %v1941_v3 }
 0x501   :  { %v1950_v5 = vsel %vm1947_vm7, %v1949_v55, %v1945_v26 }
 0x502   :  { %v1972_v2 = vmul.f32 %v1950_v5, %v4279_v52 }
 0x503   :  { %v2939_v12 = vpop.eup %2938 }
 0x504   :  { %v1974_v1 = vadd.f32 %v1973_v4, %v1972_v2  ;;  %v1956_v16 = vadd.f32 1.0, %v2939_v12 }
 0x506   :  { %2940 = vrcp.f32 %v1956_v16  ;;  %v1968_v41 = vand.u32 2147483648, %v1956_v16  ;;  %v1966_v10 = vand.u32 2147483647, %v1956_v16  ;;  %vm1962_vm10 = vweird.f32 %v1956_v16 }
 0x507   :  { %2942 = vtanh.f32 %v1974_v1 }
 0x508   :  { %v1969_v9 = vor.u32 1.1754944e-38, %v1968_v41  ;;  %vm1967_vm11 = vcmp.eq.f32.partialorder %v1966_v10, 8.507059e+37 }
 0x50c   :  { %v2941_v53 = vpop.eup %2940 }
 0x50d   :  { %v1958_v29 = vmul.f32 %v2941_v53, %v1956_v16  ;;  %vm1963_vm9 = vweird.f32 %v2941_v53  ;;  %v2943_v42 = vpop.eup %2942 }
 0x50e   :  { %vm1964_vm8 = vmor %vm1962_vm10, %vm1963_vm9 }
 0x50f   :  { %v1959_v56 = vsub.f32 1.0, %v1958_v29 }
 0x511   :  { %v1960_v36 = vmul.f32 %v2941_v53, %v1959_v56 }
 0x513   :  { %v1961_v46 = vadd.f32 %v2941_v53, %v1960_v36 }
 0x515   :  { %v1965_v17 = vsel %vm1964_vm8, %v2941_v53, %v1961_v46 }
 0x516   :  { %v1970_v52 = vsel %vm1967_vm11, %v1969_v9, %v1965_v17 }
 0x517   :  { %v1976_v23 = vmul.f32 %v2943_v42, %v1970_v52 }
 0x519   :  { %v1985_v19 = vperm.slane %v1976_v23, 0  ;;  %v1979_v32 = vrot.slane %v1976_v23, 2  ;;  %v1978_v50 = vrot.slane %v1976_v23, 1  ;;  %2313 = vst [vmem:[%s4585_s4] sm:$0xff] %v1976_v23  ;;  %v1980_v14 = vrot.slane %v1976_v23, 3 }
 0x51a   :  { %v1982_v49 = vrot.slane %v1976_v23, 5  ;;  %v1981_v58 = vrot.slane %v1976_v23, 4  ;;  %v1983_v59 = vrot.slane %v1976_v23, 6  ;;  %v1984_v39 = vrot.slane %v1976_v23, 7 }
 0x51b   :  { %v2001_v31 = vmul.f32 %v3978_v30, %v1985_v19  ;;  %v1987_v35 = vperm.slane %v1979_v32, 0  ;;  %v1986_v20 = vperm.slane %v1978_v50, 0  ;;  %v1988_v6 = vperm.slane %v1980_v14, 0 }
 0x51c   :  { %v1990_v0 = vperm.slane %v1982_v49, 0  ;;  %v1989_v11 = vperm.slane %v1981_v58, 0  ;;  %v1991_v4 = vperm.slane %v1983_v59, 0  ;;  %v1992_v44 = vperm.slane %v1984_v39, 0 }
 0x51d   :  { %2009 = vadd.xlane.f32.xlu2 %v2001_v31  ;;  %v2003_v61 = vmul.f32 %v3982_v37, %v1987_v35  ;;  %v2002_v62 = vmul.f32 %v3995_v51, %v1986_v20  ;;  %v2004_v40 = vmul.f32 %v4000_v27, %v1988_v6 }
 0x51e   :  { %v2006_v33 = vmul.f32 %v3998_v18, %v1990_v0  ;;  %v2005_v63 = vmul.f32 %v3980_v7, %v1989_v11  ;;  %v2007_v28 = vmul.f32 %v4013_v15, %v1991_v4  ;;  %v2008_v47 = vmul.f32 %v4016_v45, %v1992_v44 }
 0x51f   :  { %2013 = vadd.xlane.f32.xlu0 %v2003_v61  ;;  %2011 = vadd.xlane.f32.xlu1 %v2002_v62 }
 0x525   :  { %2015 = vadd.xlane.f32.xlu2 %v2004_v40 }
 0x527   :  { %2019 = vadd.xlane.f32.xlu0 %v2006_v33  ;;  %2017 = vadd.xlane.f32.xlu1 %v2005_v63 }
 0x52d   :  { %2021 = vadd.xlane.f32.xlu2 %v2007_v28 }
 0x52f   :  { %2023 = vadd.xlane.f32.xlu1 %v2008_v47 }
 0x590   :  { %v2010_v43 = vpop.xlane.xlu2 %2009 }
 0x591   :  { %v2025_v13 = vsel %vm895_vm12, %v2010_v43, -1e+30  ;;  %vm4973_vm12 = vcmask 1043459  }
 0x592   :  { %v2033_v22 = vsel %vm911_vm13, %v2025_v13, -inf  ;;  %v2014_v57 = vpop.xlane.xlu0 %2013  ;;  %v2012_v38 = vpop.xlane.xlu1 %2011 }
 0x593   :  { %v2034_v48 = vrot.slane %v2033_v22, 4  ;;  %v2027_v34 = vsel %vm897_vm15, %v2014_v57, -1e+30  ;;  %v2026_v24 = vsel %vm896_vm0, %v2012_v38, -1e+30  ;;  %vm4976_vm15 = vcmask 1046534  }
 0x594   :  { %v2047_v60 = vsel %vm911_vm13, %v2027_v34, -inf  ;;  %v2040_v3 = vsel %vm911_vm13, %v2026_v24, -inf  ;;  %vm4977_vm0 = vcmask 1047559  }
 0x595   :  { %v2035_v55 = vmax.f32 %v2033_v22, %v2034_v48  ;;  %v2048_v26 = vrot.slane %v2047_v60, 4  ;;  %v2041_v5 = vrot.slane %v2040_v3, 4 }
 0x597   :  { %v2036_v8 = vrot.slane %v2035_v55, 2  ;;  %v2049_v2 = vmax.f32 %v2047_v60, %v2048_v26  ;;  %v2042_v12 = vmax.f32 %v2040_v3, %v2041_v5 }
 0x598   :  { %v2016_v1 = vpop.xlane.xlu2 %2015 }
 0x599   :  { %v2037_v16 = vmax.f32 %v2035_v55, %v2036_v8  ;;  %v2050_v53 = vrot.slane %v2049_v2, 2  ;;  %v2043_v29 = vrot.slane %v2042_v12, 2  ;;  %v2028_v54 = vsel %vm898_vm2, %v2016_v1, -1e+30 }
 0x59a   :  { %v2054_v25 = vsel %vm911_vm13, %v2028_v54, -inf  ;;  %v2020_v56 = vpop.xlane.xlu0 %2019  ;;  %v2018_v41 = vpop.xlane.xlu1 %2017 }
 0x59b   :  { %v2038_v36 = vrot.slane %v2037_v16, 1  ;;  %v2051_v10 = vmax.f32 %v2049_v2, %v2050_v53  ;;  %v2044_v46 = vmax.f32 %v2042_v12, %v2043_v29  ;;  %v2055_v9 = vrot.slane %v2054_v25, 4 }
 0x59c   :  { %v4505_v42 = vsel %vm900_vm1, %v2020_v56, -1e+30  ;;  %v4509_v23 = vsel %vm899_vm14, %v2018_v41, -1e+30  ;;  %vm4975_vm14 = vcmask 1045509  }
 0x59d   :  { %v2039_v19 = vmax.f32 %v2037_v16, %v2038_v36  ;;  %v2052_v32 = vrot.slane %v2051_v10, 1  ;;  %v2045_v21 = vrot.slane %v2044_v46, 1  ;;  %v2056_v50 = vmax.f32 %v2054_v25, %v2055_v9  ;;  %v4965_v36 = vld [vmem:[#allocation44_spill] sm:$0xff] }
 0x59e   :  { %v2068_v31 = vsel %vm911_vm13, %v4505_v42, -inf  ;;  %v2061_v35 = vsel %vm911_vm13, %v4509_v23, -inf }
 0x59f   :  { %v2089_v20 = vsub.f32 %v2025_v13, %v2039_v19  ;;  %v2053_v14 = vmax.f32 %v2051_v10, %v2052_v32  ;;  %v2046_v61 = vmax.f32 %v2044_v46, %v2045_v21  ;;  %v2057_v62 = vrot.slane %v2056_v50, 2 }
 0x5a0   :  { %v2069_v49 = vrot.slane %v2068_v31, 4  ;;  %v2062_v58 = vrot.slane %v2061_v35, 4  ;;  %v2022_v6 = vpop.xlane.xlu2 %2021 }
 0x5a1   :  { %v2097_v0 = vmul.f32 1.442695, %v2089_v20  ;;  %v2091_v11 = vsub.f32 %v2027_v34, %v2053_v14  ;;  %v2090_v40 = vsub.f32 %v2026_v24, %v2046_v61  ;;  %v2058_v59 = vmax.f32 %v2056_v50, %v2057_v62  ;;  %v4967_v20 = vld [vmem:[#allocation52_spill] sm:$0xff] }
 0x5a2   :  { %v2070_v33 = vmax.f32 %v2068_v31, %v2069_v49  ;;  %v2063_v63 = vmax.f32 %v2061_v35, %v2062_v58  ;;  %v2031_v4 = vsel %vm901_vm3, %v2022_v6, -1e+30  ;;  %v2024_v44 = vpop.xlane.xlu1 %2023  ;;  %v4966_v31 = vld [vmem:[#allocation48_spill] sm:$0xff] }
 0x5a3   :  { %2944 = vpow2.f32 %v2097_v0  ;;  %v2101_v28 = vmul.f32 1.442695, %v2091_v11  ;;  %v2099_v47 = vmul.f32 1.442695, %v2090_v40  ;;  %v2059_v43 = vrot.slane %v2058_v59, 1 }
 0x5a4   :  { %v2071_v13 = vrot.slane %v2070_v33, 2  ;;  %v2064_v22 = vrot.slane %v2063_v63, 2  ;;  %v2075_v57 = vsel %vm911_vm13, %v2031_v4, -inf  ;;  %v2032_v48 = vsel %vm902_vm4, %v2024_v44, -1e+30 }
 0x5a5   :  { %2946 = vpow2.f32 %v2101_v28  ;;  %v2060_v34 = vmax.f32 %v2058_v59, %v2059_v43  ;;  %v2076_v24 = vrot.slane %v2075_v57, 4  ;;  %v2082_v60 = vsel %vm911_vm13, %v2032_v48, -inf }
 0x5a6   :  { %2948 = vpow2.f32 %v2099_v47  ;;  %v2072_v3 = vmax.f32 %v2070_v33, %v2071_v13  ;;  %v2065_v55 = vmax.f32 %v2063_v63, %v2064_v22  ;;  %v2083_v26 = vrot.slane %v2082_v60, 4  ;;  %v4968_v47 = vld [vmem:[#allocation64_spill] sm:$0xff] }
 0x5a7   :  { %v2092_v5 = vsub.f32 %v2028_v54, %v2060_v34  ;;  %v2077_v8 = vmax.f32 %v2075_v57, %v2076_v24 }
 0x5a8   :  { %v2073_v2 = vrot.slane %v2072_v3, 1  ;;  %v2066_v12 = vrot.slane %v2065_v55, 1  ;;  %v2084_v1 = vmax.f32 %v2082_v60, %v2083_v26 }
 0x5a9   :  { %v2945_v16 = vpop.eup %2944  ;;  %v2103_v53 = vmul.f32 1.442695, %v2092_v5  ;;  %v2078_v29 = vrot.slane %v2077_v8, 2 }
 0x5aa   :  { %v2074_v25 = vmax.f32 %v2072_v3, %v2073_v2  ;;  %v2067_v56 = vmax.f32 %v2065_v55, %v2066_v12  ;;  %v2085_v41 = vrot.slane %v2084_v1, 2  ;;  %v4522_v10 = vmul.f32 %v4965_v36, %v2945_v16  ;;  %v4969_v2 = vld [vmem:[#allocation60_spill] sm:$0xff] }
 0x5ab   :  { %v2947_v46 = vpop.eup %2946  ;;  %2950 = vpow2.f32 %v2103_v53  ;;  %v2079_v9 = vmax.f32 %v2077_v8, %v2078_v29  ;;  %v4970_v53 = vld [vmem:[#allocation56_spill] sm:$0xff] }
 0x5ac   :  { %v2949_v17 = vpop.eup %2948  ;;  %v2094_v52 = vsub.f32 %v4505_v42, %v2074_v25  ;;  %v2093_v54 = vsub.f32 %v4509_v23, %v2067_v56  ;;  %v2086_v19 = vmax.f32 %v2084_v1, %v2085_v41  ;;  %v2121_v32 = vsel %vm911_vm13, %v4522_v10, 0.0 }
 0x5ad   :  { %v2080_v21 = vrot.slane %v2079_v9, 1  ;;  %v2122_v50 = vrot.slane %v2121_v32, 4  ;;  %v4529_v35 = vmul.f32 %v4966_v31, %v2947_v46  ;;  %v4532_v14 = vmul.f32 %v4967_v20, %v2949_v17  ;;  %v4971_v20 = vld [vmem:[#allocation68_spill] sm:$0xff] }
 0x5ae   :  { %v2107_v61 = vmul.f32 1.442695, %v2094_v52  ;;  %v2105_v62 = vmul.f32 1.442695, %v2093_v54  ;;  %v2087_v49 = vrot.slane %v2086_v19, 1 }
 0x5af   :  { %v2081_v58 = vmax.f32 %v2079_v9, %v2080_v21  ;;  %v2123_v6 = vadd.f32 %v2122_v50, %v2121_v32  ;;  %v2135_v42 = vsel %vm911_vm13, %v4529_v35, 0.0  ;;  %v2128_v23 = vsel %vm911_vm13, %v4532_v14, 0.0 }
 0x5b0   :  { %2952 = vpow2.f32 %v2107_v61  ;;  %v2088_v0 = vmax.f32 %v2086_v19, %v2087_v49  ;;  %v2136_v11 = vrot.slane %v2135_v42, 4  ;;  %v2129_v40 = vrot.slane %v2128_v23, 4 }
 0x5b1   :  { %v2951_v59 = vpop.eup %2950  ;;  %2954 = vpow2.f32 %v2105_v62  ;;  %v2095_v33 = vsub.f32 %v2031_v4, %v2081_v58  ;;  %v2124_v63 = vrot.slane %v2123_v6, 2  ;;  %v4972_v58 = vld [vmem:[#allocation33_spill] sm:$0xff] }
 0x5b2   :  { %v2096_v39 = vsub.f32 %v2032_v48, %v2088_v0  ;;  %v2137_v44 = vadd.f32 %v2136_v11, %v2135_v42  ;;  %v2130_v28 = vadd.f32 %v2129_v40, %v2128_v23  ;;  %v4539_v43 = vmul.f32 %v4968_v47, %v2951_v59 }
 0x5b3   :  { %v2109_v13 = vmul.f32 1.442695, %v2095_v33  ;;  %v2125_v22 = vadd.f32 %v2124_v63, %v2123_v6 }
 0x5b4   :  { %v2111_v57 = vmul.f32 1.442695, %v2096_v39  ;;  %v2138_v38 = vrot.slane %v2137_v44, 2  ;;  %v2131_v34 = vrot.slane %v2130_v28, 2  ;;  %v2142_v24 = vsel %vm911_vm13, %v4539_v43, 0.0 }
 0x5b5   :  { %2956 = vpow2.f32 %v2109_v13  ;;  %v2126_v60 = vrot.slane %v2125_v22, 1  ;;  %v2143_v3 = vrot.slane %v2142_v24, 4 }
 0x5b6   :  { %v2953_v55 = vpop.eup %2952  ;;  %2958 = vpow2.f32 %v2111_v57  ;;  %v2139_v4 = vadd.f32 %v2138_v38, %v2137_v44  ;;  %v2132_v48 = vadd.f32 %v2131_v34, %v2130_v28 }
 0x5b7   :  { %v2955_v26 = vpop.eup %2954  ;;  %v2127_v5 = vadd.f32 %v2126_v60, %v2125_v22  ;;  %v2144_v8 = vadd.f32 %v2143_v3, %v2142_v24  ;;  %v4544_v12 = vmul.f32 %v4969_v2, %v2953_v55 }
 0x5b8   :  { %v2140_v1 = vrot.slane %v2139_v4, 1  ;;  %v2133_v16 = vrot.slane %v2132_v48, 1  ;;  %v4547_v29 = vmul.f32 %v4970_v53, %v2955_v26 }
 0x5b9   :  { %v2177_v25 = vmax.f32 %v2127_v5, 1e-30  ;;  %v2145_v56 = vrot.slane %v2144_v8, 2  ;;  %v2156_v41 = vsel %vm911_vm13, %v4544_v12, 0.0 }
 0x5ba   :  { %v2141_v36 = vadd.f32 %v2140_v1, %v2139_v4  ;;  %v2134_v46 = vadd.f32 %v2133_v16, %v2132_v48  ;;  %v2149_v9 = vsel %vm911_vm13, %v4547_v29, 0.0  ;;  %v2157_v17 = vrot.slane %v2156_v41, 4 }
 0x5bb   :  { %v2957_v52 = vpop.eup %2956  ;;  %2960 = vrcp.f32 %v2177_v25  ;;  %v2146_v54 = vadd.f32 %v2145_v56, %v2144_v8  ;;  %v2150_v19 = vrot.slane %v2149_v9, 4 }
 0x5bc   :  { %v2959_v32 = vpop.eup %2958  ;;  %v2179_v21 = vmax.f32 %v2141_v36, 1e-30  ;;  %v2178_v50 = vmax.f32 %v2134_v46, 1e-30  ;;  %v2158_v31 = vadd.f32 %v2157_v17, %v2156_v41  ;;  %v2119_v61 = vmul.f32 %v4971_v20, %v2957_v52 }
 0x5bd   :  { %v2147_v62 = vrot.slane %v2146_v54, 1  ;;  %v2151_v49 = vadd.f32 %v2150_v19, %v2149_v9  ;;  %v2120_v6 = vmul.f32 %v4972_v58, %v2959_v32 }
 0x5be   :  { %2962 = vrcp.f32 %v2179_v21  ;;  %v2159_v42 = vrot.slane %v2158_v31, 2  ;;  %v2163_v23 = vsel %vm911_vm13, %v2119_v61, 0.0 }
 0x5bf   :  { %2964 = vrcp.f32 %v2178_v50  ;;  %v2148_v0 = vadd.f32 %v2147_v62, %v2146_v54  ;;  %v2152_v11 = vrot.slane %v2151_v49, 2  ;;  %v2164_v40 = vrot.slane %v2163_v23, 4 }
 0x5c0   :  { %v2160_v59 = vadd.f32 %v2159_v42, %v2158_v31  ;;  %v2170_v33 = vsel %vm911_vm13, %v2120_v6, 0.0  ;;  %vm4974_vm13 = vcmask 1044484  }
 0x5c1   :  { %v2961_v63 = vpop.eup %2960  ;;  %v2180_v39 = vmax.f32 %v2148_v0, 1e-30  ;;  %v2153_v44 = vadd.f32 %v2152_v11, %v2151_v49  ;;  %v2165_v28 = vadd.f32 %v2164_v40, %v2163_v23  ;;  %v2171_v47 = vrot.slane %v2170_v33, 4 }
 0x5c2   :  { %v2193_v13 = vmul.f32 %v2961_v63, %v4522_v10  ;;  %v2161_v22 = vrot.slane %v2160_v59, 1 }
 0x5c3   :  { %2966 = vrcp.f32 %v2180_v39  ;;  %v2154_v57 = vrot.slane %v2153_v44, 1  ;;  %v2166_v38 = vrot.slane %v2165_v28, 2  ;;  %v2172_v34 = vadd.f32 %v2171_v47, %v2170_v33 }
 0x5c4   :  { %v2963_v24 = vpop.eup %2962  ;;  %2203 = vperm.xlu0 %2830, %v2193_v13   ;;  %v2162_v60 = vadd.f32 %v2161_v22, %v2160_v59 }
 0x5c5   :  { %v2965_v3 = vpop.eup %2964  ;;  %v2195_v55 = vmul.f32 %v2963_v24, %v4529_v35  ;;  %v2155_v4 = vadd.f32 %v2154_v57, %v2153_v44  ;;  %v2167_v48 = vadd.f32 %v2166_v38, %v2165_v28  ;;  %v2173_v26 = vrot.slane %v2172_v34, 2 }
 0x5c6   :  { %v2194_v5 = vmul.f32 %v2965_v3, %v4532_v14  ;;  %v2182_v8 = vmax.f32 %v2162_v60, 1e-30 }
 0x5c7   :  { %2213 = vperm.xlu1 %2831, %v2195_v55   ;;  %v2181_v2 = vmax.f32 %v2155_v4, 1e-30  ;;  %v2168_v10 = vrot.slane %v2167_v48, 1  ;;  %v2174_v1 = vadd.f32 %v2173_v26, %v2172_v34 }
 0x5c8   :  { %2208 = vperm.xlu2 %2829, %v2194_v5   ;;  %2968 = vrcp.f32 %v2182_v8 }
 0x5c9   :  { %v2967_v16 = vpop.eup %2966  ;;  %2970 = vrcp.f32 %v2181_v2  ;;  %v2169_v53 = vadd.f32 %v2168_v10, %v2167_v48  ;;  %v2175_v25 = vrot.slane %v2174_v1, 1 }
 0x5ca   :  { %v2196_v56 = vmul.f32 %v2967_v16, %v4539_v43 }
 0x5cb   :  { %v2183_v41 = vmax.f32 %v2169_v53, 1e-30  ;;  %v2176_v35 = vadd.f32 %v2175_v25, %v2174_v1 }
 0x5cc   :  { %2218 = vperm.xlu0 %2830, %v2196_v56  }
 0x5cd   :  { %2972 = vrcp.f32 %v2183_v41  ;;  %v2184_v36 = vmax.f32 %v2176_v35, 1e-30 }
 0x5ce   :  { %v2969_v46 = vpop.eup %2968 }
 0x5cf   :  { %v2971_v14 = vpop.eup %2970  ;;  %2974 = vrcp.f32 %v2184_v36  ;;  %v2198_v17 = vmul.f32 %v2969_v46, %v4544_v12 }
 0x5d0   :  { %v2197_v9 = vmul.f32 %v2971_v14, %v4547_v29 }
 0x5d2   :  { %2223 = vperm.xlu2 %2829, %v2197_v9  }
 0x5d3   :  { %v2973_v52 = vpop.eup %2972 }
 0x5d4   :  { %2228 = vperm.xlu0 %2830, %v2198_v17   ;;  %v2199_v54 = vmul.f32 %v2973_v52, %v2119_v61 }
 0x5d5   :  { %v2975_v19 = vpop.eup %2974 }
 0x5d6   :  { %2233 = vperm.xlu1 %2831, %v2199_v54   ;;  %v2200_v32 = vmul.f32 %v2975_v19, %v2120_v6 }
 0x5da   :  { %2238 = vperm.xlu2 %2829, %v2200_v32  }
 0x622   :  { %v2209_v43 = vpop.permute.xlu2 %2208 }
 0x623   :  { %v2242_v50 = vmul.f32 %v3995_v51, %v2209_v43 }
 0x625   :  { %v2255_v20 = vrot.slane %v2242_v50, 4 }
 0x627   :  { %v2256_v42 = vadd.f32 %v2255_v20, %v2242_v50 }
 0x629   :  { %v2257_v33 = vrot.slane %v2256_v42, 2 }
 0x62b   :  { %v2258_v47 = vadd.f32 %v2257_v33, %v2256_v42 }
 0x62c   :  { %v2224_v21 = vpop.permute.xlu2 %2223 }
 0x62d   :  { %v2245_v58 = vmul.f32 %v3980_v7, %v2224_v21  ;;  %v2259_v60 = vrot.slane %v2258_v47, 1 }
 0x62f   :  { %v2273_v11 = vrot.slane %v2245_v58, 4  ;;  %v2260_v10 = vadd.f32 %v2259_v60, %v2258_v47 }
 0x631   :  { %v2274_v28 = vadd.f32 %v2273_v11, %v2245_v58 }
 0x633   :  { %v2275_v38 = vrot.slane %v2274_v28, 2 }
 0x634   :  { %v2239_v61 = vpop.permute.xlu2 %2238 }
 0x635   :  { %v2248_v40 = vmul.f32 %v4016_v45, %v2239_v61  ;;  %v2276_v8 = vadd.f32 %v2275_v38, %v2274_v28 }
 0x636   :  { %v2204_v31 = vpop.permute.xlu0 %2203 }
 0x637   :  { %v2241_v62 = vmul.f32 %v3978_v30, %v2204_v31  ;;  %v2291_v7 = vrot.slane %v2248_v40, 4  ;;  %v2277_v36 = vrot.slane %v2276_v8, 1 }
 0x639   :  { %v2249_v49 = vrot.slane %v2241_v62, 4  ;;  %v2214_v29 = vpop.permute.xlu1 %2213  ;;  %v2292_v34 = vadd.f32 %v2291_v7, %v2248_v40  ;;  %v2278_v54 = vadd.f32 %v2277_v36, %v2276_v8 }
 0x63a   :  { %v2243_v12 = vmul.f32 %v3982_v37, %v2214_v29 }
 0x63b   :  { %v2250_v23 = vadd.f32 %v2249_v49, %v2241_v62  ;;  %v2293_v2 = vrot.slane %v2292_v34, 2 }
 0x63c   :  { %v2261_v0 = vrot.slane %v2243_v12, 4 }
 0x63d   :  { %v2251_v6 = vrot.slane %v2250_v23, 2 }
 0x63e   :  { %v2262_v59 = vadd.f32 %v2261_v0, %v2243_v12  ;;  %v2219_v51 = vpop.permute.xlu0 %2218 }
 0x63f   :  { %v2244_v63 = vmul.f32 %v4000_v27, %v2219_v51  ;;  %v2252_v39 = vadd.f32 %v2251_v6, %v2250_v23 }
 0x640   :  { %v2263_v30 = vrot.slane %v2262_v59, 2 }
 0x641   :  { %v2267_v44 = vrot.slane %v2244_v63, 4  ;;  %v2253_v22 = vrot.slane %v2252_v39, 1 }
 0x642   :  { %v2264_v13 = vadd.f32 %v2263_v30, %v2262_v59 }
 0x643   :  { %v2268_v37 = vadd.f32 %v2267_v44, %v2244_v63  ;;  %v2254_v27 = vadd.f32 %v2253_v22, %v2252_v39 }
 0x644   :  { %v2265_v55 = vrot.slane %v2264_v13, 1 }
 0x645   :  { %v2269_v57 = vrot.slane %v2268_v37, 2  ;;  %v2305_v25 = vsel %vm1184_vm5, %v2260_v10, %v2254_v27 }
 0x646   :  { %v2229_v24 = vpop.permute.xlu0 %2228  ;;  %v2266_v53 = vadd.f32 %v2265_v55, %v2264_v13 }
 0x647   :  { %v2270_v45 = vadd.f32 %v2269_v57, %v2268_v37  ;;  %v2246_v3 = vmul.f32 %v3998_v18, %v2229_v24  ;;  %v2294_v18 = vadd.f32 %v2293_v2, %v2292_v34 }
 0x648   :  { %v2234_v4 = vpop.permute.xlu1 %2233  ;;  %v2306_v9 = vsel %vm1186_vm6, %v2266_v53, %v2305_v25 }
 0x649   :  { %v2271_v48 = vrot.slane %v2270_v45, 1  ;;  %v2279_v26 = vrot.slane %v2246_v3, 4  ;;  %v2247_v5 = vmul.f32 %v4013_v15, %v2234_v4  ;;  %v2295_v19 = vrot.slane %v2294_v18, 1 }
 0x64b   :  { %v2280_v1 = vadd.f32 %v2279_v26, %v2246_v3  ;;  %v2285_v16 = vrot.slane %v2247_v5, 4  ;;  %v2272_v56 = vadd.f32 %v2271_v48, %v2270_v45  ;;  %v2296_v20 = vadd.f32 %v2295_v19, %v2294_v18 }
 0x64d   :  { %v2281_v41 = vrot.slane %v2280_v1, 2  ;;  %v2286_v35 = vadd.f32 %v2285_v16, %v2247_v5  ;;  %v2307_v17 = vsel %vm4973_vm12, %v2272_v56, %v2306_v9 }
 0x64e   :  { %v2308_v21 = vsel %vm4974_vm13, %v2278_v54, %v2307_v17 }
 0x64f   :  { %v2282_v46 = vadd.f32 %v2281_v41, %v2280_v1  ;;  %v2287_v14 = vrot.slane %v2286_v35, 2 }
 0x651   :  { %v2283_v15 = vrot.slane %v2282_v46, 1  ;;  %v2288_v52 = vadd.f32 %v2287_v14, %v2286_v35 }
 0x653   :  { %v2284_v32 = vadd.f32 %v2283_v15, %v2282_v46  ;;  %v2289_v43 = vrot.slane %v2288_v52, 1 }
 0x655   :  { %v2309_v50 = vsel %vm4975_vm14, %v2284_v32, %v2308_v21  ;;  %v2290_v31 = vadd.f32 %v2289_v43, %v2288_v52 }
 0x657   :  { %v2310_v62 = vsel %vm4976_vm15, %v2290_v31, %v2309_v50 }
 0x658   :  { %v2311_v49 = vsel %vm4977_vm0, %v2296_v20, %v2310_v62 }
 0x659   :  { %2314 = vst [vmem:[%s4585_s4 + $0x8] sm:$0xff] %v2311_v49 }

// kernel: model_forward.27
= control target key start
LH: loop header
LB: loop body
LE: loop exit
PB: predicated region body
PF: predicated region fallthrough
CT: control target
= control target key end

     0   :  { %vm551_vm2 = vcmask 523264   ;;  %s1074_s1 = inlined_call_operand.vmem [shape: bf16[640,128], index: 1, kind: input, shape index: {}]   ;;  %s1075_s2 = inlined_call_operand.vmem [shape: f32[1,128], index: 2, kind: input, shape index: {}]   ;;  %s1076_s0 = inlined_call_operand.vmem [shape: f32[8,640], index: 0, kind: input, shape index: {}]   ;;  %s1077_s4 = inlined_call_operand.vmem [shape: f32[1,64], index: 4, kind: input, shape index: {}]   ;;  %s1078_s3 = inlined_call_operand.vmem [shape: bf16[128,64], index: 3, kind: input, shape index: {}]   ;;  %s1079_s5 = inlined_call_operand.vmem [shape: bf16[64,128], index: 5, kind: input, shape index: {}]   ;;  %s1080_s6 = inlined_call_operand.vmem [shape: f32[1,128], index: 6, kind: input, shape index: {}]   ;;  %s1081_s7 = inlined_call_operand.vmem [shape: f32[8,128], index: 7, kind: output, shape index: {}]  }
   0x1   :  { %v799_v0 = vld [vmem:[%s1074_s1 + $0x38] sm:$0xff]  ;;  %v798_v3 = vld [vmem:[%s1074_s1 + $0x30] sm:$0xff]  ;;  %v797_v8 = vld [vmem:[%s1074_s1 + $0x28] sm:$0xff] }
   0x2   :  { %v815_v1 = vld [vmem:[%s1074_s1 + $0xb8] sm:$0xff]  ;;  %361 = vmatpush.bf16.msra.mxu0 %v799_v0  ;;  %v814_v5 = vld [vmem:[%s1074_s1 + $0xb0] sm:$0xff]  ;;  %v813_v9 = vld [vmem:[%s1074_s1 + $0xa8] sm:$0xff] }
   0x3   :  { %v823_v2 = vld [vmem:[%s1074_s1 + $0xf8] sm:$0xff]  ;;  %387 = vmatpush.bf16.msra.mxu2 %v815_v1  ;;  %v822_v6 = vld [vmem:[%s1074_s1 + $0xf0] sm:$0xff]  ;;  %v821_v10 = vld [vmem:[%s1074_s1 + $0xe8] sm:$0xff] }
   0x4   :  { %v807_v4 = vld [vmem:[%s1074_s1 + $0x78] sm:$0xff]  ;;  %400 = vmatpush.bf16.msra.mxu3 %v823_v2  ;;  %v806_v7 = vld [vmem:[%s1074_s1 + $0x70] sm:$0xff]  ;;  %v805_v11 = vld [vmem:[%s1074_s1 + $0x68] sm:$0xff] }
   0x5   :  { %374 = vmatpush.bf16.msra.mxu1 %v807_v4  ;;  %v796_v12 = vld [vmem:[%s1074_s1 + $0x20] sm:$0xff]  ;;  %v795_v16 = vld [vmem:[%s1074_s1 + $0x18] sm:$0xff]  ;;  %v794_v20 = vld [vmem:[%s1074_s1 + $0x10] sm:$0xff] }
   0x6   :  { %362 = vmatpush.bf16.msra.mxu0 %v798_v3  ;;  %v812_v13 = vld [vmem:[%s1074_s1 + $0xa0] sm:$0xff]  ;;  %v811_v17 = vld [vmem:[%s1074_s1 + $0x98] sm:$0xff]  ;;  %v810_v21 = vld [vmem:[%s1074_s1 + $0x90] sm:$0xff] }
   0x7   :  { %388 = vmatpush.bf16.msra.mxu2 %v814_v5  ;;  %v820_v14 = vld [vmem:[%s1074_s1 + $0xe0] sm:$0xff]  ;;  %v819_v18 = vld [vmem:[%s1074_s1 + $0xd8] sm:$0xff]  ;;  %v818_v22 = vld [vmem:[%s1074_s1 + $0xd0] sm:$0xff] }
   0x8   :  { %401 = vmatpush.bf16.msra.mxu3 %v822_v6  ;;  %v804_v15 = vld [vmem:[%s1074_s1 + $0x60] sm:$0xff]  ;;  %v803_v19 = vld [vmem:[%s1074_s1 + $0x58] sm:$0xff]  ;;  %v802_v23 = vld [vmem:[%s1074_s1 + $0x50] sm:$0xff] }
   0x9   :  { %375 = vmatpush.bf16.msra.mxu1 %v806_v7  ;;  %v793_v24 = vld [vmem:[%s1074_s1 + $0x8] sm:$0xff]  ;;  %v792_v28 = vld [vmem:[%s1074_s1] sm:$0xff]  ;;  %v831_v30 = vld [vmem:[%s1074_s1 + $0x138] sm:$0xff] }
   0xa   :  { %363 = vmatpush.bf16.msra.mxu0 %v797_v8  ;;  %v809_v25 = vld [vmem:[%s1074_s1 + $0x88] sm:$0xff]  ;;  %v27_v29 = vld [vmem:[%s1076_s0] sm:$0xff]  ;;  %v29_v32 = vld [vmem:[%s1076_s0 + $0x10] sm:$0xff] }
   0xb   :  { %389 = vmatpush.bf16.msra.mxu2 %v813_v9  ;;  %v817_v26 = vld [vmem:[%s1074_s1 + $0xc8] sm:$0xff]  ;;  %v808_v31 = vld [vmem:[%s1074_s1 + $0x80] sm:$0xff]  ;;  %v30_v35 = vld [vmem:[%s1076_s0 + $0x18] sm:$0xff]  ;;  %v32_v36 = vpack.c.bf16 %v27_v29, %v27_v29  ;;  %v34_v38 = vpack.c.bf16 %v29_v32, %v29_v32 }
   0xc   :  { %402 = vmatpush.bf16.msra.mxu3 %v821_v10  ;;  %v801_v27 = vld [vmem:[%s1074_s1 + $0x48] sm:$0xff]  ;;  %v816_v33 = vld [vmem:[%s1074_s1 + $0xc0] sm:$0xff]  ;;  %v830_v39 = vld [vmem:[%s1074_s1 + $0x130] sm:$0xff]  ;;  %v35_v40 = vpack.c.bf16 %v30_v35, %v30_v35 }
   0xd   :  { %376 = vmatpush.bf16.msra.mxu1 %v805_v11  ;;  %v800_v34 = vld [vmem:[%s1074_s1 + $0x40] sm:$0xff]  ;;  %v28_v37 = vld [vmem:[%s1076_s0 + $0x8] sm:$0xff]  ;;  %v827_v44 = vld [vmem:[%s1074_s1 + $0x118] sm:$0xff] }
   0xe   :  { %364 = vmatpush.bf16.msra.mxu0 %v796_v12  ;;  %v33_v41 = vpack.c.bf16 %v28_v37, %v28_v37  ;;  %v829_v42 = vld [vmem:[%s1074_s1 + $0x128] sm:$0xff]  ;;  %v828_v43 = vld [vmem:[%s1074_s1 + $0x120] sm:$0xff]  ;;  %v826_v45 = vld [vmem:[%s1074_s1 + $0x110] sm:$0xff] }
   0xf   :  { %390 = vmatpush.bf16.msra.mxu2 %v812_v13  ;;  %v825_v46 = vld [vmem:[%s1074_s1 + $0x108] sm:$0xff]  ;;  %v824_v47 = vld [vmem:[%s1074_s1 + $0x100] sm:$0xff]  ;;  %v839_v50 = vld [vmem:[%s1078_s3 + $0x38] sm:$0xff] }
  0x10   :  { %403 = vmatpush.bf16.msra.mxu3 %v820_v14  ;;  %v31_v48 = vld [vmem:[%s1076_s0 + $0x20] sm:$0xff]  ;;  %v838_v51 = vld [vmem:[%s1078_s3 + $0x30] sm:$0xff]  ;;  %v837_v52 = vld [vmem:[%s1078_s3 + $0x28] sm:$0xff] }
  0x11   :  { %377 = vmatpush.bf16.msra.mxu1 %v804_v15  ;;  %v36_v49 = vpack.c.bf16 %v31_v48, %v31_v48  ;;  %v836_v53 = vld [vmem:[%s1078_s3 + $0x20] sm:$0xff]  ;;  %v835_v54 = vld [vmem:[%s1078_s3 + $0x18] sm:$0xff]  ;;  %v834_v55 = vld [vmem:[%s1078_s3 + $0x10] sm:$0xff] }
  0x12   :  { %365 = vmatpush.bf16.msra.mxu0 %v795_v16  ;;  %v833_v56 = vld [vmem:[%s1078_s3 + $0x8] sm:$0xff]  ;;  %v832_v58 = vld [vmem:[%s1078_s3] sm:$0xff]  ;;  %v843_v60 = vld [vmem:[%s1079_s5 + $0x18] sm:$0xff] }
  0x13   :  { %391 = vmatpush.bf16.msra.mxu2 %v811_v17  ;;  %v842_v62 = vld [vmem:[%s1079_s5 + $0x10] sm:$0xff]  ;;  %v844_v2 = vld [vmem:[%s1075_s2] ss:$0 sm:$0xff]  ;;  %v841_v15 = vld [vmem:[%s1079_s5 + $0x8] sm:$0xff] }
  0x14   :  { %404 = vmatpush.bf16.msra.mxu3 %v819_v18  ;;  %v840_v16 = vld [vmem:[%s1079_s5] sm:$0xff] }
  0x15   :  { %378 = vmatpush.bf16.msra.mxu1 %v803_v19  ;;  %v845_v17 = vld [vmem:[%s1077_s4] ss:$0 sm:$0xff] }
  0x16   :  { %366 = vmatpush.bf16.msra.mxu0 %v794_v20 }
  0x17   :  { %392 = vmatpush.bf16.msra.mxu2 %v810_v21 }
  0x18   :  { %405 = vmatpush.bf16.msra.mxu3 %v818_v22 }
  0x19   :  { %379 = vmatpush.bf16.msra.mxu1 %v802_v23 }
  0x1a   :  { %367 = vmatpush.bf16.msra.mxu0 %v793_v24  ;;  %v846_v24 = vld [vmem:[%s1080_s6] ss:$0 sm:$0xff] }
  0x1b   :  { %393 = vmatpush.bf16.msra.mxu2 %v809_v25 }
  0x1c   :  { %406 = vmatpush.bf16.msra.mxu3 %v817_v26 }
  0x1d   :  { %380 = vmatpush.bf16.msra.mxu1 %v801_v27 }
  0x1e   :  { %368 = vmatpush.bf16.msra.mxu0 %v792_v28 }
  0x1f   :  { %394 = vmatpush.bf16.msra.mxu2 %v808_v31 }
  0x20   :  { %407 = vmatpush.bf16.msra.mxu3 %v816_v33 }
  0x21   :  { %381 = vmatpush.bf16.msra.mxu1 %v800_v34  ;;  %369 = vmatmul.bf16.vlgmr.msra.gmra.mxu0 %v32_v36 }
  0x22   :  { %413 = vmatpush.bf16.msrb.mxu0 %v831_v30  ;;  %395 = vmatmul.bf16.vlgmr.msra.gmra.mxu2 %v34_v38 }
  0x23   :  { %408 = vmatmul.bf16.vlgmr.msra.gmra.mxu3 %v35_v40  ;;  %559 = vmatpush.bf16.msrb.mxu2 %v843_v60 }
  0x24   :  { %382 = vmatmul.bf16.vlgmr.msra.gmra.mxu1 %v33_v41 }
  0x25   :  { %498 = vmatpush.bf16.msrb.mxu1 %v839_v50 }
  0x26   :  { %414 = vmatpush.bf16.msrb.mxu0 %v830_v39 }
  0x27   :  { %560 = vmatpush.bf16.msrb.mxu2 %v842_v62 }
  0x29   :  { %499 = vmatpush.bf16.msrb.mxu1 %v838_v51 }
  0x2a   :  { %415 = vmatpush.bf16.msrb.mxu0 %v829_v42 }
  0x2b   :  { %561 = vmatpush.bf16.msrb.mxu2 %v841_v15 }
  0x2d   :  { %500 = vmatpush.bf16.msrb.mxu1 %v837_v52 }
  0x2e   :  { %416 = vmatpush.bf16.msrb.mxu0 %v828_v43 }
  0x2f   :  { %562 = vmatpush.bf16.msrb.mxu2 %v840_v16 }
  0x31   :  { %501 = vmatpush.bf16.msrb.mxu1 %v836_v53 }
  0x32   :  { %417 = vmatpush.bf16.msrb.mxu0 %v827_v44 }
  0x35   :  { %502 = vmatpush.bf16.msrb.mxu1 %v835_v54 }
  0x36   :  { %418 = vmatpush.bf16.msrb.mxu0 %v826_v45 }
  0x39   :  { %503 = vmatpush.bf16.msrb.mxu1 %v834_v55 }
  0x3a   :  { %419 = vmatpush.bf16.msrb.mxu0 %v825_v46 }
  0x3d   :  { %504 = vmatpush.bf16.msrb.mxu1 %v833_v56 }
  0x3e   :  { %420 = vmatpush.bf16.msrb.mxu0 %v824_v47 }
  0x41   :  { %421 = vmatmul.bf16.vlgmr.msrb.gmra.mxu0 %v36_v49  ;;  %505 = vmatpush.bf16.msrb.mxu1 %v832_v58 }
  0x9e   :  { %v370_v57 = vpop.f32.mrf.mxu0 }
  0x9f   :  { %v371_v4 = vadd.f32 %v844_v2, %v370_v57 }
  0xa1   :  { %v383_v59 = vpop.f32.mrf.mxu1 }
  0xa2   :  { %v384_v6 = vadd.f32 %v383_v59, %v371_v4 }
  0xa5   :  { %v396_v61 = vpop.f32.mrf.mxu2 }
  0xa6   :  { %v372_v63 = vpop.f32.mrf.mxu0  ;;  %v409_v0 = vpop.f32.mrf.mxu3  ;;  %v397_v7 = vadd.f32 %v396_v61, %v384_v6 }
  0xa8   :  { %v410_v8 = vadd.f32 %v409_v0, %v397_v7 }
  0xa9   :  { %v385_v1 = vpop.f32.mrf.mxu1 }
  0xad   :  { %v398_v3 = vpop.f32.mrf.mxu2 }
  0xae   :  { %v411_v5 = vpop.f32.mrf.mxu3 }
  0xbe   :  { %v422_v9 = vpop.f32.mrf.mxu0 }
  0xbf   :  { %v423_v10 = vadd.f32 %v422_v9, %v410_v8 }
  0xc1   :  { %vm426_vm0 = vcmp.gt.f32.partialorder %v423_v10, 0.0  ;;  %v427_v11 = vmul.f32 0.01, %v423_v10 }
  0xc3   :  { %v428_v12 = vsel %vm426_vm0, %v423_v10, %v427_v11 }
  0xc4   :  { %v429_v13 = vpack.c.bf16 %v428_v12, %v428_v12 }
  0xc6   :  { %v424_v14 = vpop.f32.mrf.mxu0  ;;  %506 = vmatmul.bf16.vlgmr.msrb.gmra.mxu1 %v429_v13 }
 0x143   :  { %v507_v18 = vpop.f32.mrf.mxu1 }
 0x144   :  { %v508_v19 = vadd.f32 %v845_v17, %v507_v18 }
 0x146   :  { %vm511_vm1 = vcmp.gt.f32.partialorder %v508_v19, 0.0  ;;  %v512_v20 = vmul.f32 0.01, %v508_v19 }
 0x148   :  { %v513_v21 = vsel %vm511_vm1, %v508_v19, %v512_v20 }
 0x149   :  { %v514_v22 = vpack.c.bf16 %v513_v21, %v513_v21 }
 0x14b   :  { %v509_v23 = vpop.f32.mrf.mxu1  ;;  %791 = vmatmul.msk.bf16.vlgmr.msrb.gmra.mxu2 %vm551_vm2, %v514_v22 }
 0x1ce   :  { %v564_v25 = vpop.f32.mrf.mxu2 }
 0x1cf   :  { %v565_v26 = vadd.f32 %v846_v24, %v564_v25 }
 0x1d1   :  { %568 = vmax.xlane.f32.xlu0 %v565_v26 }
 0x1d6   :  { %v566_v27 = vpop.f32.mrf.mxu2 }
 0x244   :  { %v569_v28 = vpop.xlane.xlu0 %568 }
 0x245   :  { %v570_v29 = vsub.f32 %v565_v26, %v569_v28 }
 0x247   :  { %v571_v30 = vmul.f32 1.442695, %v570_v29 }
 0x249   :  { %847 = vpow2.f32 %v571_v30 }
 0x24f   :  { %v848_v31 = vpop.eup %847 }
 0x250   :  { %573 = vadd.xlane.f32.xlu0 %v848_v31 }
 0x2c3   :  { %v574_v32 = vpop.xlane.xlu0 %573 }
 0x2c4   :  { %849 = vlog2.f32 %v574_v32 }
 0x2ca   :  { %v850_v33 = vpop.eup %849 }
 0x2cb   :  { %v576_v34 = vmul.f32 0.6931472, %v850_v33 }
 0x2cd   :  { %v577_v35 = vsub.f32 %v570_v29, %v576_v34 }
 0x2cf   :  { %578 = vst [vmem:[%s1081_s7] sm:$0xff] %v577_v35 }

</bundles_post_ra>
